<compile_context>
chip_gen: v7x
topology: tpu7x:2x2x1
jax: 0.10.0
libtpu: 0.0.40
codegen_flags: <defaults>
</compile_context>

<pallas_src>
import jax
import jax.numpy as jnp
from jax.experimental import pallas as pl
from jax.experimental.pallas import tpu as pltpu

# ---------------------------------------------------------------------------
# Model hyper-parameters (small, TPU-tile-friendly stand-ins for the original
# 1024-dim BGE-M3 / 256-unit LSTM).
# ---------------------------------------------------------------------------
VOCAB = 100
PAD_ID = 0
BATCH = 8
SEQ = 8
EMB_DIM = 128      # stands in for embedding_model.config.hidden_size
HIDDEN = 128       # stands in for 256 LSTM units (per direction)
OUT_DIM = 8        # output_dim
OUT_PAD = 128      # lane-dense padded output width (sliced to OUT_DIM outside)


# ---------------------------------------------------------------------------
# Fused bidirectional-LSTM (final hidden states only, matching h_n[-2]/h_n[-1])
# + fc Linear, in a single Pallas kernel body.
# ---------------------------------------------------------------------------
def bilstm_fc_kernel(x_ref,      # (T*B, D)      bf16  time-major, flattened
                     wih_ref,    # (D, 8H)       bf16  [wih_fwd | wih_bwd]
                     whh_ref,    # (H, 8H)       bf16  [whh_fwd | whh_bwd]
                     b_ref,      # (1, 8H)       f32   folded biases [fwd|bwd]
                     fcw_ref,    # (2H, OUT_PAD) bf16  zero-padded past OUT_DIM
                     fcb_ref,    # (1, OUT_PAD)  f32   zero-padded past OUT_DIM
                     out_ref,    # (B, OUT_PAD)  f32   logits (padded)
                     gin_ref):   # scratch (T*B, 8H) f32
    TB, _ = x_ref.shape
    H = whh_ref.shape[0]
    B = out_ref.shape[0]
    T = TB // B
    G = 4 * H  # per-direction gate width

    # ---- hoisted input projection for BOTH directions: one MXU matmul.
    # TODO(synk): when scaling to the real model (T*B*8H f32 can exceed VMEM)
    # this hoisted gin scratch must be tiled over time or stored in bf16.
    gin_ref[...] = (jnp.dot(x_ref[...], wih_ref[...],
                            preferred_element_type=jnp.float32)
                    + b_ref[...])                               # (T*B, 8H) f32

    # Recurrent weights: one VMEM load, reused across all steps.
    whh = whh_ref[...]                                          # (H, 8H) bf16

    h_f = jnp.zeros((B, H), jnp.float32)
    c_f = jnp.zeros((B, H), jnp.float32)
    h_b = jnp.zeros((B, H), jnp.float32)
    c_b = jnp.zeros((B, H), jnp.float32)

    def lstm_gate_math(gates, c):
        # PyTorch gate order: i, f, g, o.  All math in f32 (safe on v5e; no
        # bf16 VPU/EUP there).
        i = jax.nn.sigmoid(gates[:, 0 * H:1 * H])
        f = jax.nn.sigmoid(gates[:, 1 * H:2 * H])
        g = jnp.tanh(gates[:, 2 * H:3 * H])
        o = jax.nn.sigmoid(gates[:, 3 * H:4 * H])
        c_new = f * c + i * g
        h_new = o * jnp.tanh(c_new)
        return h_new, c_new

    # Fully unrolled recurrence (T static); the two chains are independent so
    # the scheduler interleaves their MXU/EUP work.
    for s in range(T):
        # One recurrent matmul per step for both chains:
        # (2B, H) x (H, 8H) -> (2B, 8H); each direction uses its own quadrant.
        h_stack = jnp.concatenate([h_f, h_b], axis=0).astype(jnp.bfloat16)
        rec = jnp.dot(h_stack, whh, preferred_element_type=jnp.float32)

        # Forward chain consumes time step s; backward chain consumes T-1-s.
        gates_f = gin_ref[s * B:(s + 1) * B, 0:G] + rec[0:B, 0:G]
        gates_b = (gin_ref[(T - 1 - s) * B:(T - s) * B, G:2 * G]
                   + rec[B:2 * B, G:2 * G])

        h_f, c_f = lstm_gate_math(gates_f, c_f)
        h_b, c_b = lstm_gate_math(gates_b, c_b)

    # Dropout(p=0.3) is identity at inference.
    # fc(cat([h_fwd, h_bwd])) as one concat-K matmul; lane-dense (B,128) store.
    h_cat = jnp.concatenate([h_f, h_b], axis=1).astype(jnp.bfloat16)  # (B, 2H)
    out_ref[...] = (jnp.dot(h_cat, fcw_ref[...],
                            preferred_element_type=jnp.float32)
                    + fcb_ref[...])


# ---------------------------------------------------------------------------
# Parameter construction (deterministic, PyTorch layouts).
# ---------------------------------------------------------------------------
def init_params(key):
    ks = jax.random.split(key, 12)
    s = 0.05
    return {
        "embedding": jax.random.normal(ks[0], (VOCAB, EMB_DIM), jnp.float32),
        # PyTorch layout: weight_ih (4H, D), weight_hh (4H, H), biases (4H,)
        "w_ih_f": s * jax.random.normal(ks[1], (4 * HIDDEN, EMB_DIM), jnp.float32),
        "w_hh_f": s * jax.random.normal(ks[2], (4 * HIDDEN, HIDDEN), jnp.float32),
        "b_ih_f": s * jax.random.normal(ks[3], (4 * HIDDEN,), jnp.float32),
        "b_hh_f": s * jax.random.normal(ks[4], (4 * HIDDEN,), jnp.float32),
        "w_ih_b": s * jax.random.normal(ks[5], (4 * HIDDEN, EMB_DIM), jnp.float32),
        "w_hh_b": s * jax.random.normal(ks[6], (4 * HIDDEN, HIDDEN), jnp.float32),
        "b_ih_b": s * jax.random.normal(ks[7], (4 * HIDDEN,), jnp.float32),
        "b_hh_b": s * jax.random.normal(ks[8], (4 * HIDDEN,), jnp.float32),
        # fc: (OUT_DIM, 2H) weight, (OUT_DIM,) bias
        "fc_w": s * jax.random.normal(ks[9], (OUT_DIM, 2 * HIDDEN), jnp.float32),
        "fc_b": s * jax.random.normal(ks[10], (OUT_DIM,), jnp.float32),
    }


# ---------------------------------------------------------------------------
# Forward wrapper (glue in plain JAX, hot path in the single Pallas kernel).
# ---------------------------------------------------------------------------
@jax.jit
def news_classifier_forward(token_ids, params, attention_mask=None):
    if attention_mask is None:
        attention_mask = (token_ids != PAD_ID).astype(jnp.int32)
    # TODO(synk): the frozen BGE-M3 transformer encoder (and its use of
    # attention_mask) cannot be reproduced without its checkpoint; a
    # deterministic embedding-table lookup stands in for last_hidden_state.
    del attention_mask
    emb = params["embedding"][token_ids]                 # (B, T, D) f32
    x_tbd = jnp.transpose(emb, (1, 0, 2))                # (T, B, D) time-major
    # Flatten in the wrapper (free HLO work) -> tile-aligned (T*B, D) operand.
    x_flat = x_tbd.reshape(SEQ * BATCH, EMB_DIM).astype(jnp.bfloat16)

    # Pre-transpose + concat weights so the kernel does plain row-major
    # matmuls; fold the two PyTorch biases per direction; cast MXU operands to
    # bf16 (accumulation stays f32 inside the kernel).
    wih_cat = jnp.concatenate(
        [params["w_ih_f"].T, params["w_ih_b"].T], axis=1
    ).astype(jnp.bfloat16)                               # (D, 8H)
    whh_cat = jnp.concatenate(
        [params["w_hh_f"].T, params["w_hh_b"].T], axis=1
    ).astype(jnp.bfloat16)                               # (H, 8H)
    b_cat = jnp.concatenate([
        params["b_ih_f"] + params["b_hh_f"],
        params["b_ih_b"] + params["b_hh_b"],
    ]).reshape(1, 8 * HIDDEN)                            # (1, 8H) f32

    # fc weight as one concat-K matrix (rows 0:H -> fwd h, rows H:2H -> bwd h),
    # zero-padded to 128 output lanes so the kernel store is lane-dense.
    fc_w_pad = jnp.zeros((2 * HIDDEN, OUT_PAD), jnp.float32)
    fc_w_pad = fc_w_pad.at[:, :OUT_DIM].set(params["fc_w"].T)
    fc_w_pad = fc_w_pad.astype(jnp.bfloat16)             # (2H, 128)
    fc_b_pad = jnp.zeros((1, OUT_PAD), jnp.float32).at[0, :OUT_DIM].set(
        params["fc_b"])                                  # (1, 128)

    grid_spec = pltpu.PrefetchScalarGridSpec(
        num_scalar_prefetch=0,
        grid=(1,),
        in_specs=[
            pl.BlockSpec((SEQ * BATCH, EMB_DIM), lambda i: (0, 0)),
            pl.BlockSpec((EMB_DIM, 8 * HIDDEN), lambda i: (0, 0)),
            pl.BlockSpec((HIDDEN, 8 * HIDDEN), lambda i: (0, 0)),
            pl.BlockSpec((1, 8 * HIDDEN), lambda i: (0, 0)),
            pl.BlockSpec((2 * HIDDEN, OUT_PAD), lambda i: (0, 0)),
            pl.BlockSpec((1, OUT_PAD), lambda i: (0, 0)),
        ],
        out_specs=pl.BlockSpec((BATCH, OUT_PAD), lambda i: (0, 0)),
        scratch_shapes=[pltpu.VMEM((SEQ * BATCH, 8 * HIDDEN), jnp.float32)],
    )

    logits_pad = pl.pallas_call(
        bilstm_fc_kernel,
        out_shape=jax.ShapeDtypeStruct((BATCH, OUT_PAD), jnp.float32),
        grid_spec=grid_spec,
        compiler_params=pltpu.CompilerParams(
            dimension_semantics=("arbitrary",)),
    )(x_flat, wih_cat, whh_cat, b_cat, fc_w_pad, fc_b_pad)

    return logits_pad[:, :OUT_DIM]


# ---------------------------------------------------------------------------
# Pure-JAX reference (f32 math, no Pallas) for a correctness check.
# ---------------------------------------------------------------------------
def reference_forward(token_ids, params):
    emb = params["embedding"][token_ids]            # (B, T, D)
    B, T, _ = emb.shape
    H = HIDDEN

    def cell(x_t, h, c, wih, whh, b):
        gates = x_t @ wih.T + h @ whh.T + b
        i = jax.nn.sigmoid(gates[:, 0 * H:1 * H])
        f = jax.nn.sigmoid(gates[:, 1 * H:2 * H])
        g = jnp.tanh(gates[:, 2 * H:3 * H])
        o = jax.nn.sigmoid(gates[:, 3 * H:4 * H])
        c = f * c + i * g
        h = o * jnp.tanh(c)
        return h, c

    hf = cf = hb = cb = jnp.zeros((B, H), jnp.float32)
    b_f = params["b_ih_f"] + params["b_hh_f"]
    b_b = params["b_ih_b"] + params["b_hh_b"]
    for t in range(T):
        hf, cf = cell(emb[:, t], hf, cf, params["w_ih_f"], params["w_hh_f"], b_f)
        hb, cb = cell(emb[:, T - 1 - t], hb, cb, params["w_ih_b"],
                      params["w_hh_b"], b_b)
    h_cat = jnp.concatenate([hf, hb], axis=1)
    return h_cat @ params["fc_w"].T + params["fc_b"]


if __name__ == "__main__":
    key = jax.random.PRNGKey(0)
    k_ids, k_params = jax.random.split(key)
    token_ids = jax.random.randint(k_ids, (BATCH, SEQ), 0, VOCAB, dtype=jnp.int32)
    params = init_params(k_params)

    logits = news_classifier_forward(token_ids, params)
    logits = jax.block_until_ready(logits)

    ref = reference_forward(token_ids, params)
    assert logits.shape == (BATCH, OUT_DIM)
    # Tolerance loosened vs. pure-f32 because MXU operands are bf16
    # (accumulation is f32); gate/state math remains f32.
    assert jnp.allclose(logits, ref, atol=3e-2, rtol=3e-2), "mismatch vs reference"
    print("KERNEL_OK")
</pallas_src>

<mosaic_0001>
module attributes {stable_mosaic.version = 11 : i64} {
  func.func @bilstm_fc_kernel(%arg0: i32, %arg1: memref<64x128xbf16, #tpu.memory_space<vmem>>, %arg2: memref<128x1024xbf16, #tpu.memory_space<vmem>>, %arg3: memref<128x1024xbf16, #tpu.memory_space<vmem>>, %arg4: memref<1x1024xf32, #tpu.memory_space<vmem>>, %arg5: memref<256x128xbf16, #tpu.memory_space<vmem>>, %arg6: memref<1x128xf32, #tpu.memory_space<vmem>>, %arg7: memref<8x128xf32, #tpu.memory_space<vmem>>, %arg8: memref<64x1024xf32, #tpu.memory_space<vmem>>) attributes {dimension_semantics = [#tpu.dimension_semantics<arbitrary>], iteration_bounds = array<i64: 1>, scalar_prefetch = 0 : i64, scratch_operands = 1 : i64, tpu.core_type = #tpu.core_type<tc>, window_params = [{pipeline_mode = #tpu.pipeline_mode<synchronous>, transform_indices = @transform_0, window_bounds = array<i64: 64, 128>}, {pipeline_mode = #tpu.pipeline_mode<synchronous>, transform_indices = @transform_1, window_bounds = array<i64: 128, 1024>}, {pipeline_mode = #tpu.pipeline_mode<synchronous>, transform_indices = @transform_2, window_bounds = array<i64: 128, 1024>}, {pipeline_mode = #tpu.pipeline_mode<synchronous>, transform_indices = @transform_3, window_bounds = array<i64: 1, 1024>}, {pipeline_mode = #tpu.pipeline_mode<synchronous>, transform_indices = @transform_4, window_bounds = array<i64: 256, 128>}, {pipeline_mode = #tpu.pipeline_mode<synchronous>, transform_indices = @transform_5, window_bounds = array<i64: 1, 128>}, {pipeline_mode = #tpu.pipeline_mode<synchronous>, transform_indices = @transform_6, window_bounds = array<i64: 8, 128>}]} {
    %c0 = arith.constant 0 : index
    %c0_0 = arith.constant 0 : index
    %0 = vector.load %arg1[%c0, %c0_0] : memref<64x128xbf16, #tpu.memory_space<vmem>>, vector<64x128xbf16>
    %c0_1 = arith.constant 0 : index
    %c0_2 = arith.constant 0 : index
    %1 = vector.load %arg2[%c0_1, %c0_2] : memref<128x1024xbf16, #tpu.memory_space<vmem>>, vector<128x1024xbf16>
    %cst = arith.constant dense<0.000000e+00> : vector<64x1024xf32>
    %2 = tpu.matmul %0, %1, %cst {dimension_numbers = #tpu.dot_dimension_numbers<[1], [0], [0], [1], [0, 0, 1, 1], [], []>} : vector<64x128xbf16>, vector<128x1024xbf16>, vector<64x1024xf32> -> vector<64x1024xf32>
    %c0_3 = arith.constant 0 : index
    %c0_4 = arith.constant 0 : index
    %3 = vector.load %arg4[%c0_3, %c0_4] : memref<1x1024xf32, #tpu.memory_space<vmem>>, vector<1x1024xf32>
    %4 = vector.broadcast %3 : vector<1x1024xf32> to vector<64x1024xf32>
    %5 = arith.addf %2, %4 : vector<64x1024xf32>
    %c0_5 = arith.constant 0 : index
    %c0_6 = arith.constant 0 : index
    %6 = vector.load %arg8[%c0_5, %c0_6] : memref<64x1024xf32, #tpu.memory_space<vmem>>, vector<64x1024xf32>
    tpu.vector_store %arg8[%c0_5, %c0_6], %5 {strides = array<i32>} : memref<64x1024xf32, #tpu.memory_space<vmem>>, vector<64x1024xf32>,
    %c0_7 = arith.constant 0 : index
    %c0_8 = arith.constant 0 : index
    %7 = vector.load %arg3[%c0_7, %c0_8] : memref<128x1024xbf16, #tpu.memory_space<vmem>>, vector<128x1024xbf16>
    %cst_9 = arith.constant 0.000000e+00 : f32
    %8 = vector.broadcast %cst_9 : f32 to vector<8x128xf32>
    %cst_10 = arith.constant 0.000000e+00 : f32
    %9 = vector.broadcast %cst_10 : f32 to vector<8x128xf32>
    %cst_11 = arith.constant 0.000000e+00 : f32
    %10 = vector.broadcast %cst_11 : f32 to vector<8x128xf32>
    %cst_12 = arith.constant 0.000000e+00 : f32
    %11 = vector.broadcast %cst_12 : f32 to vector<8x128xf32>
    %12 = tpu.concatenate %8, %10 in 0 : vector<8x128xf32>, vector<8x128xf32> -> vector<16x128xf32>
    %13 = arith.truncf %12 : vector<16x128xf32> to vector<16x128xbf16>
    %cst_13 = arith.constant dense<0.000000e+00> : vector<16x1024xf32>
    %14 = tpu.matmul %13, %7, %cst_13 {dimension_numbers = #tpu.dot_dimension_numbers<[1], [0], [0], [1], [0, 0, 1, 1], [], []>} : vector<16x128xbf16>, vector<128x1024xbf16>, vector<16x1024xf32> -> vector<16x1024xf32>
    %c0_14 = arith.constant 0 : index
    %c0_15 = arith.constant 0 : index
    %15 = vector.load %arg8[%c0_14, %c0_15] : memref<64x1024xf32, #tpu.memory_space<vmem>>, vector<8x512xf32>
    %16 = vector.extract_strided_slice %14 {offsets = [0, 0], sizes = [8, 512], strides = [1, 1]} : vector<16x1024xf32> to vector<8x512xf32>
    %17 = arith.addf %15, %16 : vector<8x512xf32>
    %c56 = arith.constant 56 : index
    %c512 = arith.constant 512 : index
    %18 = vector.load %arg8[%c56, %c512] : memref<64x1024xf32, #tpu.memory_space<vmem>>, vector<8x512xf32>
    %19 = vector.extract_strided_slice %14 {offsets = [8, 512], sizes = [8, 512], strides = [1, 1]} : vector<16x1024xf32> to vector<8x512xf32>
    %20 = arith.addf %18, %19 : vector<8x512xf32>
    %21 = vector.extract_strided_slice %17 {offsets = [0, 0], sizes = [8, 128], strides = [1, 1]} : vector<8x512xf32> to vector<8x128xf32>
    %22 = arith.negf %21 : vector<8x128xf32>
    %23 = math.exp %22 : vector<8x128xf32>
    %cst_16 = arith.constant 1.000000e+00 : f32
    %24 = vector.broadcast %cst_16 : f32 to vector<8x128xf32>
    %25 = arith.addf %24, %23 : vector<8x128xf32>
    %26 = arith.divf %24, %25 : vector<8x128xf32>
    %27 = vector.extract_strided_slice %17 {offsets = [0, 128], sizes = [8, 128], strides = [1, 1]} : vector<8x512xf32> to vector<8x128xf32>
    %28 = arith.negf %27 : vector<8x128xf32>
    %29 = math.exp %28 : vector<8x128xf32>
    %cst_17 = arith.constant 1.000000e+00 : f32
    %30 = vector.broadcast %cst_17 : f32 to vector<8x128xf32>
    %31 = arith.addf %30, %29 : vector<8x128xf32>
    %32 = arith.divf %30, %31 : vector<8x128xf32>
    %33 = vector.extract_strided_slice %17 {offsets = [0, 256], sizes = [8, 128], strides = [1, 1]} : vector<8x512xf32> to vector<8x128xf32>
    %34 = math.tanh %33 : vector<8x128xf32>
    %35 = vector.extract_strided_slice %17 {offsets = [0, 384], sizes = [8, 128], strides = [1, 1]} : vector<8x512xf32> to vector<8x128xf32>
    %36 = arith.negf %35 : vector<8x128xf32>
    %37 = math.exp %36 : vector<8x128xf32>
    %cst_18 = arith.constant 1.000000e+00 : f32
    %38 = vector.broadcast %cst_18 : f32 to vector<8x128xf32>
    %39 = arith.addf %38, %37 : vector<8x128xf32>
    %40 = arith.divf %38, %39 : vector<8x128xf32>
    %41 = arith.mulf %32, %9 : vector<8x128xf32>
    %42 = arith.mulf %26, %34 : vector<8x128xf32>
    %43 = arith.addf %41, %42 : vector<8x128xf32>
    %44 = math.tanh %43 : vector<8x128xf32>
    %45 = arith.mulf %40, %44 : vector<8x128xf32>
    %46 = vector.extract_strided_slice %20 {offsets = [0, 0], sizes = [8, 128], strides = [1, 1]} : vector<8x512xf32> to vector<8x128xf32>
    %47 = arith.negf %46 : vector<8x128xf32>
    %48 = math.exp %47 : vector<8x128xf32>
    %cst_19 = arith.constant 1.000000e+00 : f32
    %49 = vector.broadcast %cst_19 : f32 to vector<8x128xf32>
    %50 = arith.addf %49, %48 : vector<8x128xf32>
    %51 = arith.divf %49, %50 : vector<8x128xf32>
    %52 = vector.extract_strided_slice %20 {offsets = [0, 128], sizes = [8, 128], strides = [1, 1]} : vector<8x512xf32> to vector<8x128xf32>
    %53 = arith.negf %52 : vector<8x128xf32>
    %54 = math.exp %53 : vector<8x128xf32>
    %cst_20 = arith.constant 1.000000e+00 : f32
    %55 = vector.broadcast %cst_20 : f32 to vector<8x128xf32>
    %56 = arith.addf %55, %54 : vector<8x128xf32>
    %57 = arith.divf %55, %56 : vector<8x128xf32>
    %58 = vector.extract_strided_slice %20 {offsets = [0, 256], sizes = [8, 128], strides = [1, 1]} : vector<8x512xf32> to vector<8x128xf32>
    %59 = math.tanh %58 : vector<8x128xf32>
    %60 = vector.extract_strided_slice %20 {offsets = [0, 384], sizes = [8, 128], strides = [1, 1]} : vector<8x512xf32> to vector<8x128xf32>
    %61 = arith.negf %60 : vector<8x128xf32>
    %62 = math.exp %61 : vector<8x128xf32>
    %cst_21 = arith.constant 1.000000e+00 : f32
    %63 = vector.broadcast %cst_21 : f32 to vector<8x128xf32>
    %64 = arith.addf %63, %62 : vector<8x128xf32>
    %65 = arith.divf %63, %64 : vector<8x128xf32>
    %66 = arith.mulf %57, %11 : vector<8x128xf32>
    %67 = arith.mulf %51, %59 : vector<8x128xf32>
    %68 = arith.addf %66, %67 : vector<8x128xf32>
    %69 = math.tanh %68 : vector<8x128xf32>
    %70 = arith.mulf %65, %69 : vector<8x128xf32>
    %71 = tpu.concatenate %45, %70 in 0 : vector<8x128xf32>, vector<8x128xf32> -> vector<16x128xf32>
    %72 = arith.truncf %71 : vector<16x128xf32> to vector<16x128xbf16>
    %cst_22 = arith.constant dense<0.000000e+00> : vector<16x1024xf32>
    %73 = tpu.matmul %72, %7, %cst_22 {dimension_numbers = #tpu.dot_dimension_numbers<[1], [0], [0], [1], [0, 0, 1, 1], [], []>} : vector<16x128xbf16>, vector<128x1024xbf16>, vector<16x1024xf32> -> vector<16x1024xf32>
    %c8 = arith.constant 8 : index
    %c0_23 = arith.constant 0 : index
    %74 = vector.load %arg8[%c8, %c0_23] : memref<64x1024xf32, #tpu.memory_space<vmem>>, vector<8x512xf32>
    %75 = vector.extract_strided_slice %73 {offsets = [0, 0], sizes = [8, 512], strides = [1, 1]} : vector<16x1024xf32> to vector<8x512xf32>
    %76 = arith.addf %74, %75 : vector<8x512xf32>
    %c48 = arith.constant 48 : index
    %c512_24 = arith.constant 512 : index
    %77 = vector.load %arg8[%c48, %c512_24] : memref<64x1024xf32, #tpu.memory_space<vmem>>, vector<8x512xf32>
    %78 = vector.extract_strided_slice %73 {offsets = [8, 512], sizes = [8, 512], strides = [1, 1]} : vector<16x1024xf32> to vector<8x512xf32>
    %79 = arith.addf %77, %78 : vector<8x512xf32>
    %80 = vector.extract_strided_slice %76 {offsets = [0, 0], sizes = [8, 128], strides = [1, 1]} : vector<8x512xf32> to vector<8x128xf32>
    %81 = arith.negf %80 : vector<8x128xf32>
    %82 = math.exp %81 : vector<8x128xf32>
    %cst_25 = arith.constant 1.000000e+00 : f32
    %83 = vector.broadcast %cst_25 : f32 to vector<8x128xf32>
    %84 = arith.addf %83, %82 : vector<8x128xf32>
    %85 = arith.divf %83, %84 : vector<8x128xf32>
    %86 = vector.extract_strided_slice %76 {offsets = [0, 128], sizes = [8, 128], strides = [1, 1]} : vector<8x512xf32> to vector<8x128xf32>
    %87 = arith.negf %86 : vector<8x128xf32>
    %88 = math.exp %87 : vector<8x128xf32>
    %cst_26 = arith.constant 1.000000e+00 : f32
    %89 = vector.broadcast %cst_26 : f32 to vector<8x128xf32>
    %90 = arith.addf %89, %88 : vector<8x128xf32>
    %91 = arith.divf %89, %90 : vector<8x128xf32>
    %92 = vector.extract_strided_slice %76 {offsets = [0, 256], sizes = [8, 128], strides = [1, 1]} : vector<8x512xf32> to vector<8x128xf32>
    %93 = math.tanh %92 : vector<8x128xf32>
    %94 = vector.extract_strided_slice %76 {offsets = [0, 384], sizes = [8, 128], strides = [1, 1]} : vector<8x512xf32> to vector<8x128xf32>
    %95 = arith.negf %94 : vector<8x128xf32>
    %96 = math.exp %95 : vector<8x128xf32>
    %cst_27 = arith.constant 1.000000e+00 : f32
    %97 = vector.broadcast %cst_27 : f32 to vector<8x128xf32>
    %98 = arith.addf %97, %96 : vector<8x128xf32>
    %99 = arith.divf %97, %98 : vector<8x128xf32>
    %100 = arith.mulf %91, %43 : vector<8x128xf32>
    %101 = arith.mulf %85, %93 : vector<8x128xf32>
    %102 = arith.addf %100, %101 : vector<8x128xf32>
    %103 = math.tanh %102 : vector<8x128xf32>
    %104 = arith.mulf %99, %103 : vector<8x128xf32>
    %105 = vector.extract_strided_slice %79 {offsets = [0, 0], sizes = [8, 128], strides = [1, 1]} : vector<8x512xf32> to vector<8x128xf32>
    %106 = arith.negf %105 : vector<8x128xf32>
    %107 = math.exp %106 : vector<8x128xf32>
    %cst_28 = arith.constant 1.000000e+00 : f32
    %108 = vector.broadcast %cst_28 : f32 to vector<8x128xf32>
    %109 = arith.addf %108, %107 : vector<8x128xf32>
    %110 = arith.divf %108, %109 : vector<8x128xf32>
    %111 = vector.extract_strided_slice %79 {offsets = [0, 128], sizes = [8, 128], strides = [1, 1]} : vector<8x512xf32> to vector<8x128xf32>
    %112 = arith.negf %111 : vector<8x128xf32>
    %113 = math.exp %112 : vector<8x128xf32>
    %cst_29 = arith.constant 1.000000e+00 : f32
    %114 = vector.broadcast %cst_29 : f32 to vector<8x128xf32>
    %115 = arith.addf %114, %113 : vector<8x128xf32>
    %116 = arith.divf %114, %115 : vector<8x128xf32>
    %117 = vector.extract_strided_slice %79 {offsets = [0, 256], sizes = [8, 128], strides = [1, 1]} : vector<8x512xf32> to vector<8x128xf32>
    %118 = math.tanh %117 : vector<8x128xf32>
    %119 = vector.extract_strided_slice %79 {offsets = [0, 384], sizes = [8, 128], strides = [1, 1]} : vector<8x512xf32> to vector<8x128xf32>
    %120 = arith.negf %119 : vector<8x128xf32>
    %121 = math.exp %120 : vector<8x128xf32>
    %cst_30 = arith.constant 1.000000e+00 : f32
    %122 = vector.broadcast %cst_30 : f32 to vector<8x128xf32>
    %123 = arith.addf %122, %121 : vector<8x128xf32>
    %124 = arith.divf %122, %123 : vector<8x128xf32>
    %125 = arith.mulf %116, %68 : vector<8x128xf32>
    %126 = arith.mulf %110, %118 : vector<8x128xf32>
    %127 = arith.addf %125, %126 : vector<8x128xf32>
    %128 = math.tanh %127 : vector<8x128xf32>
    %129 = arith.mulf %124, %128 : vector<8x128xf32>
    %130 = tpu.concatenate %104, %129 in 0 : vector<8x128xf32>, vector<8x128xf32> -> vector<16x128xf32>
    %131 = arith.truncf %130 : vector<16x128xf32> to vector<16x128xbf16>
    %cst_31 = arith.constant dense<0.000000e+00> : vector<16x1024xf32>
    %132 = tpu.matmul %131, %7, %cst_31 {dimension_numbers = #tpu.dot_dimension_numbers<[1], [0], [0], [1], [0, 0, 1, 1], [], []>} : vector<16x128xbf16>, vector<128x1024xbf16>, vector<16x1024xf32> -> vector<16x1024xf32>
    %c16 = arith.constant 16 : index
    %c0_32 = arith.constant 0 : index
    %133 = vector.load %arg8[%c16, %c0_32] : memref<64x1024xf32, #tpu.memory_space<vmem>>, vector<8x512xf32>
    %134 = vector.extract_strided_slice %132 {offsets = [0, 0], sizes = [8, 512], strides = [1, 1]} : vector<16x1024xf32> to vector<8x512xf32>
    %135 = arith.addf %133, %134 : vector<8x512xf32>
    %c40 = arith.constant 40 : index
    %c512_33 = arith.constant 512 : index
    %136 = vector.load %arg8[%c40, %c512_33] : memref<64x1024xf32, #tpu.memory_space<vmem>>, vector<8x512xf32>
    %137 = vector.extract_strided_slice %132 {offsets = [8, 512], sizes = [8, 512], strides = [1, 1]} : vector<16x1024xf32> to vector<8x512xf32>
    %138 = arith.addf %136, %137 : vector<8x512xf32>
    %139 = vector.extract_strided_slice %135 {offsets = [0, 0], sizes = [8, 128], strides = [1, 1]} : vector<8x512xf32> to vector<8x128xf32>
    %140 = arith.negf %139 : vector<8x128xf32>
    %141 = math.exp %140 : vector<8x128xf32>
    %cst_34 = arith.constant 1.000000e+00 : f32
    %142 = vector.broadcast %cst_34 : f32 to vector<8x128xf32>
    %143 = arith.addf %142, %141 : vector<8x128xf32>
    %144 = arith.divf %142, %143 : vector<8x128xf32>
    %145 = vector.extract_strided_slice %135 {offsets = [0, 128], sizes = [8, 128], strides = [1, 1]} : vector<8x512xf32> to vector<8x128xf32>
    %146 = arith.negf %145 : vector<8x128xf32>
    %147 = math.exp %146 : vector<8x128xf32>
    %cst_35 = arith.constant 1.000000e+00 : f32
    %148 = vector.broadcast %cst_35 : f32 to vector<8x128xf32>
    %149 = arith.addf %148, %147 : vector<8x128xf32>
    %150 = arith.divf %148, %149 : vector<8x128xf32>
    %151 = vector.extract_strided_slice %135 {offsets = [0, 256], sizes = [8, 128], strides = [1, 1]} : vector<8x512xf32> to vector<8x128xf32>
    %152 = math.tanh %151 : vector<8x128xf32>
    %153 = vector.extract_strided_slice %135 {offsets = [0, 384], sizes = [8, 128], strides = [1, 1]} : vector<8x512xf32> to vector<8x128xf32>
    %154 = arith.negf %153 : vector<8x128xf32>
    %155 = math.exp %154 : vector<8x128xf32>
    %cst_36 = arith.constant 1.000000e+00 : f32
    %156 = vector.broadcast %cst_36 : f32 to vector<8x128xf32>
    %157 = arith.addf %156, %155 : vector<8x128xf32>
    %158 = arith.divf %156, %157 : vector<8x128xf32>
    %159 = arith.mulf %150, %102 : vector<8x128xf32>
    %160 = arith.mulf %144, %152 : vector<8x128xf32>
    %161 = arith.addf %159, %160 : vector<8x128xf32>
    %162 = math.tanh %161 : vector<8x128xf32>
    %163 = arith.mulf %158, %162 : vector<8x128xf32>
    %164 = vector.extract_strided_slice %138 {offsets = [0, 0], sizes = [8, 128], strides = [1, 1]} : vector<8x512xf32> to vector<8x128xf32>
    %165 = arith.negf %164 : vector<8x128xf32>
    %166 = math.exp %165 : vector<8x128xf32>
    %cst_37 = arith.constant 1.000000e+00 : f32
    %167 = vector.broadcast %cst_37 : f32 to vector<8x128xf32>
    %168 = arith.addf %167, %166 : vector<8x128xf32>
    %169 = arith.divf %167, %168 : vector<8x128xf32>
    %170 = vector.extract_strided_slice %138 {offsets = [0, 128], sizes = [8, 128], strides = [1, 1]} : vector<8x512xf32> to vector<8x128xf32>
    %171 = arith.negf %170 : vector<8x128xf32>
    %172 = math.exp %171 : vector<8x128xf32>
    %cst_38 = arith.constant 1.000000e+00 : f32
    %173 = vector.broadcast %cst_38 : f32 to vector<8x128xf32>
    %174 = arith.addf %173, %172 : vector<8x128xf32>
    %175 = arith.divf %173, %174 : vector<8x128xf32>
    %176 = vector.extract_strided_slice %138 {offsets = [0, 256], sizes = [8, 128], strides = [1, 1]} : vector<8x512xf32> to vector<8x128xf32>
    %177 = math.tanh %176 : vector<8x128xf32>
    %178 = vector.extract_strided_slice %138 {offsets = [0, 384], sizes = [8, 128], strides = [1, 1]} : vector<8x512xf32> to vector<8x128xf32>
    %179 = arith.negf %178 : vector<8x128xf32>
    %180 = math.exp %179 : vector<8x128xf32>
    %cst_39 = arith.constant 1.000000e+00 : f32
    %181 = vector.broadcast %cst_39 : f32 to vector<8x128xf32>
    %182 = arith.addf %181, %180 : vector<8x128xf32>
    %183 = arith.divf %181, %182 : vector<8x128xf32>
    %184 = arith.mulf %175, %127 : vector<8x128xf32>
    %185 = arith.mulf %169, %177 : vector<8x128xf32>
    %186 = arith.addf %184, %185 : vector<8x128xf32>
    %187 = math.tanh %186 : vector<8x128xf32>
    %188 = arith.mulf %183, %187 : vector<8x128xf32>
    %189 = tpu.concatenate %163, %188 in 0 : vector<8x128xf32>, vector<8x128xf32> -> vector<16x128xf32>
    %190 = arith.truncf %189 : vector<16x128xf32> to vector<16x128xbf16>
    %cst_40 = arith.constant dense<0.000000e+00> : vector<16x1024xf32>
    %191 = tpu.matmul %190, %7, %cst_40 {dimension_numbers = #tpu.dot_dimension_numbers<[1], [0], [0], [1], [0, 0, 1, 1], [], []>} : vector<16x128xbf16>, vector<128x1024xbf16>, vector<16x1024xf32> -> vector<16x1024xf32>
    %c24 = arith.constant 24 : index
    %c0_41 = arith.constant 0 : index
    %192 = vector.load %arg8[%c24, %c0_41] : memref<64x1024xf32, #tpu.memory_space<vmem>>, vector<8x512xf32>
    %193 = vector.extract_strided_slice %191 {offsets = [0, 0], sizes = [8, 512], strides = [1, 1]} : vector<16x1024xf32> to vector<8x512xf32>
    %194 = arith.addf %192, %193 : vector<8x512xf32>
    %c32 = arith.constant 32 : index
    %c512_42 = arith.constant 512 : index
    %195 = vector.load %arg8[%c32, %c512_42] : memref<64x1024xf32, #tpu.memory_space<vmem>>, vector<8x512xf32>
    %196 = vector.extract_strided_slice %191 {offsets = [8, 512], sizes = [8, 512], strides = [1, 1]} : vector<16x1024xf32> to vector<8x512xf32>
    %197 = arith.addf %195, %196 : vector<8x512xf32>
    %198 = vector.extract_strided_slice %194 {offsets = [0, 0], sizes = [8, 128], strides = [1, 1]} : vector<8x512xf32> to vector<8x128xf32>
    %199 = arith.negf %198 : vector<8x128xf32>
    %200 = math.exp %199 : vector<8x128xf32>
    %cst_43 = arith.constant 1.000000e+00 : f32
    %201 = vector.broadcast %cst_43 : f32 to vector<8x128xf32>
    %202 = arith.addf %201, %200 : vector<8x128xf32>
    %203 = arith.divf %201, %202 : vector<8x128xf32>
    %204 = vector.extract_strided_slice %194 {offsets = [0, 128], sizes = [8, 128], strides = [1, 1]} : vector<8x512xf32> to vector<8x128xf32>
    %205 = arith.negf %204 : vector<8x128xf32>
    %206 = math.exp %205 : vector<8x128xf32>
    %cst_44 = arith.constant 1.000000e+00 : f32
    %207 = vector.broadcast %cst_44 : f32 to vector<8x128xf32>
    %208 = arith.addf %207, %206 : vector<8x128xf32>
    %209 = arith.divf %207, %208 : vector<8x128xf32>
    %210 = vector.extract_strided_slice %194 {offsets = [0, 256], sizes = [8, 128], strides = [1, 1]} : vector<8x512xf32> to vector<8x128xf32>
    %211 = math.tanh %210 : vector<8x128xf32>
    %212 = vector.extract_strided_slice %194 {offsets = [0, 384], sizes = [8, 128], strides = [1, 1]} : vector<8x512xf32> to vector<8x128xf32>
    %213 = arith.negf %212 : vector<8x128xf32>
    %214 = math.exp %213 : vector<8x128xf32>
    %cst_45 = arith.constant 1.000000e+00 : f32
    %215 = vector.broadcast %cst_45 : f32 to vector<8x128xf32>
    %216 = arith.addf %215, %214 : vector<8x128xf32>
    %217 = arith.divf %215, %216 : vector<8x128xf32>
    %218 = arith.mulf %209, %161 : vector<8x128xf32>
    %219 = arith.mulf %203, %211 : vector<8x128xf32>
    %220 = arith.addf %218, %219 : vector<8x128xf32>
    %221 = math.tanh %220 : vector<8x128xf32>
    %222 = arith.mulf %217, %221 : vector<8x128xf32>
    %223 = vector.extract_strided_slice %197 {offsets = [0, 0], sizes = [8, 128], strides = [1, 1]} : vector<8x512xf32> to vector<8x128xf32>
    %224 = arith.negf %223 : vector<8x128xf32>
    %225 = math.exp %224 : vector<8x128xf32>
    %cst_46 = arith.constant 1.000000e+00 : f32
    %226 = vector.broadcast %cst_46 : f32 to vector<8x128xf32>
    %227 = arith.addf %226, %225 : vector<8x128xf32>
    %228 = arith.divf %226, %227 : vector<8x128xf32>
    %229 = vector.extract_strided_slice %197 {offsets = [0, 128], sizes = [8, 128], strides = [1, 1]} : vector<8x512xf32> to vector<8x128xf32>
    %230 = arith.negf %229 : vector<8x128xf32>
    %231 = math.exp %230 : vector<8x128xf32>
    %cst_47 = arith.constant 1.000000e+00 : f32
    %232 = vector.broadcast %cst_47 : f32 to vector<8x128xf32>
    %233 = arith.addf %232, %231 : vector<8x128xf32>
    %234 = arith.divf %232, %233 : vector<8x128xf32>
    %235 = vector.extract_strided_slice %197 {offsets = [0, 256], sizes = [8, 128], strides = [1, 1]} : vector<8x512xf32> to vector<8x128xf32>
    %236 = math.tanh %235 : vector<8x128xf32>
    %237 = vector.extract_strided_slice %197 {offsets = [0, 384], sizes = [8, 128], strides = [1, 1]} : vector<8x512xf32> to vector<8x128xf32>
    %238 = arith.negf %237 : vector<8x128xf32>
    %239 = math.exp %238 : vector<8x128xf32>
    %cst_48 = arith.constant 1.000000e+00 : f32
    %240 = vector.broadcast %cst_48 : f32 to vector<8x128xf32>
    %241 = arith.addf %240, %239 : vector<8x128xf32>
    %242 = arith.divf %240, %241 : vector<8x128xf32>
    %243 = arith.mulf %234, %186 : vector<8x128xf32>
    %244 = arith.mulf %228, %236 : vector<8x128xf32>
    %245 = arith.addf %243, %244 : vector<8x128xf32>
    %246 = math.tanh %245 : vector<8x128xf32>
    %247 = arith.mulf %242, %246 : vector<8x128xf32>
    %248 = tpu.concatenate %222, %247 in 0 : vector<8x128xf32>, vector<8x128xf32> -> vector<16x128xf32>
    %249 = arith.truncf %248 : vector<16x128xf32> to vector<16x128xbf16>
    %cst_49 = arith.constant dense<0.000000e+00> : vector<16x1024xf32>
    %250 = tpu.matmul %249, %7, %cst_49 {dimension_numbers = #tpu.dot_dimension_numbers<[1], [0], [0], [1], [0, 0, 1, 1], [], []>} : vector<16x128xbf16>, vector<128x1024xbf16>, vector<16x1024xf32> -> vector<16x1024xf32>
    %c32_50 = arith.constant 32 : index
    %c0_51 = arith.constant 0 : index
    %251 = vector.load %arg8[%c32_50, %c0_51] : memref<64x1024xf32, #tpu.memory_space<vmem>>, vector<8x512xf32>
    %252 = vector.extract_strided_slice %250 {offsets = [0, 0], sizes = [8, 512], strides = [1, 1]} : vector<16x1024xf32> to vector<8x512xf32>
    %253 = arith.addf %251, %252 : vector<8x512xf32>
    %c24_52 = arith.constant 24 : index
    %c512_53 = arith.constant 512 : index
    %254 = vector.load %arg8[%c24_52, %c512_53] : memref<64x1024xf32, #tpu.memory_space<vmem>>, vector<8x512xf32>
    %255 = vector.extract_strided_slice %250 {offsets = [8, 512], sizes = [8, 512], strides = [1, 1]} : vector<16x1024xf32> to vector<8x512xf32>
    %256 = arith.addf %254, %255 : vector<8x512xf32>
    %257 = vector.extract_strided_slice %253 {offsets = [0, 0], sizes = [8, 128], strides = [1, 1]} : vector<8x512xf32> to vector<8x128xf32>
    %258 = arith.negf %257 : vector<8x128xf32>
    %259 = math.exp %258 : vector<8x128xf32>
    %cst_54 = arith.constant 1.000000e+00 : f32
    %260 = vector.broadcast %cst_54 : f32 to vector<8x128xf32>
    %261 = arith.addf %260, %259 : vector<8x128xf32>
    %262 = arith.divf %260, %261 : vector<8x128xf32>
    %263 = vector.extract_strided_slice %253 {offsets = [0, 128], sizes = [8, 128], strides = [1, 1]} : vector<8x512xf32> to vector<8x128xf32>
    %264 = arith.negf %263 : vector<8x128xf32>
    %265 = math.exp %264 : vector<8x128xf32>
    %cst_55 = arith.constant 1.000000e+00 : f32
    %266 = vector.broadcast %cst_55 : f32 to vector<8x128xf32>
    %267 = arith.addf %266, %265 : vector<8x128xf32>
    %268 = arith.divf %266, %267 : vector<8x128xf32>
    %269 = vector.extract_strided_slice %253 {offsets = [0, 256], sizes = [8, 128], strides = [1, 1]} : vector<8x512xf32> to vector<8x128xf32>
    %270 = math.tanh %269 : vector<8x128xf32>
    %271 = vector.extract_strided_slice %253 {offsets = [0, 384], sizes = [8, 128], strides = [1, 1]} : vector<8x512xf32> to vector<8x128xf32>
    %272 = arith.negf %271 : vector<8x128xf32>
    %273 = math.exp %272 : vector<8x128xf32>
    %cst_56 = arith.constant 1.000000e+00 : f32
    %274 = vector.broadcast %cst_56 : f32 to vector<8x128xf32>
    %275 = arith.addf %274, %273 : vector<8x128xf32>
    %276 = arith.divf %274, %275 : vector<8x128xf32>
    %277 = arith.mulf %268, %220 : vector<8x128xf32>
    %278 = arith.mulf %262, %270 : vector<8x128xf32>
    %279 = arith.addf %277, %278 : vector<8x128xf32>
    %280 = math.tanh %279 : vector<8x128xf32>
    %281 = arith.mulf %276, %280 : vector<8x128xf32>
    %282 = vector.extract_strided_slice %256 {offsets = [0, 0], sizes = [8, 128], strides = [1, 1]} : vector<8x512xf32> to vector<8x128xf32>
    %283 = arith.negf %282 : vector<8x128xf32>
    %284 = math.exp %283 : vector<8x128xf32>
    %cst_57 = arith.constant 1.000000e+00 : f32
    %285 = vector.broadcast %cst_57 : f32 to vector<8x128xf32>
    %286 = arith.addf %285, %284 : vector<8x128xf32>
    %287 = arith.divf %285, %286 : vector<8x128xf32>
    %288 = vector.extract_strided_slice %256 {offsets = [0, 128], sizes = [8, 128], strides = [1, 1]} : vector<8x512xf32> to vector<8x128xf32>
    %289 = arith.negf %288 : vector<8x128xf32>
    %290 = math.exp %289 : vector<8x128xf32>
    %cst_58 = arith.constant 1.000000e+00 : f32
    %291 = vector.broadcast %cst_58 : f32 to vector<8x128xf32>
    %292 = arith.addf %291, %290 : vector<8x128xf32>
    %293 = arith.divf %291, %292 : vector<8x128xf32>
    %294 = vector.extract_strided_slice %256 {offsets = [0, 256], sizes = [8, 128], strides = [1, 1]} : vector<8x512xf32> to vector<8x128xf32>
    %295 = math.tanh %294 : vector<8x128xf32>
    %296 = vector.extract_strided_slice %256 {offsets = [0, 384], sizes = [8, 128], strides = [1, 1]} : vector<8x512xf32> to vector<8x128xf32>
    %297 = arith.negf %296 : vector<8x128xf32>
    %298 = math.exp %297 : vector<8x128xf32>
    %cst_59 = arith.constant 1.000000e+00 : f32
    %299 = vector.broadcast %cst_59 : f32 to vector<8x128xf32>
    %300 = arith.addf %299, %298 : vector<8x128xf32>
    %301 = arith.divf %299, %300 : vector<8x128xf32>
    %302 = arith.mulf %293, %245 : vector<8x128xf32>
    %303 = arith.mulf %287, %295 : vector<8x128xf32>
    %304 = arith.addf %302, %303 : vector<8x128xf32>
    %305 = math.tanh %304 : vector<8x128xf32>
    %306 = arith.mulf %301, %305 : vector<8x128xf32>
    %307 = tpu.concatenate %281, %306 in 0 : vector<8x128xf32>, vector<8x128xf32> -> vector<16x128xf32>
    %308 = arith.truncf %307 : vector<16x128xf32> to vector<16x128xbf16>
    %cst_60 = arith.constant dense<0.000000e+00> : vector<16x1024xf32>
    %309 = tpu.matmul %308, %7, %cst_60 {dimension_numbers = #tpu.dot_dimension_numbers<[1], [0], [0], [1], [0, 0, 1, 1], [], []>} : vector<16x128xbf16>, vector<128x1024xbf16>, vector<16x1024xf32> -> vector<16x1024xf32>
    %c40_61 = arith.constant 40 : index
    %c0_62 = arith.constant 0 : index
    %310 = vector.load %arg8[%c40_61, %c0_62] : memref<64x1024xf32, #tpu.memory_space<vmem>>, vector<8x512xf32>
    %311 = vector.extract_strided_slice %309 {offsets = [0, 0], sizes = [8, 512], strides = [1, 1]} : vector<16x1024xf32> to vector<8x512xf32>
    %312 = arith.addf %310, %311 : vector<8x512xf32>
    %c16_63 = arith.constant 16 : index
    %c512_64 = arith.constant 512 : index
    %313 = vector.load %arg8[%c16_63, %c512_64] : memref<64x1024xf32, #tpu.memory_space<vmem>>, vector<8x512xf32>
    %314 = vector.extract_strided_slice %309 {offsets = [8, 512], sizes = [8, 512], strides = [1, 1]} : vector<16x1024xf32> to vector<8x512xf32>
    %315 = arith.addf %313, %314 : vector<8x512xf32>
    %316 = vector.extract_strided_slice %312 {offsets = [0, 0], sizes = [8, 128], strides = [1, 1]} : vector<8x512xf32> to vector<8x128xf32>
    %317 = arith.negf %316 : vector<8x128xf32>
    %318 = math.exp %317 : vector<8x128xf32>
    %cst_65 = arith.constant 1.000000e+00 : f32
    %319 = vector.broadcast %cst_65 : f32 to vector<8x128xf32>
    %320 = arith.addf %319, %318 : vector<8x128xf32>
    %321 = arith.divf %319, %320 : vector<8x128xf32>
    %322 = vector.extract_strided_slice %312 {offsets = [0, 128], sizes = [8, 128], strides = [1, 1]} : vector<8x512xf32> to vector<8x128xf32>
    %323 = arith.negf %322 : vector<8x128xf32>
    %324 = math.exp %323 : vector<8x128xf32>
    %cst_66 = arith.constant 1.000000e+00 : f32
    %325 = vector.broadcast %cst_66 : f32 to vector<8x128xf32>
    %326 = arith.addf %325, %324 : vector<8x128xf32>
    %327 = arith.divf %325, %326 : vector<8x128xf32>
    %328 = vector.extract_strided_slice %312 {offsets = [0, 256], sizes = [8, 128], strides = [1, 1]} : vector<8x512xf32> to vector<8x128xf32>
    %329 = math.tanh %328 : vector<8x128xf32>
    %330 = vector.extract_strided_slice %312 {offsets = [0, 384], sizes = [8, 128], strides = [1, 1]} : vector<8x512xf32> to vector<8x128xf32>
    %331 = arith.negf %330 : vector<8x128xf32>
    %332 = math.exp %331 : vector<8x128xf32>
    %cst_67 = arith.constant 1.000000e+00 : f32
    %333 = vector.broadcast %cst_67 : f32 to vector<8x128xf32>
    %334 = arith.addf %333, %332 : vector<8x128xf32>
    %335 = arith.divf %333, %334 : vector<8x128xf32>
    %336 = arith.mulf %327, %279 : vector<8x128xf32>
    %337 = arith.mulf %321, %329 : vector<8x128xf32>
    %338 = arith.addf %336, %337 : vector<8x128xf32>
    %339 = math.tanh %338 : vector<8x128xf32>
    %340 = arith.mulf %335, %339 : vector<8x128xf32>
    %341 = vector.extract_strided_slice %315 {offsets = [0, 0], sizes = [8, 128], strides = [1, 1]} : vector<8x512xf32> to vector<8x128xf32>
    %342 = arith.negf %341 : vector<8x128xf32>
    %343 = math.exp %342 : vector<8x128xf32>
    %cst_68 = arith.constant 1.000000e+00 : f32
    %344 = vector.broadcast %cst_68 : f32 to vector<8x128xf32>
    %345 = arith.addf %344, %343 : vector<8x128xf32>
    %346 = arith.divf %344, %345 : vector<8x128xf32>
    %347 = vector.extract_strided_slice %315 {offsets = [0, 128], sizes = [8, 128], strides = [1, 1]} : vector<8x512xf32> to vector<8x128xf32>
    %348 = arith.negf %347 : vector<8x128xf32>
    %349 = math.exp %348 : vector<8x128xf32>
    %cst_69 = arith.constant 1.000000e+00 : f32
    %350 = vector.broadcast %cst_69 : f32 to vector<8x128xf32>
    %351 = arith.addf %350, %349 : vector<8x128xf32>
    %352 = arith.divf %350, %351 : vector<8x128xf32>
    %353 = vector.extract_strided_slice %315 {offsets = [0, 256], sizes = [8, 128], strides = [1, 1]} : vector<8x512xf32> to vector<8x128xf32>
    %354 = math.tanh %353 : vector<8x128xf32>
    %355 = vector.extract_strided_slice %315 {offsets = [0, 384], sizes = [8, 128], strides = [1, 1]} : vector<8x512xf32> to vector<8x128xf32>
    %356 = arith.negf %355 : vector<8x128xf32>
    %357 = math.exp %356 : vector<8x128xf32>
    %cst_70 = arith.constant 1.000000e+00 : f32
    %358 = vector.broadcast %cst_70 : f32 to vector<8x128xf32>
    %359 = arith.addf %358, %357 : vector<8x128xf32>
    %360 = arith.divf %358, %359 : vector<8x128xf32>
    %361 = arith.mulf %352, %304 : vector<8x128xf32>
    %362 = arith.mulf %346, %354 : vector<8x128xf32>
    %363 = arith.addf %361, %362 : vector<8x128xf32>
    %364 = math.tanh %363 : vector<8x128xf32>
    %365 = arith.mulf %360, %364 : vector<8x128xf32>
    %366 = tpu.concatenate %340, %365 in 0 : vector<8x128xf32>, vector<8x128xf32> -> vector<16x128xf32>
    %367 = arith.truncf %366 : vector<16x128xf32> to vector<16x128xbf16>
    %cst_71 = arith.constant dense<0.000000e+00> : vector<16x1024xf32>
    %368 = tpu.matmul %367, %7, %cst_71 {dimension_numbers = #tpu.dot_dimension_numbers<[1], [0], [0], [1], [0, 0, 1, 1], [], []>} : vector<16x128xbf16>, vector<128x1024xbf16>, vector<16x1024xf32> -> vector<16x1024xf32>
    %c48_72 = arith.constant 48 : index
    %c0_73 = arith.constant 0 : index
    %369 = vector.load %arg8[%c48_72, %c0_73] : memref<64x1024xf32, #tpu.memory_space<vmem>>, vector<8x512xf32>
    %370 = vector.extract_strided_slice %368 {offsets = [0, 0], sizes = [8, 512], strides = [1, 1]} : vector<16x1024xf32> to vector<8x512xf32>
    %371 = arith.addf %369, %370 : vector<8x512xf32>
    %c8_74 = arith.constant 8 : index
    %c512_75 = arith.constant 512 : index
    %372 = vector.load %arg8[%c8_74, %c512_75] : memref<64x1024xf32, #tpu.memory_space<vmem>>, vector<8x512xf32>
    %373 = vector.extract_strided_slice %368 {offsets = [8, 512], sizes = [8, 512], strides = [1, 1]} : vector<16x1024xf32> to vector<8x512xf32>
    %374 = arith.addf %372, %373 : vector<8x512xf32>
    %375 = vector.extract_strided_slice %371 {offsets = [0, 0], sizes = [8, 128], strides = [1, 1]} : vector<8x512xf32> to vector<8x128xf32>
    %376 = arith.negf %375 : vector<8x128xf32>
    %377 = math.exp %376 : vector<8x128xf32>
    %cst_76 = arith.constant 1.000000e+00 : f32
    %378 = vector.broadcast %cst_76 : f32 to vector<8x128xf32>
    %379 = arith.addf %378, %377 : vector<8x128xf32>
    %380 = arith.divf %378, %379 : vector<8x128xf32>
    %381 = vector.extract_strided_slice %371 {offsets = [0, 128], sizes = [8, 128], strides = [1, 1]} : vector<8x512xf32> to vector<8x128xf32>
    %382 = arith.negf %381 : vector<8x128xf32>
    %383 = math.exp %382 : vector<8x128xf32>
    %cst_77 = arith.constant 1.000000e+00 : f32
    %384 = vector.broadcast %cst_77 : f32 to vector<8x128xf32>
    %385 = arith.addf %384, %383 : vector<8x128xf32>
    %386 = arith.divf %384, %385 : vector<8x128xf32>
    %387 = vector.extract_strided_slice %371 {offsets = [0, 256], sizes = [8, 128], strides = [1, 1]} : vector<8x512xf32> to vector<8x128xf32>
    %388 = math.tanh %387 : vector<8x128xf32>
    %389 = vector.extract_strided_slice %371 {offsets = [0, 384], sizes = [8, 128], strides = [1, 1]} : vector<8x512xf32> to vector<8x128xf32>
    %390 = arith.negf %389 : vector<8x128xf32>
    %391 = math.exp %390 : vector<8x128xf32>
    %cst_78 = arith.constant 1.000000e+00 : f32
    %392 = vector.broadcast %cst_78 : f32 to vector<8x128xf32>
    %393 = arith.addf %392, %391 : vector<8x128xf32>
    %394 = arith.divf %392, %393 : vector<8x128xf32>
    %395 = arith.mulf %386, %338 : vector<8x128xf32>
    %396 = arith.mulf %380, %388 : vector<8x128xf32>
    %397 = arith.addf %395, %396 : vector<8x128xf32>
    %398 = math.tanh %397 : vector<8x128xf32>
    %399 = arith.mulf %394, %398 : vector<8x128xf32>
    %400 = vector.extract_strided_slice %374 {offsets = [0, 0], sizes = [8, 128], strides = [1, 1]} : vector<8x512xf32> to vector<8x128xf32>
    %401 = arith.negf %400 : vector<8x128xf32>
    %402 = math.exp %401 : vector<8x128xf32>
    %cst_79 = arith.constant 1.000000e+00 : f32
    %403 = vector.broadcast %cst_79 : f32 to vector<8x128xf32>
    %404 = arith.addf %403, %402 : vector<8x128xf32>
    %405 = arith.divf %403, %404 : vector<8x128xf32>
    %406 = vector.extract_strided_slice %374 {offsets = [0, 128], sizes = [8, 128], strides = [1, 1]} : vector<8x512xf32> to vector<8x128xf32>
    %407 = arith.negf %406 : vector<8x128xf32>
    %408 = math.exp %407 : vector<8x128xf32>
    %cst_80 = arith.constant 1.000000e+00 : f32
    %409 = vector.broadcast %cst_80 : f32 to vector<8x128xf32>
    %410 = arith.addf %409, %408 : vector<8x128xf32>
    %411 = arith.divf %409, %410 : vector<8x128xf32>
    %412 = vector.extract_strided_slice %374 {offsets = [0, 256], sizes = [8, 128], strides = [1, 1]} : vector<8x512xf32> to vector<8x128xf32>
    %413 = math.tanh %412 : vector<8x128xf32>
    %414 = vector.extract_strided_slice %374 {offsets = [0, 384], sizes = [8, 128], strides = [1, 1]} : vector<8x512xf32> to vector<8x128xf32>
    %415 = arith.negf %414 : vector<8x128xf32>
    %416 = math.exp %415 : vector<8x128xf32>
    %cst_81 = arith.constant 1.000000e+00 : f32
    %417 = vector.broadcast %cst_81 : f32 to vector<8x128xf32>
    %418 = arith.addf %417, %416 : vector<8x128xf32>
    %419 = arith.divf %417, %418 : vector<8x128xf32>
    %420 = arith.mulf %411, %363 : vector<8x128xf32>
    %421 = arith.mulf %405, %413 : vector<8x128xf32>
    %422 = arith.addf %420, %421 : vector<8x128xf32>
    %423 = math.tanh %422 : vector<8x128xf32>
    %424 = arith.mulf %419, %423 : vector<8x128xf32>
    %425 = tpu.concatenate %399, %424 in 0 : vector<8x128xf32>, vector<8x128xf32> -> vector<16x128xf32>
    %426 = arith.truncf %425 : vector<16x128xf32> to vector<16x128xbf16>
    %cst_82 = arith.constant dense<0.000000e+00> : vector<16x1024xf32>
    %427 = tpu.matmul %426, %7, %cst_82 {dimension_numbers = #tpu.dot_dimension_numbers<[1], [0], [0], [1], [0, 0, 1, 1], [], []>} : vector<16x128xbf16>, vector<128x1024xbf16>, vector<16x1024xf32> -> vector<16x1024xf32>
    %c56_83 = arith.constant 56 : index
    %c0_84 = arith.constant 0 : index
    %428 = vector.load %arg8[%c56_83, %c0_84] : memref<64x1024xf32, #tpu.memory_space<vmem>>, vector<8x512xf32>
    %429 = vector.extract_strided_slice %427 {offsets = [0, 0], sizes = [8, 512], strides = [1, 1]} : vector<16x1024xf32> to vector<8x512xf32>
    %430 = arith.addf %428, %429 : vector<8x512xf32>
    %c0_85 = arith.constant 0 : index
    %c512_86 = arith.constant 512 : index
    %431 = vector.load %arg8[%c0_85, %c512_86] : memref<64x1024xf32, #tpu.memory_space<vmem>>, vector<8x512xf32>
    %432 = vector.extract_strided_slice %427 {offsets = [8, 512], sizes = [8, 512], strides = [1, 1]} : vector<16x1024xf32> to vector<8x512xf32>
    %433 = arith.addf %431, %432 : vector<8x512xf32>
    %434 = vector.extract_strided_slice %430 {offsets = [0, 0], sizes = [8, 128], strides = [1, 1]} : vector<8x512xf32> to vector<8x128xf32>
    %435 = arith.negf %434 : vector<8x128xf32>
    %436 = math.exp %435 : vector<8x128xf32>
    %cst_87 = arith.constant 1.000000e+00 : f32
    %437 = vector.broadcast %cst_87 : f32 to vector<8x128xf32>
    %438 = arith.addf %437, %436 : vector<8x128xf32>
    %439 = arith.divf %437, %438 : vector<8x128xf32>
    %440 = vector.extract_strided_slice %430 {offsets = [0, 128], sizes = [8, 128], strides = [1, 1]} : vector<8x512xf32> to vector<8x128xf32>
    %441 = arith.negf %440 : vector<8x128xf32>
    %442 = math.exp %441 : vector<8x128xf32>
    %cst_88 = arith.constant 1.000000e+00 : f32
    %443 = vector.broadcast %cst_88 : f32 to vector<8x128xf32>
    %444 = arith.addf %443, %442 : vector<8x128xf32>
    %445 = arith.divf %443, %444 : vector<8x128xf32>
    %446 = vector.extract_strided_slice %430 {offsets = [0, 256], sizes = [8, 128], strides = [1, 1]} : vector<8x512xf32> to vector<8x128xf32>
    %447 = math.tanh %446 : vector<8x128xf32>
    %448 = vector.extract_strided_slice %430 {offsets = [0, 384], sizes = [8, 128], strides = [1, 1]} : vector<8x512xf32> to vector<8x128xf32>
    %449 = arith.negf %448 : vector<8x128xf32>
    %450 = math.exp %449 : vector<8x128xf32>
    %cst_89 = arith.constant 1.000000e+00 : f32
    %451 = vector.broadcast %cst_89 : f32 to vector<8x128xf32>
    %452 = arith.addf %451, %450 : vector<8x128xf32>
    %453 = arith.divf %451, %452 : vector<8x128xf32>
    %454 = arith.mulf %445, %397 : vector<8x128xf32>
    %455 = arith.mulf %439, %447 : vector<8x128xf32>
    %456 = arith.addf %454, %455 : vector<8x128xf32>
    %457 = math.tanh %456 : vector<8x128xf32>
    %458 = arith.mulf %453, %457 : vector<8x128xf32>
    %459 = vector.extract_strided_slice %433 {offsets = [0, 0], sizes = [8, 128], strides = [1, 1]} : vector<8x512xf32> to vector<8x128xf32>
    %460 = arith.negf %459 : vector<8x128xf32>
    %461 = math.exp %460 : vector<8x128xf32>
    %cst_90 = arith.constant 1.000000e+00 : f32
    %462 = vector.broadcast %cst_90 : f32 to vector<8x128xf32>
    %463 = arith.addf %462, %461 : vector<8x128xf32>
    %464 = arith.divf %462, %463 : vector<8x128xf32>
    %465 = vector.extract_strided_slice %433 {offsets = [0, 128], sizes = [8, 128], strides = [1, 1]} : vector<8x512xf32> to vector<8x128xf32>
    %466 = arith.negf %465 : vector<8x128xf32>
    %467 = math.exp %466 : vector<8x128xf32>
    %cst_91 = arith.constant 1.000000e+00 : f32
    %468 = vector.broadcast %cst_91 : f32 to vector<8x128xf32>
    %469 = arith.addf %468, %467 : vector<8x128xf32>
    %470 = arith.divf %468, %469 : vector<8x128xf32>
    %471 = vector.extract_strided_slice %433 {offsets = [0, 256], sizes = [8, 128], strides = [1, 1]} : vector<8x512xf32> to vector<8x128xf32>
    %472 = math.tanh %471 : vector<8x128xf32>
    %473 = vector.extract_strided_slice %433 {offsets = [0, 384], sizes = [8, 128], strides = [1, 1]} : vector<8x512xf32> to vector<8x128xf32>
    %474 = arith.negf %473 : vector<8x128xf32>
    %475 = math.exp %474 : vector<8x128xf32>
    %cst_92 = arith.constant 1.000000e+00 : f32
    %476 = vector.broadcast %cst_92 : f32 to vector<8x128xf32>
    %477 = arith.addf %476, %475 : vector<8x128xf32>
    %478 = arith.divf %476, %477 : vector<8x128xf32>
    %479 = arith.mulf %470, %422 : vector<8x128xf32>
    %480 = arith.mulf %464, %472 : vector<8x128xf32>
    %481 = arith.addf %479, %480 : vector<8x128xf32>
    %482 = math.tanh %481 : vector<8x128xf32>
    %483 = arith.mulf %478, %482 : vector<8x128xf32>
    %484 = tpu.concatenate %458, %483 in 1 : vector<8x128xf32>, vector<8x128xf32> -> vector<8x256xf32>
    %485 = arith.truncf %484 : vector<8x256xf32> to vector<8x256xbf16>
    %c0_93 = arith.constant 0 : index
    %c0_94 = arith.constant 0 : index
    %486 = vector.load %arg5[%c0_93, %c0_94] : memref<256x128xbf16, #tpu.memory_space<vmem>>, vector<256x128xbf16>
    %cst_95 = arith.constant dense<0.000000e+00> : vector<8x128xf32>
    %487 = tpu.matmul %485, %486, %cst_95 {dimension_numbers = #tpu.dot_dimension_numbers<[1], [0], [0], [1], [0, 0, 1, 1], [], []>} : vector<8x256xbf16>, vector<256x128xbf16>, vector<8x128xf32> -> vector<8x128xf32>
    %c0_96 = arith.constant 0 : index
    %c0_97 = arith.constant 0 : index
    %488 = vector.load %arg6[%c0_96, %c0_97] : memref<1x128xf32, #tpu.memory_space<vmem>>, vector<1x128xf32>
    %489 = vector.broadcast %488 : vector<1x128xf32> to vector<8x128xf32>
    %490 = arith.addf %487, %489 : vector<8x128xf32>
    %c0_98 = arith.constant 0 : index
    %c0_99 = arith.constant 0 : index
    %491 = vector.load %arg7[%c0_98, %c0_99] : memref<8x128xf32, #tpu.memory_space<vmem>>, vector<8x128xf32>
    tpu.vector_store %arg7[%c0_98, %c0_99], %490 {strides = array<i32>} : memref<8x128xf32, #tpu.memory_space<vmem>>, vector<8x128xf32>,
    return
  }
  func.func @transform_0(%arg0: i32) -> (i32, i32) {
    %c0_i32 = arith.constant 0 : i32
    %c0_i32_0 = arith.constant 0 : i32
    %c0_i32_1 = arith.constant 0 : i32
    return %c0_i32, %c0_i32_0 : i32, i32
  }
  func.func @transform_1(%arg0: i32) -> (i32, i32) {
    %c0_i32 = arith.constant 0 : i32
    %c0_i32_0 = arith.constant 0 : i32
    %c0_i32_1 = arith.constant 0 : i32
    return %c0_i32, %c0_i32_0 : i32, i32
  }
  func.func @transform_2(%arg0: i32) -> (i32, i32) {
    %c0_i32 = arith.constant 0 : i32
    %c0_i32_0 = arith.constant 0 : i32
    %c0_i32_1 = arith.constant 0 : i32
    return %c0_i32, %c0_i32_0 : i32, i32
  }
  func.func @transform_3(%arg0: i32) -> (i32, i32) {
    %c0_i32 = arith.constant 0 : i32
    %c0_i32_0 = arith.constant 0 : i32
    %c0_i32_1 = arith.constant 0 : i32
    return %c0_i32, %c0_i32_0 : i32, i32
  }
  func.func @transform_4(%arg0: i32) -> (i32, i32) {
    %c0_i32 = arith.constant 0 : i32
    %c0_i32_0 = arith.constant 0 : i32
    %c0_i32_1 = arith.constant 0 : i32
    return %c0_i32, %c0_i32_0 : i32, i32
  }
  func.func @transform_5(%arg0: i32) -> (i32, i32) {
    %c0_i32 = arith.constant 0 : i32
    %c0_i32_0 = arith.constant 0 : i32
    %c0_i32_1 = arith.constant 0 : i32
    return %c0_i32, %c0_i32_0 : i32, i32
  }
  func.func @transform_6(%arg0: i32) -> (i32, i32) {
    %c0_i32 = arith.constant 0 : i32
    %c0_i32_0 = arith.constant 0 : i32
    %c0_i32_1 = arith.constant 0 : i32
    return %c0_i32, %c0_i32_0 : i32, i32
  }
}

</mosaic_0001>

<bundles_post_ra>
// kernel: news_classifier_forward.1
= control target key start
LH: loop header
LB: loop body
LE: loop exit
PB: predicated region body
PF: predicated region fallthrough
CT: control target
= control target key end

     0   :  { %v5328_v8 = vmov 0   ;;  %s5321_s0 = inlined_call_operand.vmem [shape: bf16[64,128], index: 0, kind: input, shape index: {}]   ;;  %s5322_s1 = inlined_call_operand.vmem [shape: bf16[128,1024], index: 1, kind: input, shape index: {}]   ;;  %s5323_s2 = inlined_call_operand.vmem [shape: bf16[128,1024], index: 2, kind: input, shape index: {}]   ;;  %s5324_s3 = inlined_call_operand.vmem [shape: f32[1,1024], index: 3, kind: input, shape index: {}]   ;;  %s5325_s4 = inlined_call_operand.vmem [shape: bf16[256,128], index: 4, kind: input, shape index: {}]   ;;  %s5326_s5 = inlined_call_operand.vmem [shape: f32[1,128], index: 5, kind: input, shape index: {}]   ;;  %s5327_s6 = inlined_call_operand.hbm [shape: f32[8,128], index: 6, kind: output, shape index: {}]  }
   0x1   :  { %v33_v0 = vld [vmem:[%s5322_s1] sm:$0xff]  ;;  %v34_v2 = vld [vmem:[%s5322_s1 + $0x8] sm:$0xff]  ;;  %515 = vmatprep.mubr.bf16.mxu0 %v5328_v8  ;;  %588 = vmatprep.mubr.bf16.mxu1 %v5328_v8  ;;  %v35_v63 = vld [vmem:[%s5322_s1 + $0x10] sm:$0xff] }
   0x2   :  { %v37_v1 = vld [vmem:[%s5322_s1 + $0x20] sm:$0xff]  ;;  %v38_v4 = vld [vmem:[%s5322_s1 + $0x28] sm:$0xff] }
   0x3   :  { %v3252_v3 = vcombine.high %v33_v0, %v37_v1  ;;  %v3251_v5 = vcombine.low %v33_v0, %v37_v1  ;;  %v41_v6 = vld [vmem:[%s5322_s1 + $0x40] sm:$0xff]  ;;  %v3254_v9 = vcombine.high %v34_v2, %v38_v4  ;;  %v3253_v10 = vcombine.low %v34_v2, %v38_v4  ;;  %v42_v12 = vld [vmem:[%s5322_s1 + $0x48] sm:$0xff]  ;;  %v39_v0 = vld [vmem:[%s5322_s1 + $0x30] sm:$0xff] }
   0x4   :  { %v45_v7 = vld [vmem:[%s5322_s1 + $0x60] sm:$0xff]  ;;  %v46_v13 = vld [vmem:[%s5322_s1 + $0x68] sm:$0xff]  ;;  %v36_v1 = vld [vmem:[%s5322_s1 + $0x18] sm:$0xff] }
   0x5   :  { %v3260_v11 = vcombine.high %v41_v6, %v45_v7  ;;  %v49_v14 = vld [vmem:[%s5322_s1 + $0x80] sm:$0xff]  ;;  %483 = vmatprep.subr.bf16.mxu0 %v3252_v3  ;;  %v3262_v15 = vcombine.high %v42_v12, %v46_v13  ;;  %v50_v17 = vld [vmem:[%s5322_s1 + $0x88] sm:$0xff]  ;;  %556 = vmatprep.subr.bf16.mxu1 %v3254_v9  ;;  %v3259_v19 = vcombine.low %v41_v6, %v45_v7  ;;  %v40_v2 = vld [vmem:[%s5322_s1 + $0x38] sm:$0xff] }
   0x6   :  { %v53_v16 = vld [vmem:[%s5322_s1 + $0xa0] sm:$0xff]  ;;  %v54_v18 = vld [vmem:[%s5322_s1 + $0xa8] sm:$0xff]  ;;  %484 = vmatpush1.bf16.msra.mxu0 %v3251_v5  ;;  %557 = vmatpush1.bf16.msra.mxu1 %v3253_v10  ;;  %v3261_v20 = vcombine.low %v42_v12, %v46_v13  ;;  %v3256_v5 = vcombine.high %v35_v63, %v39_v0  ;;  %v3258_v6 = vcombine.high %v36_v1, %v40_v2  ;;  %v43_v7 = vld [vmem:[%s5322_s1 + $0x50] sm:$0xff] }
   0x7   :  { %485 = vmatprep.subr.bf16.mxu0 %v3260_v11  ;;  %v3268_v21 = vcombine.high %v49_v14, %v53_v16  ;;  %558 = vmatprep.subr.bf16.mxu1 %v3262_v15  ;;  %v3270_v22 = vcombine.high %v50_v17, %v54_v18  ;;  %v57_v23 = vld [vmem:[%s5322_s1 + $0xc0] sm:$0xff]  ;;  %v58_v25 = vld [vmem:[%s5322_s1 + $0xc8] sm:$0xff]  ;;  %v3267_v27 = vcombine.low %v49_v14, %v53_v16  ;;  %v47_v9 = vld [vmem:[%s5322_s1 + $0x70] sm:$0xff] }
   0x8   :  { %v61_v24 = vld [vmem:[%s5322_s1 + $0xe0] sm:$0xff]  ;;  %v62_v26 = vld [vmem:[%s5322_s1 + $0xe8] sm:$0xff]  ;;  %v3269_v28 = vcombine.low %v50_v17, %v54_v18  ;;  %v44_v11 = vld [vmem:[%s5322_s1 + $0x58] sm:$0xff]  ;;  %v3255_v13 = vcombine.low %v35_v63, %v39_v0  ;;  %v3257_v14 = vcombine.low %v36_v1, %v40_v2  ;;  %v3264_v15 = vcombine.high %v43_v7, %v47_v9 }
   0x9   :  { %v3276_v29 = vcombine.high %v57_v23, %v61_v24  ;;  %v3278_v30 = vcombine.high %v58_v25, %v62_v26  ;;  %v65_v31 = vld [vmem:[%s5322_s1 + $0x100] sm:$0xff]  ;;  %v66_v33 = vld [vmem:[%s5322_s1 + $0x108] sm:$0xff]  ;;  %v3275_v35 = vcombine.low %v57_v23, %v61_v24  ;;  %v3277_v36 = vcombine.low %v58_v25, %v62_v26  ;;  %v48_v12 = vld [vmem:[%s5322_s1 + $0x78] sm:$0xff] }
   0xa   :  { %486 = vmatpush1.bf16.msra.mxu0 %v3259_v19  ;;  %559 = vmatpush1.bf16.msra.mxu1 %v3261_v20  ;;  %v69_v32 = vld [vmem:[%s5322_s1 + $0x120] sm:$0xff]  ;;  %v70_v34 = vld [vmem:[%s5322_s1 + $0x128] sm:$0xff]  ;;  %v3266_v16 = vcombine.high %v44_v11, %v48_v12  ;;  %v51_v17 = vld [vmem:[%s5322_s1 + $0x90] sm:$0xff] }
   0xb   :  { %487 = vmatprep.subr.bf16.mxu0 %v3268_v21  ;;  %560 = vmatprep.subr.bf16.mxu1 %v3270_v22  ;;  %v3284_v37 = vcombine.high %v65_v31, %v69_v32  ;;  %v73_v38 = vld [vmem:[%s5322_s1 + $0x140] sm:$0xff]  ;;  %v3286_v39 = vcombine.high %v66_v33, %v70_v34  ;;  %v74_v41 = vld [vmem:[%s5322_s1 + $0x148] sm:$0xff]  ;;  %v3283_v43 = vcombine.low %v65_v31, %v69_v32  ;;  %v55_v18 = vld [vmem:[%s5322_s1 + $0xb0] sm:$0xff] }
   0xc   :  { %v77_v40 = vld [vmem:[%s5322_s1 + $0x160] sm:$0xff]  ;;  %v78_v42 = vld [vmem:[%s5322_s1 + $0x168] sm:$0xff]  ;;  %v3285_v44 = vcombine.low %v66_v33, %v70_v34  ;;  %v52_v19 = vld [vmem:[%s5322_s1 + $0x98] sm:$0xff]  ;;  %v3263_v21 = vcombine.low %v43_v7, %v47_v9  ;;  %v3265_v22 = vcombine.low %v44_v11, %v48_v12  ;;  %v3272_v23 = vcombine.high %v51_v17, %v55_v18 }
   0xd   :  { %v3292_v45 = vcombine.high %v73_v38, %v77_v40  ;;  %v81_v46 = vld [vmem:[%s5322_s1 + $0x180] sm:$0xff]  ;;  %v3294_v47 = vcombine.high %v74_v41, %v78_v42  ;;  %v82_v49 = vld [vmem:[%s5322_s1 + $0x188] sm:$0xff]  ;;  %v3291_v51 = vcombine.low %v73_v38, %v77_v40  ;;  %v3293_v52 = vcombine.low %v74_v41, %v78_v42  ;;  %v56_v20 = vld [vmem:[%s5322_s1 + $0xb8] sm:$0xff] }
   0xe   :  { %488 = vmatpush1.bf16.msra.mxu0 %v3267_v27  ;;  %561 = vmatpush1.bf16.msra.mxu1 %v3269_v28  ;;  %v85_v48 = vld [vmem:[%s5322_s1 + $0x1a0] sm:$0xff]  ;;  %v86_v50 = vld [vmem:[%s5322_s1 + $0x1a8] sm:$0xff]  ;;  %v3274_v24 = vcombine.high %v52_v19, %v56_v20  ;;  %v59_v25 = vld [vmem:[%s5322_s1 + $0xd0] sm:$0xff]  ;;  %v3273_v31 = vcombine.low %v52_v19, %v56_v20 }
   0xf   :  { %489 = vmatprep.subr.bf16.mxu0 %v3276_v29  ;;  %562 = vmatprep.subr.bf16.mxu1 %v3278_v30  ;;  %v3300_v53 = vcombine.high %v81_v46, %v85_v48  ;;  %v3302_v54 = vcombine.high %v82_v49, %v86_v50  ;;  %v89_v55 = vld [vmem:[%s5322_s1 + $0x1c0] sm:$0xff]  ;;  %v90_v57 = vld [vmem:[%s5322_s1 + $0x1c8] sm:$0xff]  ;;  %v3299_v59 = vcombine.low %v81_v46, %v85_v48  ;;  %v63_v26 = vld [vmem:[%s5322_s1 + $0xf0] sm:$0xff] }
  0x10   :  { %v93_v56 = vld [vmem:[%s5322_s1 + $0x1e0] sm:$0xff]  ;;  %v94_v58 = vld [vmem:[%s5322_s1 + $0x1e8] sm:$0xff]  ;;  %v3301_v60 = vcombine.low %v82_v49, %v86_v50  ;;  %v60_v28 = vld [vmem:[%s5322_s1 + $0xd8] sm:$0xff]  ;;  %v3271_v30 = vcombine.low %v51_v17, %v55_v18  ;;  %v3280_v32 = vcombine.high %v59_v25, %v63_v26  ;;  %v3279_v38 = vcombine.low %v59_v25, %v63_v26 }
  0x11   :  { %v3308_v61 = vcombine.high %v89_v55, %v93_v56  ;;  %v3310_v62 = vcombine.high %v90_v57, %v94_v58  ;;  %v3307_v3 = vcombine.low %v89_v55, %v93_v56  ;;  %v3309_v4 = vcombine.low %v90_v57, %v94_v58  ;;  %v3926_v10 = vld [vmem:[%s5321_s0] sm:$0xff]   ;;  %v3959_v27 = vld [vmem:[%s5321_s0 + $0x8] sm:$0xff]   ;;  %v64_v29 = vld [vmem:[%s5322_s1 + $0xf8] sm:$0xff] }
  0x12   :  { %490 = vmatpush1.bf16.msra.mxu0 %v3275_v35  ;;  %563 = vmatpush1.bf16.msra.mxu1 %v3277_v36  ;;  %v3282_v33 = vcombine.high %v60_v28, %v64_v29  ;;  %v67_v34 = vld [vmem:[%s5322_s1 + $0x110] sm:$0xff]  ;;  %v68_v36 = vld [vmem:[%s5322_s1 + $0x118] sm:$0xff] }
  0x13   :  { %491 = vmatprep.subr.bf16.mxu0 %v3284_v37  ;;  %564 = vmatprep.subr.bf16.mxu1 %v3286_v39  ;;  %v71_v35 = vld [vmem:[%s5322_s1 + $0x130] sm:$0xff]  ;;  %v72_v37 = vld [vmem:[%s5322_s1 + $0x138] sm:$0xff]  ;;  %v3281_v39 = vcombine.low %v60_v28, %v64_v29 }
  0x14   :  { %v3984_v40 = vld [vmem:[%s5321_s0 + $0x10] sm:$0xff]   ;;  %v3288_v41 = vcombine.high %v67_v34, %v71_v35  ;;  %v80_v46 = vld [vmem:[%s5322_s1 + $0x178] sm:$0xff]  ;;  %v3289_v50 = vcombine.low %v68_v36, %v72_v37 }
  0x15   :  { %v75_v42 = vld [vmem:[%s5322_s1 + $0x150] sm:$0xff] }
  0x16   :  { %492 = vmatpush1.bf16.msra.mxu0 %v3283_v43  ;;  %565 = vmatpush1.bf16.msra.mxu1 %v3285_v44  ;;  %v3290_v43 = vcombine.high %v68_v36, %v72_v37  ;;  %v79_v44 = vld [vmem:[%s5322_s1 + $0x170] sm:$0xff] }
  0x17   :  { %493 = vmatprep.subr.bf16.mxu0 %v3292_v45  ;;  %566 = vmatprep.subr.bf16.mxu1 %v3294_v47  ;;  %v76_v45 = vld [vmem:[%s5322_s1 + $0x158] sm:$0xff]  ;;  %v3287_v47 = vcombine.low %v67_v34, %v71_v35  ;;  %v83_v48 = vld [vmem:[%s5322_s1 + $0x190] sm:$0xff]  ;;  %v3295_v55 = vcombine.low %v75_v42, %v79_v44 }
  0x18   :  { %v87_v49 = vld [vmem:[%s5322_s1 + $0x1b0] sm:$0xff]  ;;  %v3297_v58 = vcombine.low %v76_v45, %v80_v46 }
  0x19   :  { %v91_v56 = vld [vmem:[%s5322_s1 + $0x1d0] sm:$0xff]  ;;  %v3303_v0 = vcombine.low %v83_v48, %v87_v49 }
  0x1a   :  { %494 = vmatpush1.bf16.msra.mxu0 %v3291_v51  ;;  %567 = vmatpush1.bf16.msra.mxu1 %v3293_v52  ;;  %v3296_v51 = vcombine.high %v75_v42, %v79_v44  ;;  %v84_v52 = vld [vmem:[%s5322_s1 + $0x198] sm:$0xff]  ;;  %v95_v57 = vld [vmem:[%s5322_s1 + $0x1f0] sm:$0xff] }
  0x1b   :  { %495 = vmatprep.subr.bf16.mxu0 %v3300_v53  ;;  %568 = vmatprep.subr.bf16.mxu1 %v3302_v54  ;;  %v88_v53 = vld [vmem:[%s5322_s1 + $0x1b8] sm:$0xff]  ;;  %v3298_v54 = vcombine.high %v76_v45, %v80_v46  ;;  %v3312_v2 = vcombine.high %v91_v56, %v95_v57 }
  0x1c   :  { %v3306_v63 = vcombine.high %v84_v52, %v88_v53  ;;  %v3305_v1 = vcombine.low %v84_v52, %v88_v53 }
  0x1e   :  { %496 = vmatpush1.bf16.msra.mxu0 %v3299_v59  ;;  %569 = vmatpush1.bf16.msra.mxu1 %v3301_v60  ;;  %v4023_v59 = vld [vmem:[%s5321_s0 + $0x18] sm:$0xff]   ;;  %v3304_v60 = vcombine.high %v83_v48, %v87_v49 }
  0x1f   :  { %497 = vmatprep.subr.bf16.mxu0 %v3308_v61  ;;  %570 = vmatprep.subr.bf16.mxu1 %v3310_v62  ;;  %v92_v61 = vld [vmem:[%s5322_s1 + $0x1d8] sm:$0xff] }
  0x20   :  { %v96_v62 = vld [vmem:[%s5322_s1 + $0x1f8] sm:$0xff] }
  0x22   :  { %498 = vmatpush1.bf16.msra.mxu0 %v3307_v3  ;;  %571 = vmatpush1.bf16.msra.mxu1 %v3309_v4 }
  0x23   :  { %629 = vmatprep.subr.bf16.mxu0 %v3256_v5  ;;  %702 = vmatprep.subr.bf16.mxu1 %v3258_v6 }
  0x25   :  { %516 = vmatmul.mubr.bf16.vlgmr.msra.gmra.mrb[0].mxu0 %v3926_v10  ;;  %589 = vmatmul.mubr.bf16.vlgmr.msra.gmra.mrb[0].mxu1 %v3926_v10 }
  0x26   :  { %630 = vmatpush1.bf16.msra.mxu0 %v3255_v13  ;;  %703 = vmatpush1.bf16.msra.mxu1 %v3257_v14 }
  0x27   :  { %631 = vmatprep.subr.bf16.mxu0 %v3264_v15  ;;  %704 = vmatprep.subr.bf16.mxu1 %v3266_v16 }
  0x28   :  { %525 = vmatprep.mubr.bf16.mxu0 %v5328_v8  ;;  %598 = vmatprep.mubr.bf16.mxu1 %v5328_v8 }
  0x2a   :  { %632 = vmatpush1.bf16.msra.mxu0 %v3263_v21  ;;  %705 = vmatpush1.bf16.msra.mxu1 %v3265_v22 }
  0x2b   :  { %633 = vmatprep.subr.bf16.mxu0 %v3272_v23  ;;  %706 = vmatprep.subr.bf16.mxu1 %v3274_v24 }
  0x2d   :  { %526 = vmatmul.mubr.bf16.gmra.mrb[4].mxu0 %v3959_v27  ;;  %599 = vmatmul.mubr.bf16.gmra.mrb[4].mxu1 %v3959_v27 }
  0x2e   :  { %634 = vmatpush1.bf16.msra.mxu0 %v3271_v30  ;;  %707 = vmatpush1.bf16.msra.mxu1 %v3273_v31 }
  0x2f   :  { %635 = vmatprep.subr.bf16.mxu0 %v3280_v32  ;;  %708 = vmatprep.subr.bf16.mxu1 %v3282_v33 }
  0x30   :  { %535 = vmatprep.mubr.bf16.mxu0 %v5328_v8  ;;  %608 = vmatprep.mubr.bf16.mxu1 %v5328_v8 }
  0x32   :  { %636 = vmatpush1.bf16.msra.mxu0 %v3279_v38  ;;  %709 = vmatpush1.bf16.msra.mxu1 %v3281_v39 }
  0x33   :  { %637 = vmatprep.subr.bf16.mxu0 %v3288_v41  ;;  %710 = vmatprep.subr.bf16.mxu1 %v3290_v43 }
  0x35   :  { %536 = vmatmul.mubr.bf16.gmra.mrb[8].mxu0 %v3984_v40  ;;  %609 = vmatmul.mubr.bf16.gmra.mrb[8].mxu1 %v3984_v40 }
  0x36   :  { %638 = vmatpush1.bf16.msra.mxu0 %v3287_v47  ;;  %711 = vmatpush1.bf16.msra.mxu1 %v3289_v50 }
  0x37   :  { %639 = vmatprep.subr.bf16.mxu0 %v3296_v51  ;;  %712 = vmatprep.subr.bf16.mxu1 %v3298_v54 }
  0x38   :  { %545 = vmatprep.mubr.bf16.mxu0 %v5328_v8  ;;  %618 = vmatprep.mubr.bf16.mxu1 %v5328_v8 }
  0x3a   :  { %640 = vmatpush1.bf16.msra.mxu0 %v3295_v55  ;;  %713 = vmatpush1.bf16.msra.mxu1 %v3297_v58 }
  0x3b   :  { %641 = vmatprep.subr.bf16.mxu0 %v3304_v60 }
  0x3c   :  { %11 = vsyncpa [#allocation4], 0  ;;  %714 = vmatprep.subr.bf16.mxu1 %v3306_v63  ;;  %v3314_v3 = vcombine.high %v92_v61, %v96_v62  ;;  %v839_v4 = vld [vmem:[%s5323_s2] sm:$0xff]  ;;  %v840_v6 = vld [vmem:[%s5323_s2 + $0x8] sm:$0xff]  ;;  %v3311_v9 = vcombine.low %v91_v56, %v95_v57  ;;  %v3313_v11 = vcombine.low %v92_v61, %v96_v62  ;;  %s3771_s14 = smov [#allocation3]  }
  0x3d   :  { %v843_v5 = vld [vmem:[%s5323_s2 + $0x20] sm:$0xff]  ;;  %546 = vmatmul.mubr.bf16.gmra.mrb[12].mxu0 %v4023_v59  ;;  %v844_v7 = vld [vmem:[%s5323_s2 + $0x28] sm:$0xff]  ;;  %619 = vmatmul.mubr.bf16.gmra.mrb[12].mxu1 %v4023_v59  ;;  %s3239_s15 = sshll.u32 %s3771_s14, 4  ;;  %s3240_s15 = int_to_ptr.vmem [resolvable:$true] %s3239_s15 }
  0x3e   :  { %642 = vmatpush1.bf16.msra.mxu0 %v3303_v0  ;;  %715 = vmatpush1.bf16.msra.mxu1 %v3305_v1  ;;  %v4047_v12 = vcombine.high %v839_v4, %v843_v5  ;;  %v4050_v13 = vcombine.high %v840_v6, %v844_v7  ;;  %v847_v14 = vld [vmem:[%s5323_s2 + $0x40] sm:$0xff]  ;;  %v848_v16 = vld [vmem:[%s5323_s2 + $0x48] sm:$0xff]  ;;  %v4065_v18 = vcombine.low %v839_v4, %v843_v5  ;;  %s3745_s16 = scalar_lea.vmem %s3240_s15, 128  ;;  %p3750_p1 = scmp.lt.s32.totalorder %s3240_s15, %s3240_s15 }
  0x3f   :  { %643 = vmatprep.subr.bf16.mxu0 %v3312_v2  ;;  %716 = vmatprep.subr.bf16.mxu1 %v3314_v3  ;;  %v851_v15 = vld [vmem:[%s5323_s2 + $0x60] sm:$0xff]  ;;  %v852_v17 = vld [vmem:[%s5323_s2 + $0x68] sm:$0xff]  ;;  %v4068_v19 = vcombine.low %v840_v6, %v844_v7  ;;  %v841_v6 = vld [vmem:[%s5323_s2 + $0x10] sm:$0xff]  ;;  %p3746_p0 = scmp.ne.s32.totalorder %s3240_s15, %s3745_s16  ;;  %p3751_p2 = scmp.lt.s32.totalorder %s3745_s16, %s3745_s16 }
  0x40   :  { %661 = vmatprep.mubr.bf16.mxu0 %v5328_v8  ;;  %734 = vmatprep.mubr.bf16.mxu1 %v5328_v8  ;;  %v4070_v20 = vcombine.high %v847_v14, %v851_v15  ;;  %v4073_v21 = vcombine.high %v848_v16, %v852_v17  ;;  %v855_v22 = vld [vmem:[%s5323_s2 + $0x80] sm:$0xff]  ;;  %v856_v24 = vld [vmem:[%s5323_s2 + $0x88] sm:$0xff]  ;;  %v4090_v26 = vcombine.low %v847_v14, %v851_v15  ;;  %v845_v7 = vld [vmem:[%s5323_s2 + $0x30] sm:$0xff] }
  0x41   :  { %v859_v23 = vld [vmem:[%s5323_s2 + $0xa0] sm:$0xff]  ;;  %v860_v25 = vld [vmem:[%s5323_s2 + $0xa8] sm:$0xff]  ;;  %v4094_v28 = vcombine.low %v848_v16, %v852_v17  ;;  %v4252_v16 = vcombine.high %v841_v6, %v845_v7  ;;  %p3752_p3 = por %p3751_p2, %p3750_p1 }
  0x42   :  { %644 = vmatpush1.bf16.msra.mxu0 %v3311_v9  ;;  %717 = vmatpush1.bf16.msra.mxu1 %v3313_v11  ;;  %v4096_v29 = vcombine.high %v855_v22, %v859_v23  ;;  %v4100_v30 = vcombine.high %v856_v24, %v860_v25  ;;  %v867_v31 = vld [vmem:[%s5323_s2 + $0xe0] sm:$0xff]  ;;  %v864_v32 = vld [vmem:[%s5323_s2 + $0xc8] sm:$0xff]  ;;  %v4116_v34 = vcombine.low %v855_v22, %v859_v23  ;;  %v842_v9 = vld [vmem:[%s5323_s2 + $0x18] sm:$0xff] }
  0x43   :  { %1224 = vmatprep.subr.bf16.mxu0 %v4047_v12  ;;  %1265 = vmatprep.subr.bf16.mxu1 %v4050_v13  ;;  %v868_v33 = vld [vmem:[%s5323_s2 + $0xe8] sm:$0xff]  ;;  %v4120_v35 = vcombine.low %v856_v24, %v860_v25  ;;  %v871_v38 = vld [vmem:[%s5323_s2 + $0x100] sm:$0xff]  ;;  %v846_v11 = vld [vmem:[%s5323_s2 + $0x38] sm:$0xff]  ;;  %5419 = vst [vmem:[#allocation29_spill] sm:$0xff] %v4252_v16  ;;  %v4272_v25 = vcombine.low %v841_v6, %v845_v7  ;;  %p3753_p4 = pnand %p3752_p3, %p3746_p0 }
  0x44   :  { %5396 = vst [vmem:[#allocation6_spill] sm:$0xff] %v4100_v30  ;;  %5397 = vst [vmem:[#allocation7_spill] sm:$0xff] %v4116_v34  ;;  %v4125_v37 = vcombine.high %v864_v32, %v868_v33  ;;  %v875_v39 = vld [vmem:[%s5323_s2 + $0x120] sm:$0xff]  ;;  %v872_v41 = vld [vmem:[%s5323_s2 + $0x108] sm:$0xff]  ;;  %v4146_v44 = vcombine.low %v864_v32, %v868_v33  ;;  %v4256_v17 = vcombine.high %v842_v9, %v846_v11 }
  0x45   :  { %662 = vmatmul.mubr.bf16.vlgmr.msra.gmra.mrb[16].mxu0 %v3926_v10  ;;  %735 = vmatmul.mubr.bf16.vlgmr.msra.gmra.mrb[16].mxu1 %v3926_v10  ;;  %v863_v10 = vld [vmem:[%s5323_s2 + $0xc0] sm:$0xff]  ;;  %5398 = vst [vmem:[#allocation8_spill] sm:$0xff] %v4120_v35  ;;  %v876_v42 = vld [vmem:[%s5323_s2 + $0x128] sm:$0xff]  ;;  %v4148_v45 = vcombine.high %v871_v38, %v875_v39  ;;  %v4168_v50 = vcombine.low %v871_v38, %v875_v39  ;;  %v853_v22 = vld [vmem:[%s5323_s2 + $0x70] sm:$0xff]  ;;  %v5330_v39 = vmov 0.0|0.0  }
  0x46   :  { %1225 = vmatpush1.bf16.msra.mxu0 %v4065_v18  ;;  %1266 = vmatpush1.bf16.msra.mxu1 %v4068_v19  ;;  %v4122_v36 = vcombine.high %v863_v10, %v867_v31  ;;  %5400 = vst [vmem:[#allocation10_spill] sm:$0xff] %v4125_v37  ;;  %v4142_v43 = vcombine.low %v863_v10, %v867_v31  ;;  %5402 = vst [vmem:[#allocation12_spill] sm:$0xff] %v4146_v44  ;;  %v883_v47 = vld [vmem:[%s5323_s2 + $0x160] sm:$0xff]  ;;  %v880_v48 = vld [vmem:[%s5323_s2 + $0x148] sm:$0xff] }
  0x47   :  { %1226 = vmatprep.subr.bf16.mxu0 %v4070_v20  ;;  %1267 = vmatprep.subr.bf16.mxu1 %v4073_v21  ;;  %5403 = vst [vmem:[#allocation13_spill] sm:$0xff] %v4148_v45  ;;  %v4152_v46 = vcombine.high %v872_v41, %v876_v42  ;;  %v884_v49 = vld [vmem:[%s5323_s2 + $0x168] sm:$0xff]  ;;  %5405 = vst [vmem:[#allocation15_spill] sm:$0xff] %v4168_v50  ;;  %v4172_v51 = vcombine.low %v872_v41, %v876_v42  ;;  %v887_v54 = vld [vmem:[%s5323_s2 + $0x180] sm:$0xff] }
  0x48   :  { %671 = vmatprep.mubr.bf16.mxu0 %v5328_v8  ;;  %744 = vmatprep.mubr.bf16.mxu1 %v5328_v8  ;;  %5399 = vst [vmem:[#allocation9_spill] sm:$0xff] %v4122_v36  ;;  %5401 = vst [vmem:[#allocation11_spill] sm:$0xff] %v4142_v43  ;;  %v4177_v53 = vcombine.high %v880_v48, %v884_v49  ;;  %v891_v55 = vld [vmem:[%s5323_s2 + $0x1a0] sm:$0xff]  ;;  %v888_v56 = vld [vmem:[%s5323_s2 + $0x188] sm:$0xff]  ;;  %v4198_v60 = vcombine.low %v880_v48, %v884_v49 }
  0x49   :  { %5404 = vst [vmem:[#allocation14_spill] sm:$0xff] %v4152_v46  ;;  %5406 = vst [vmem:[#allocation16_spill] sm:$0xff] %v4172_v51  ;;  %v892_v57 = vld [vmem:[%s5323_s2 + $0x1a8] sm:$0xff]  ;;  %v4200_v61 = vcombine.high %v887_v54, %v891_v55  ;;  %v899_v63 = vld [vmem:[%s5323_s2 + $0x1e0] sm:$0xff]  ;;  %v4220_v2 = vcombine.low %v887_v54, %v891_v55  ;;  %v4276_v10 = vcombine.low %v842_v9, %v846_v11 }
  0x4a   :  { %1227 = vmatpush1.bf16.msra.mxu0 %v4090_v26  ;;  %1268 = vmatpush1.bf16.msra.mxu1 %v4094_v28  ;;  %5408 = vst [vmem:[#allocation18_spill] sm:$0xff] %v4177_v53  ;;  %5410 = vst [vmem:[#allocation20_spill] sm:$0xff] %v4198_v60  ;;  %v4204_v62 = vcombine.high %v888_v56, %v892_v57  ;;  %v896_v0 = vld [vmem:[%s5323_s2 + $0x1c8] sm:$0xff]  ;;  %v4224_v3 = vcombine.low %v888_v56, %v892_v57  ;;  %v850_v23 = vld [vmem:[%s5323_s2 + $0x58] sm:$0xff] }
  0x4b   :  { %1228 = vmatprep.subr.bf16.mxu0 %v4096_v29  ;;  %1269 = vmatprep.subr.bf16.mxu1 %v4100_v30  ;;  %5411 = vst [vmem:[#allocation21_spill] sm:$0xff] %v4200_v61  ;;  %v900_v1 = vld [vmem:[%s5323_s2 + $0x1e8] sm:$0xff]  ;;  %5413 = vst [vmem:[#allocation23_spill] sm:$0xff] %v4220_v2  ;;  %v854_v24 = vld [vmem:[%s5323_s2 + $0x78] sm:$0xff] }
  0x4c   :  { %5412 = vst [vmem:[#allocation22_spill] sm:$0xff] %v4204_v62  ;;  %5414 = vst [vmem:[#allocation24_spill] sm:$0xff] %v4224_v3  ;;  %v4229_v5 = vcombine.high %v896_v0, %v900_v1  ;;  %v4250_v15 = vcombine.low %v896_v0, %v900_v1  ;;  %v4281_v32 = vcombine.high %v850_v23, %v854_v24  ;;  %v857_v33 = vld [vmem:[%s5323_s2 + $0x90] sm:$0xff]  ;;  %v858_v41 = vld [vmem:[%s5323_s2 + $0x98] sm:$0xff] }
  0x4d   :  { %672 = vmatmul.mubr.bf16.gmra.mrb[20].mxu0 %v3959_v27  ;;  %745 = vmatmul.mubr.bf16.gmra.mrb[20].mxu1 %v3959_v27  ;;  %v879_v27 = vld [vmem:[%s5323_s2 + $0x140] sm:$0xff]  ;;  %5420 = vst [vmem:[#allocation30_spill] sm:$0xff] %v4256_v17  ;;  %v861_v38 = vld [vmem:[%s5323_s2 + $0xb0] sm:$0xff]  ;;  %v862_v42 = vld [vmem:[%s5323_s2 + $0xb8] sm:$0xff] }
  0x4e   :  { %1229 = vmatpush1.bf16.msra.mxu0 %v4116_v34  ;;  %1270 = vmatpush1.bf16.msra.mxu1 %v4120_v35  ;;  %v4174_v52 = vcombine.high %v879_v27, %v883_v47  ;;  %v4194_v58 = vcombine.low %v879_v27, %v883_v47  ;;  %5416 = vst [vmem:[#allocation26_spill] sm:$0xff] %v4229_v5  ;;  %5418 = vst [vmem:[#allocation28_spill] sm:$0xff] %v4250_v15  ;;  %v865_v54 = vld [vmem:[%s5323_s2 + $0xd0] sm:$0xff]  ;;  %v866_v56 = vld [vmem:[%s5323_s2 + $0xd8] sm:$0xff] }
  0x4f   :  { %1230 = vmatprep.subr.bf16.mxu0 %v4122_v36  ;;  %1271 = vmatprep.subr.bf16.mxu1 %v4125_v37  ;;  %v4302_v47 = vcombine.low %v850_v23, %v854_v24  ;;  %v4304_v48 = vcombine.high %v857_v33, %v861_v38  ;;  %v4307_v49 = vcombine.high %v858_v41, %v862_v42  ;;  %v869_v55 = vld [vmem:[%s5323_s2 + $0xf0] sm:$0xff]  ;;  %v870_v57 = vld [vmem:[%s5323_s2 + $0xf8] sm:$0xff] }
  0x50   :  { %681 = vmatprep.mubr.bf16.mxu0 %v5328_v8  ;;  %754 = vmatprep.mubr.bf16.mxu1 %v5328_v8  ;;  %5407 = vst [vmem:[#allocation17_spill] sm:$0xff] %v4174_v52  ;;  %5409 = vst [vmem:[#allocation19_spill] sm:$0xff] %v4194_v58  ;;  %v4330_v0 = vcombine.high %v865_v54, %v869_v55  ;;  %v4333_v1 = vcombine.high %v866_v56, %v870_v57  ;;  %v873_v6 = vld [vmem:[%s5323_s2 + $0x110] sm:$0xff]  ;;  %v874_v9 = vld [vmem:[%s5323_s2 + $0x118] sm:$0xff] }
  0x51   :  { %v877_v7 = vld [vmem:[%s5323_s2 + $0x130] sm:$0xff]  ;;  %v878_v11 = vld [vmem:[%s5323_s2 + $0x138] sm:$0xff] }
  0x52   :  { %1231 = vmatpush1.bf16.msra.mxu0 %v4142_v43  ;;  %1272 = vmatpush1.bf16.msra.mxu1 %v4146_v44  ;;  %v4354_v23 = vcombine.high %v873_v6, %v877_v7  ;;  %v4357_v24 = vcombine.high %v874_v9, %v878_v11 }
  0x53   :  { %1232 = vmatprep.subr.bf16.mxu0 %v4148_v45  ;;  %1273 = vmatprep.subr.bf16.mxu1 %v4152_v46 }
  0x54   :  { %5422 = vst [vmem:[#allocation32_spill] sm:$0xff] %v4354_v23  ;;  %5423 = vst [vmem:[#allocation33_spill] sm:$0xff] %v4357_v24 }
  0x55   :  { %682 = vmatmul.mubr.bf16.gmra.mrb[24].mxu0 %v3984_v40  ;;  %755 = vmatmul.mubr.bf16.gmra.mrb[24].mxu1 %v3984_v40  ;;  %v895_v40 = vld [vmem:[%s5323_s2 + $0x1c0] sm:$0xff] }
  0x56   :  { %1233 = vmatpush1.bf16.msra.mxu0 %v4168_v50  ;;  %1274 = vmatpush1.bf16.msra.mxu1 %v4172_v51  ;;  %v4226_v4 = vcombine.high %v895_v40, %v899_v63  ;;  %v4246_v14 = vcombine.low %v895_v40, %v899_v63  ;;  %v4324_v40 = vcombine.low %v857_v33, %v861_v38  ;;  %v881_v33 = vld [vmem:[%s5323_s2 + $0x150] sm:$0xff] }
  0x57   :  { %1234 = vmatprep.subr.bf16.mxu0 %v4174_v52  ;;  %1275 = vmatprep.subr.bf16.mxu1 %v4177_v53  ;;  %v4328_v63 = vcombine.low %v858_v41, %v862_v42  ;;  %v885_v38 = vld [vmem:[%s5323_s2 + $0x170] sm:$0xff]  ;;  %v882_v41 = vld [vmem:[%s5323_s2 + $0x158] sm:$0xff] }
  0x58   :  { %691 = vmatprep.mubr.bf16.mxu0 %v5328_v8  ;;  %764 = vmatprep.mubr.bf16.mxu1 %v5328_v8  ;;  %5415 = vst [vmem:[#allocation25_spill] sm:$0xff] %v4226_v4  ;;  %5417 = vst [vmem:[#allocation27_spill] sm:$0xff] %v4246_v14  ;;  %v886_v42 = vld [vmem:[%s5323_s2 + $0x178] sm:$0xff] }
  0x5a   :  { %1235 = vmatpush1.bf16.msra.mxu0 %v4194_v58  ;;  %1276 = vmatpush1.bf16.msra.mxu1 %v4198_v60 }
  0x5b   :  { %1236 = vmatprep.subr.bf16.mxu0 %v4200_v61  ;;  %1277 = vmatprep.subr.bf16.mxu1 %v4204_v62 }
  0x5d   :  { %692 = vmatmul.mubr.bf16.gmra.mrb[28].mxu0 %v4023_v59  ;;  %765 = vmatmul.mubr.bf16.gmra.mrb[28].mxu1 %v4023_v59  ;;  %v849_v59 = vld [vmem:[%s5323_s2 + $0x50] sm:$0xff] }
  0x5e   :  { %1237 = vmatpush1.bf16.msra.mxu0 %v4220_v2  ;;  %1278 = vmatpush1.bf16.msra.mxu1 %v4224_v3  ;;  %v4278_v31 = vcombine.high %v849_v59, %v853_v22  ;;  %v4298_v27 = vcombine.low %v849_v59, %v853_v22  ;;  %v4348_v59 = vcombine.low %v865_v54, %v869_v55 }
  0x5f   :  { %1238 = vmatprep.subr.bf16.mxu0 %v4226_v4  ;;  %1279 = vmatprep.subr.bf16.mxu1 %v4229_v5  ;;  %v4352_v22 = vcombine.low %v866_v56, %v870_v57  ;;  %v4372_v54 = vcombine.low %v873_v6, %v877_v7  ;;  %v4376_v55 = vcombine.low %v874_v9, %v878_v11  ;;  %v893_v6 = vld [vmem:[%s5323_s2 + $0x1b0] sm:$0xff]  ;;  %v890_v7 = vld [vmem:[%s5323_s2 + $0x198] sm:$0xff] }
  0x60   :  { %1256 = vmatprep.mubr.bf16.mxu0 %v5328_v8  ;;  %1297 = vmatprep.mubr.bf16.mxu1 %v5328_v8  ;;  %v4378_v56 = vcombine.high %v881_v33, %v885_v38  ;;  %v4381_v57 = vcombine.high %v882_v41, %v886_v42  ;;  %v894_v9 = vld [vmem:[%s5323_s2 + $0x1b8] sm:$0xff]  ;;  %v4396_v11 = vcombine.low %v881_v33, %v885_v38  ;;  %v901_v33 = vld [vmem:[%s5323_s2 + $0x1f0] sm:$0xff] }
  0x61   :  { %5421 = vst [vmem:[#allocation31_spill] sm:$0xff] %v4352_v22  ;;  %5424 = vst [vmem:[#allocation34_spill] sm:$0xff] %v4372_v54  ;;  %v898_v38 = vld [vmem:[%s5323_s2 + $0x1d8] sm:$0xff] }
  0x62   :  { %1239 = vmatpush1.bf16.msra.mxu0 %v4246_v14  ;;  %1280 = vmatpush1.bf16.msra.mxu1 %v4250_v15  ;;  %5425 = vst [vmem:[#allocation35_spill] sm:$0xff] %v4376_v55  ;;  %5426 = vst [vmem:[#allocation36_spill] sm:$0xff] %v4378_v56 }
  0x63   :  { %1306 = vmatprep.subr.bf16.mxu0 %v4252_v16  ;;  %1347 = vmatprep.subr.bf16.mxu1 %v4256_v17  ;;  %5427 = vst [vmem:[#allocation37_spill] sm:$0xff] %v4381_v57 }
  0x65   :  { %1257 = vmatmul.mubr.bf16.vlgmr.msra.gmra.mrb[32].mxu0 %v5330_v39  ;;  %1298 = vmatmul.mubr.bf16.vlgmr.msra.gmra.mrb[32].mxu1 %v5330_v39  ;;  %v4400_v39 = vcombine.low %v882_v41, %v886_v42  ;;  %v902_v41 = vld [vmem:[%s5323_s2 + $0x1f8] sm:$0xff] }
  0x66   :  { %1307 = vmatpush1.bf16.msra.mxu0 %v4272_v25  ;;  %1348 = vmatpush1.bf16.msra.mxu1 %v4276_v10 }
  0x67   :  { %1308 = vmatprep.subr.bf16.mxu0 %v4278_v31  ;;  %1349 = vmatprep.subr.bf16.mxu1 %v4281_v32 }
  0x68   :  { %1338 = vmatprep.mubr.bf16.mxu0 %v5328_v8  ;;  %1379 = vmatprep.mubr.bf16.mxu1 %v5328_v8  ;;  %v889_v8 = vld [vmem:[%s5323_s2 + $0x190] sm:$0xff] }
  0x69   :  { %v4420_v42 = vcombine.low %v889_v8, %v893_v6 }
  0x6a   :  { %1309 = vmatpush1.bf16.msra.mxu0 %v4298_v27  ;;  %1350 = vmatpush1.bf16.msra.mxu1 %v4302_v47 }
  0x6b   :  { %1310 = vmatprep.subr.bf16.mxu0 %v4304_v48  ;;  %1351 = vmatprep.subr.bf16.mxu1 %v4307_v49 }
  0x6e   :  { %1311 = vmatpush1.bf16.msra.mxu0 %v4324_v40  ;;  %1352 = vmatpush1.bf16.msra.mxu1 %v4328_v63 }
  0x6f   :  { %1312 = vmatprep.subr.bf16.mxu0 %v4330_v0  ;;  %1353 = vmatprep.subr.bf16.mxu1 %v4333_v1 }
  0x72   :  { %1313 = vmatpush1.bf16.msra.mxu0 %v4348_v59  ;;  %1354 = vmatpush1.bf16.msra.mxu1 %v4352_v22  ;;  %v897_v22 = vld [vmem:[%s5323_s2 + $0x1d0] sm:$0xff] }
  0x73   :  { %1314 = vmatprep.subr.bf16.mxu0 %v4354_v23  ;;  %1355 = vmatprep.subr.bf16.mxu1 %v4357_v24  ;;  %v4402_v24 = vcombine.high %v889_v8, %v893_v6  ;;  %v4405_v23 = vcombine.high %v890_v7, %v894_v9  ;;  %v4436_v8 = vcombine.low %v898_v38, %v902_v41  ;;  %v5428_v6 = vmov 0.0|0.0  }
  0x76   :  { %1315 = vmatpush1.bf16.msra.mxu0 %v4372_v54  ;;  %1356 = vmatpush1.bf16.msra.mxu1 %v4376_v55  ;;  %v4429_v55 = vcombine.high %v898_v38, %v902_v41  ;;  %v4432_v54 = vcombine.low %v897_v22, %v901_v33  ;;  %v4485_v38 = vld [vmem:[%s5324_s3] sm:$0xff] }
  0x77   :  { %1316 = vmatprep.subr.bf16.mxu0 %v4378_v56  ;;  %1357 = vmatprep.subr.bf16.mxu1 %v4381_v57  ;;  %v4424_v57 = vcombine.low %v890_v7, %v894_v9  ;;  %v4426_v56 = vcombine.high %v897_v22, %v901_v33  ;;  %v5429_v22 = vmov 0   ;;  %v99_v7 = vlaneseq }
  0x79   :  { %v4479_v9 = vshrl.u32 %v99_v7, 7 }
  0x7a   :  { %1317 = vmatpush1.bf16.msra.mxu0 %v4396_v11  ;;  %1358 = vmatpush1.bf16.msra.mxu1 %v4400_v39 }
  0x7b   :  { %1318 = vmatprep.subr.bf16.mxu0 %v4402_v24  ;;  %1359 = vmatprep.subr.bf16.mxu1 %v4405_v23  ;;  %v101_v33 = vsub.s32 0, %v4479_v9  ;;  %v109_v41 = vsub.s32 2, %v4479_v9 }
  0x7d   :  { %v4496_v7 = vrot.slane %v4485_v38, %v109_v41 }
  0x7e   :  { %1319 = vmatpush1.bf16.msra.mxu0 %v4420_v42  ;;  %1360 = vmatpush1.bf16.msra.mxu1 %v4424_v57 }
  0x7f   :  { %1320 = vmatprep.subr.bf16.mxu0 %v4426_v56  ;;  %1361 = vmatprep.subr.bf16.mxu1 %v4429_v55 }
  0x82   :  { %1321 = vmatpush1.bf16.msra.mxu0 %v4432_v54  ;;  %1362 = vmatpush1.bf16.msra.mxu1 %v4436_v8 }
  0x83   :  { %1453 = vmatprep.subr.bf16.mxu0 %v4047_v12  ;;  %1494 = vmatprep.subr.bf16.mxu1 %v4050_v13 }
  0x85   :  { %1339 = vmatmul.mubr.bf16.vlgmr.msra.gmra.mrb[36].mxu0 %v5428_v6  ;;  %1380 = vmatmul.mubr.bf16.vlgmr.msra.gmra.mrb[36].mxu1 %v5428_v6  ;;  %v113_v6 = vsub.s32 3, %v4479_v9 }
  0x86   :  { %1454 = vmatpush1.bf16.msra.mxu0 %v4065_v18  ;;  %1495 = vmatpush1.bf16.msra.mxu1 %v4068_v19 }
  0x87   :  { %1455 = vmatprep.subr.bf16.mxu0 %v4070_v20  ;;  %1496 = vmatprep.subr.bf16.mxu1 %v4073_v21 }
  0x88   :  { %1485 = vmatprep.mubr.bf16.mxu0 %v5429_v22  ;;  %1526 = vmatprep.mubr.bf16.mxu1 %v5429_v22 }
  0x8a   :  { %1456 = vmatpush1.bf16.msra.mxu0 %v4090_v26  ;;  %1497 = vmatpush1.bf16.msra.mxu1 %v4094_v28 }
  0x8b   :  { %1457 = vmatprep.subr.bf16.mxu0 %v4096_v29  ;;  %1498 = vmatprep.subr.bf16.mxu1 %v4100_v30 }
  0x8e   :  { %1458 = vmatpush1.bf16.msra.mxu0 %v4116_v34  ;;  %1499 = vmatpush1.bf16.msra.mxu1 %v4120_v35 }
  0x8f   :  { %1459 = vmatprep.subr.bf16.mxu0 %v4122_v36  ;;  %1500 = vmatprep.subr.bf16.mxu1 %v4125_v37 }
  0x92   :  { %1460 = vmatpush1.bf16.msra.mxu0 %v4142_v43  ;;  %1501 = vmatpush1.bf16.msra.mxu1 %v4146_v44 }
  0x93   :  { %1461 = vmatprep.subr.bf16.mxu0 %v4148_v45  ;;  %1502 = vmatprep.subr.bf16.mxu1 %v4152_v46 }
  0x96   :  { %1462 = vmatpush1.bf16.msra.mxu0 %v4168_v50  ;;  %1503 = vmatpush1.bf16.msra.mxu1 %v4172_v51 }
  0x97   :  { %1463 = vmatprep.subr.bf16.mxu0 %v4174_v52  ;;  %1504 = vmatprep.subr.bf16.mxu1 %v4177_v53 }
  0x9a   :  { %1464 = vmatpush1.bf16.msra.mxu0 %v4194_v58  ;;  %1505 = vmatpush1.bf16.msra.mxu1 %v4198_v60 }
  0x9b   :  { %1465 = vmatprep.subr.bf16.mxu0 %v4200_v61  ;;  %1506 = vmatprep.subr.bf16.mxu1 %v4204_v62 }
  0x9e   :  { %1466 = vmatpush1.bf16.msra.mxu0 %v4220_v2  ;;  %1507 = vmatpush1.bf16.msra.mxu1 %v4224_v3 }
  0x9f   :  { %1467 = vmatprep.subr.bf16.mxu0 %v4226_v4  ;;  %1508 = vmatprep.subr.bf16.mxu1 %v4229_v5  ;;  %v4503_v4 = vrot.slane %v4485_v38, %v113_v6 }
  0xa2   :  { %1468 = vmatpush1.bf16.msra.mxu0 %v4246_v14  ;;  %1509 = vmatpush1.bf16.msra.mxu1 %v4250_v15  ;;  %v105_v15 = vsub.s32 1, %v4479_v9 }
  0xa3   :  { %1535 = vmatprep.subr.bf16.mxu0 %v4252_v16  ;;  %1576 = vmatprep.subr.bf16.mxu1 %v4256_v17  ;;  %v4491_v16 = vrot.slane %v4485_v38, %v101_v33 }
  0xa4   :  { %v4506_v3 = vrot.slane %v4485_v38, %v105_v15 }
  0xf8   :  { %v4493_v17 = vpop.f32.mrb[0].mxu0  ;;  %v4500_v5 = vpop.f32.mrb[0].mxu1 }
  0xf9   :  { %v4498_v14 = vpop.f32.mrb[1].mxu0  ;;  %v4508_v62 = vpop.f32.mrb[1].mxu1 }
  0xfa   :  { %v521_v2 = vpop.f32.mrb[2].mxu0  ;;  %v594_v60 = vpop.f32.mrb[2].mxu1 }
  0xfb   :  { %v4511_v33 = vadd.f32 %v521_v2, %v4491_v16  ;;  %v523_v61 = vpop.f32.mrb[3].mxu0  ;;  %v4517_v58 = vadd.f32 %v594_v60, %v4496_v7  ;;  %v596_v53 = vpop.f32.mrb[3].mxu1 }
  0xfc   :  { %v4514_v41 = vadd.f32 %v523_v61, %v4506_v3  ;;  %v4520_v6 = vadd.f32 %v596_v53, %v4503_v4 }
  0xfd   :  { %5430 = vst [vmem:[#allocation38_spill] sm:$0xff] %v4511_v33  ;;  %5432 = vst [vmem:[#allocation40_spill] sm:$0xff] %v4517_v58 }
  0xfe   :  { %5431 = vst [vmem:[#allocation39_spill] sm:$0xff] %v4514_v41  ;;  %5433 = vst [vmem:[#allocation41_spill] sm:$0xff] %v4520_v6 }
 0x100   :  { %v527_v15 = vpop.f32.mrb[4].mxu0  ;;  %v600_v50 = vpop.f32.mrb[4].mxu1 }
 0x101   :  { %v4523_v52 = vadd.f32 %v527_v15, %v4491_v16  ;;  %v529_v51 = vpop.f32.mrb[5].mxu0  ;;  %v4529_v61 = vadd.f32 %v600_v50, %v4496_v7  ;;  %v602_v41 = vpop.f32.mrb[5].mxu1 }
 0x102   :  { %v4526_v2 = vadd.f32 %v529_v51, %v4506_v3  ;;  %v531_v33 = vpop.f32.mrb[6].mxu0  ;;  %v4535_v53 = vadd.f32 %v602_v41, %v4503_v4  ;;  %v604_v6 = vpop.f32.mrb[6].mxu1 }
 0x103   :  { %5434 = vst [vmem:[#allocation42_spill] sm:$0xff] %v4523_v52  ;;  %5436 = vst [vmem:[#allocation44_spill] sm:$0xff] %v4529_v61  ;;  %v4532_v60 = vadd.f32 %v531_v33, %v4491_v16  ;;  %v533_v58 = vpop.f32.mrb[7].mxu0  ;;  %v4541_v52 = vadd.f32 %v604_v6, %v4496_v7  ;;  %v606_v51 = vpop.f32.mrb[7].mxu1 }
 0x104   :  { %5435 = vst [vmem:[#allocation43_spill] sm:$0xff] %v4526_v2  ;;  %5438 = vst [vmem:[#allocation46_spill] sm:$0xff] %v4535_v53  ;;  %v4538_v15 = vadd.f32 %v533_v58, %v4506_v3  ;;  %v4544_v2 = vadd.f32 %v606_v51, %v4503_v4 }
 0x105   :  { %5437 = vst [vmem:[#allocation45_spill] sm:$0xff] %v4532_v60  ;;  %5440 = vst [vmem:[#allocation48_spill] sm:$0xff] %v4541_v52 }
 0x106   :  { %5439 = vst [vmem:[#allocation47_spill] sm:$0xff] %v4538_v15  ;;  %5441 = vst [vmem:[#allocation49_spill] sm:$0xff] %v4544_v2 }
 0x108   :  { %v537_v50 = vpop.f32.mrb[8].mxu0  ;;  %v610_v60 = vpop.f32.mrb[8].mxu1 }
 0x109   :  { %v4547_v61 = vadd.f32 %v537_v50, %v4491_v16  ;;  %v539_v33 = vpop.f32.mrb[9].mxu0  ;;  %v4553_v58 = vadd.f32 %v610_v60, %v4496_v7  ;;  %v612_v15 = vpop.f32.mrb[9].mxu1 }
 0x10a   :  { %v4550_v41 = vadd.f32 %v539_v33, %v4506_v3  ;;  %v541_v53 = vpop.f32.mrb[10].mxu0  ;;  %v4559_v51 = vadd.f32 %v612_v15, %v4503_v4  ;;  %v614_v2 = vpop.f32.mrb[10].mxu1 }
 0x10b   :  { %5442 = vst [vmem:[#allocation50_spill] sm:$0xff] %v4547_v61  ;;  %5444 = vst [vmem:[#allocation52_spill] sm:$0xff] %v4553_v58  ;;  %v4556_v6 = vadd.f32 %v541_v53, %v4491_v16  ;;  %v543_v52 = vpop.f32.mrb[11].mxu0  ;;  %v4565_v61 = vadd.f32 %v614_v2, %v4496_v7  ;;  %v616_v33 = vpop.f32.mrb[11].mxu1 }
 0x10c   :  { %5443 = vst [vmem:[#allocation51_spill] sm:$0xff] %v4550_v41  ;;  %5446 = vst [vmem:[#allocation54_spill] sm:$0xff] %v4559_v51  ;;  %v4562_v50 = vadd.f32 %v543_v52, %v4506_v3  ;;  %v4568_v41 = vadd.f32 %v616_v33, %v4503_v4  ;;  %v125_v33 = vsub.s32 6, %v4479_v9 }
 0x10d   :  { %5445 = vst [vmem:[#allocation53_spill] sm:$0xff] %v4556_v6  ;;  %5448 = vst [vmem:[#allocation56_spill] sm:$0xff] %v4565_v61  ;;  %v117_v6 = vsub.s32 4, %v4479_v9 }
 0x10e   :  { %5447 = vst [vmem:[#allocation55_spill] sm:$0xff] %v4562_v50  ;;  %5449 = vst [vmem:[#allocation57_spill] sm:$0xff] %v4568_v41  ;;  %v121_v50 = vsub.s32 5, %v4479_v9 }
 0x110   :  { %v547_v60 = vpop.f32.mrb[12].mxu0  ;;  %v620_v15 = vpop.f32.mrb[12].mxu1 }
 0x111   :  { %v4571_v58 = vadd.f32 %v547_v60, %v4491_v16  ;;  %v549_v53 = vpop.f32.mrb[13].mxu0  ;;  %v4579_v2 = vadd.f32 %v620_v15, %v4496_v7  ;;  %v622_v61 = vpop.f32.mrb[13].mxu1 }
 0x112   :  { %v4575_v51 = vadd.f32 %v549_v53, %v4506_v3  ;;  %v551_v52 = vpop.f32.mrb[14].mxu0  ;;  %v624_v46 = vpop.f32.mrb[14].mxu1  ;;  %v129_v53 = vsub.s32 7, %v4479_v9 }
 0x113   :  { %5450 = vst [vmem:[#allocation58_spill] sm:$0xff] %v4571_v58  ;;  %5452 = vst [vmem:[#allocation60_spill] sm:$0xff] %v4579_v2  ;;  %v4583_v41 = vadd.f32 %v551_v52, %v4491_v16  ;;  %v553_v60 = vpop.f32.mrb[15].mxu0  ;;  %v4586_v58 = vadd.f32 %v622_v61, %v4503_v4  ;;  %v4593_v45 = vadd.f32 %v624_v46, %v4496_v7  ;;  %v626_v15 = vpop.f32.mrb[15].mxu1 }
 0x114   :  { %5451 = vst [vmem:[#allocation59_spill] sm:$0xff] %v4575_v51  ;;  %v4590_v51 = vadd.f32 %v553_v60, %v4506_v3  ;;  %v4596_v2 = vrot.slane %v4485_v38, %v117_v6  ;;  %v4599_v52 = vadd.f32 %v626_v15, %v4503_v4  ;;  %v4605_v61 = vrot.slane %v4485_v38, %v125_v33 }
 0x115   :  { %5453 = vst [vmem:[#allocation61_spill] sm:$0xff] %v4583_v41  ;;  %5454 = vst [vmem:[#allocation62_spill] sm:$0xff] %v4586_v58  ;;  %v4602_v41 = vrot.slane %v4485_v38, %v121_v50  ;;  %v4608_v9 = vrot.slane %v4485_v38, %v129_v53 }
 0x116   :  { %5455 = vst [vmem:[#allocation63_spill] sm:$0xff] %v4590_v51  ;;  %5456 = vst [vmem:[#allocation64_spill] sm:$0xff] %v4593_v45 }
 0x117   :  { %5457 = vst [vmem:[#allocation65_spill] sm:$0xff] %v4599_v52 }
 0x118   :  { %v663_v60 = vpop.f32.mrb[16].mxu0  ;;  %v736_v45 = vpop.f32.mrb[16].mxu1 }
 0x119   :  { %v4611_v46 = vadd.f32 %v663_v60, %v4596_v2  ;;  %v665_v51 = vpop.f32.mrb[17].mxu0  ;;  %v4617_v52 = vadd.f32 %v736_v45, %v4605_v61  ;;  %v738_v50 = vpop.f32.mrb[17].mxu1 }
 0x11a   :  { %v4614_v6 = vadd.f32 %v665_v51, %v4602_v41  ;;  %v667_v15 = vpop.f32.mrb[18].mxu0  ;;  %v4623_v38 = vadd.f32 %v738_v50, %v4608_v9  ;;  %v740_v53 = vpop.f32.mrb[18].mxu1 }
 0x11b   :  { %5458 = vst [vmem:[#allocation66_spill] sm:$0xff] %v4611_v46  ;;  %5460 = vst [vmem:[#allocation68_spill] sm:$0xff] %v4617_v52  ;;  %v4620_v33 = vadd.f32 %v667_v15, %v4596_v2  ;;  %v669_v58 = vpop.f32.mrb[19].mxu0  ;;  %v4629_v46 = vadd.f32 %v740_v53, %v4605_v61  ;;  %v742_v51 = vpop.f32.mrb[19].mxu1 }
 0x11c   :  { %5459 = vst [vmem:[#allocation67_spill] sm:$0xff] %v4614_v6  ;;  %5462 = vst [vmem:[#allocation70_spill] sm:$0xff] %v4623_v38  ;;  %v4626_v60 = vadd.f32 %v669_v58, %v4602_v41  ;;  %v4632_v6 = vadd.f32 %v742_v51, %v4608_v9 }
 0x11d   :  { %5461 = vst [vmem:[#allocation69_spill] sm:$0xff] %v4620_v33  ;;  %5464 = vst [vmem:[#allocation72_spill] sm:$0xff] %v4629_v46 }
 0x11e   :  { %5463 = vst [vmem:[#allocation71_spill] sm:$0xff] %v4626_v60  ;;  %5465 = vst [vmem:[#allocation73_spill] sm:$0xff] %v4632_v6 }
 0x120   :  { %v673_v45 = vpop.f32.mrb[20].mxu0  ;;  %v746_v33 = vpop.f32.mrb[20].mxu1 }
 0x121   :  { %v4635_v52 = vadd.f32 %v673_v45, %v4596_v2  ;;  %v675_v15 = vpop.f32.mrb[21].mxu0  ;;  %v4641_v58 = vadd.f32 %v746_v33, %v4605_v61  ;;  %v748_v60 = vpop.f32.mrb[21].mxu1 }
 0x122   :  { %v4638_v50 = vadd.f32 %v675_v15, %v4602_v41  ;;  %v677_v38 = vpop.f32.mrb[22].mxu0  ;;  %v4647_v51 = vadd.f32 %v748_v60, %v4608_v9  ;;  %v750_v6 = vpop.f32.mrb[22].mxu1 }
 0x123   :  { %5466 = vst [vmem:[#allocation74_spill] sm:$0xff] %v4635_v52  ;;  %5468 = vst [vmem:[#allocation76_spill] sm:$0xff] %v4641_v58  ;;  %v4644_v53 = vadd.f32 %v677_v38, %v4596_v2  ;;  %v679_v46 = vpop.f32.mrb[23].mxu0  ;;  %v4653_v52 = vadd.f32 %v750_v6, %v4605_v61  ;;  %v752_v15 = vpop.f32.mrb[23].mxu1 }
 0x124   :  { %5467 = vst [vmem:[#allocation75_spill] sm:$0xff] %v4638_v50  ;;  %5470 = vst [vmem:[#allocation78_spill] sm:$0xff] %v4647_v51  ;;  %v4650_v45 = vadd.f32 %v679_v46, %v4602_v41  ;;  %v4656_v50 = vadd.f32 %v752_v15, %v4608_v9 }
 0x125   :  { %5469 = vst [vmem:[#allocation77_spill] sm:$0xff] %v4644_v53  ;;  %5472 = vst [vmem:[#allocation80_spill] sm:$0xff] %v4653_v52 }
 0x126   :  { %5471 = vst [vmem:[#allocation79_spill] sm:$0xff] %v4650_v45  ;;  %5473 = vst [vmem:[#allocation81_spill] sm:$0xff] %v4656_v50 }
 0x128   :  { %v683_v33 = vpop.f32.mrb[24].mxu0  ;;  %v756_v53 = vpop.f32.mrb[24].mxu1 }
 0x129   :  { %v4659_v58 = vadd.f32 %v683_v33, %v4596_v2  ;;  %v685_v38 = vpop.f32.mrb[25].mxu0  ;;  %v4665_v46 = vadd.f32 %v756_v53, %v4605_v61  ;;  %v758_v45 = vpop.f32.mrb[25].mxu1 }
 0x12a   :  { %v4662_v60 = vadd.f32 %v685_v38, %v4602_v41  ;;  %v687_v51 = vpop.f32.mrb[26].mxu0  ;;  %v4671_v15 = vadd.f32 %v758_v45, %v4608_v9  ;;  %v760_v50 = vpop.f32.mrb[26].mxu1 }
 0x12b   :  { %5474 = vst [vmem:[#allocation82_spill] sm:$0xff] %v4659_v58  ;;  %5476 = vst [vmem:[#allocation84_spill] sm:$0xff] %v4665_v46  ;;  %v4668_v6 = vadd.f32 %v687_v51, %v4596_v2  ;;  %v689_v52 = vpop.f32.mrb[27].mxu0  ;;  %v4677_v58 = vadd.f32 %v760_v50, %v4605_v61  ;;  %v762_v38 = vpop.f32.mrb[27].mxu1 }
 0x12c   :  { %5475 = vst [vmem:[#allocation83_spill] sm:$0xff] %v4662_v60  ;;  %5478 = vst [vmem:[#allocation86_spill] sm:$0xff] %v4671_v15  ;;  %v4674_v33 = vadd.f32 %v689_v52, %v4602_v41  ;;  %v4680_v60 = vadd.f32 %v762_v38, %v4608_v9 }
 0x12d   :  { %5477 = vst [vmem:[#allocation85_spill] sm:$0xff] %v4668_v6  ;;  %5480 = vst [vmem:[#allocation88_spill] sm:$0xff] %v4677_v58 }
 0x12e   :  { %5479 = vst [vmem:[#allocation87_spill] sm:$0xff] %v4674_v33  ;;  %5481 = vst [vmem:[#allocation89_spill] sm:$0xff] %v4680_v60 }
 0x130   :  { %v693_v53 = vpop.f32.mrb[28].mxu0  ;;  %v766_v6 = vpop.f32.mrb[28].mxu1 }
 0x131   :  { %v4683_v46 = vadd.f32 %v693_v53, %v4596_v2  ;;  %v695_v51 = vpop.f32.mrb[29].mxu0  ;;  %v4689_v52 = vadd.f32 %v766_v6, %v4605_v61  ;;  %v768_v33 = vpop.f32.mrb[29].mxu1  ;;  %v518_v53 = vadd.f32 %v4493_v17, %v4491_v16  ;;  %v593_v6 = vadd.f32 %v4508_v62, %v4503_v4 }
 0x132   :  { %v4686_v45 = vadd.f32 %v695_v51, %v4602_v41  ;;  %v697_v15 = vpop.f32.mrb[30].mxu0  ;;  %v4692_v58 = vadd.f32 %v768_v33, %v4608_v9  ;;  %v770_v38 = vpop.f32.mrb[30].mxu1  ;;  %v591_v51 = vadd.f32 %v4500_v5, %v4496_v7 }
 0x133   :  { %5482 = vst [vmem:[#allocation90_spill] sm:$0xff] %v4683_v46  ;;  %5484 = vst [vmem:[#allocation92_spill] sm:$0xff] %v4689_v52  ;;  %v699_v50 = vpop.f32.mrb[31].mxu0  ;;  %v772_v60 = vpop.f32.mrb[31].mxu1  ;;  %v520_v46 = vadd.f32 %v4498_v14, %v4506_v3 }
 0x134   :  { %5483 = vst [vmem:[#allocation91_spill] sm:$0xff] %v4686_v45  ;;  %5485 = vst [vmem:[#allocation93_spill] sm:$0xff] %v4692_v58 }
 0x138   :  { %v1258_v45 = vpop.f32.mrb[32].mxu0  ;;  %v1299_v44 = vpop.f32.mrb[32].mxu1 }
 0x139   :  { %v1392_v52 = vadd.f32 %v1258_v45, %v518_v53  ;;  %v1260_v43 = vpop.f32.mrb[33].mxu0  ;;  %v1394_v33 = vadd.f32 %v1299_v44, %v591_v51  ;;  %v1301_v37 = vpop.f32.mrb[33].mxu1  ;;  %v771_v53 = vadd.f32 %v770_v38, %v4605_v61 }
 0x13a   :  { %v1393_v58 = vadd.f32 %v1260_v43, %v520_v46  ;;  %v1262_v36 = vpop.f32.mrb[34].mxu0  ;;  %v1395_v34 = vadd.f32 %v1301_v37, %v593_v6  ;;  %v1303_v17 = vpop.f32.mrb[34].mxu1 }
 0x13b   :  { %v3379_v35 = vmul.f32 -1.442695, %v1392_v52  ;;  %v1263_v16 = vpop.f32.mrb[35].mxu0  ;;  %v1304_v3 = vpop.f32.mrb[35].mxu1 }
 0x13c   :  { %v3380_v30 = vmul.f32 -1.442695, %v1393_v58  ;;  %v698_v58 = vadd.f32 %v697_v15, %v4596_v2  ;;  %v3381_v2 = vmul.f32 -1.442695, %v1395_v34 }
 0x13d   :  { %3489 = vpow2.f32 %v3379_v35 }
 0x13e   :  { %3491 = vpow2.f32 %v3380_v30  ;;  %v700_v30 = vadd.f32 %v699_v50, %v4602_v41 }
 0x13f   :  { %3493 = vtanh.f32 %v1394_v33  ;;  %v773_v33 = vadd.f32 %v772_v60, %v4608_v9 }
 0x147   :  { %v3490_v5 = vpop.eup %3489 }
 0x148   :  { %v3492_v14 = vpop.eup %3491  ;;  %v1407_v7 = vadd.f32 1.0, %v3490_v5 }
 0x149   :  { %v1413_v62 = vadd.f32 1.0, %v3492_v14  ;;  %v3494_v4 = vpop.eup %3493 }
 0x14a   :  { %3495 = vrcp.f32 %v1407_v7 }
 0x14b   :  { %3497 = vrcp.f32 %v1413_v62 }
 0x154   :  { %v3496_v44 = vpop.eup %3495 }
 0x155   :  { %v3498_v43 = vpop.eup %3497  ;;  %v1424_v46 = vmul.f32 %v3496_v44, %v3494_v4 }
 0x156   :  { %v1423_v36 = vmul.f32 0.0, %v3498_v43 }
 0x158   :  { %v4702_v45 = vadd.f32 %v1424_v46, %v1423_v36  ;;  %v1340_v37 = vpop.f32.mrb[36].mxu0  ;;  %v1381_v52 = vpop.f32.mrb[36].mxu1 }
 0x159   :  { %v1341_v35 = vpop.f32.mrb[37].mxu0  ;;  %v1382_v51 = vpop.f32.mrb[37].mxu1 }
 0x15a   :  { %v1342_v6 = vpop.f32.mrb[38].mxu0  ;;  %v1383_v17 = vpop.f32.mrb[38].mxu1 }
 0x15b   :  { %v1400_v16 = vadd.f32 %v1342_v6, %v698_v58  ;;  %v1344_v3 = vpop.f32.mrb[39].mxu0  ;;  %v1402_v5 = vadd.f32 %v1383_v17, %v771_v53  ;;  %v1385_v7 = vpop.f32.mrb[39].mxu1 }
 0x15c   :  { %v1401_v14 = vadd.f32 %v1344_v3, %v700_v30  ;;  %v1403_v4 = vadd.f32 %v1385_v7, %v773_v33  ;;  %v5486_v3 = vld [vmem:[#allocation31_spill] sm:$0xff]  ;;  %v5489_v7 = vld [vmem:[#allocation34_spill] sm:$0xff] }
 0x15d   :  { %v3382_v62 = vmul.f32 -1.442695, %v1400_v16 }
 0x15e   :  { %v3383_v44 = vmul.f32 -1.442695, %v1401_v14  ;;  %v3384_v15 = vmul.f32 -1.442695, %v1403_v4  ;;  %v5488_v14 = vld [vmem:[#allocation33_spill] sm:$0xff]  ;;  %v5491_v4 = vld [vmem:[#allocation36_spill] sm:$0xff] }
 0x15f   :  { %3499 = vpow2.f32 %v3382_v62  ;;  %v5490_v62 = vld [vmem:[#allocation35_spill] sm:$0xff] }
 0x160   :  { %3501 = vpow2.f32 %v3383_v44  ;;  %v5492_v44 = vld [vmem:[#allocation37_spill] sm:$0xff] }
 0x161   :  { %3503 = vpow2.f32 %v3381_v2  ;;  %v5493_v2 = vld [vmem:[#allocation6_spill] sm:$0xff] }
 0x162   :  { %3505 = vpow2.f32 %v3384_v15  ;;  %v5494_v15 = vld [vmem:[#allocation7_spill] sm:$0xff] }
 0x163   :  { %3507 = vtanh.f32 %v1402_v5  ;;  %v5487_v5 = vld [vmem:[#allocation32_spill] sm:$0xff] }
 0x169   :  { %v3500_v41 = vpop.eup %3499 }
 0x16a   :  { %v3502_v61 = vpop.eup %3501  ;;  %v1431_v50 = vadd.f32 1.0, %v3500_v41  ;;  %v5495_v41 = vld [vmem:[#allocation8_spill] sm:$0xff] }
 0x16b   :  { %v1437_v9 = vadd.f32 1.0, %v3502_v61  ;;  %v3504_v60 = vpop.eup %3503  ;;  %v5496_v61 = vld [vmem:[#allocation9_spill] sm:$0xff] }
 0x16c   :  { %3509 = vrcp.f32 %v1431_v50  ;;  %v3506_v38 = vpop.eup %3505  ;;  %v1420_v46 = vadd.f32 1.0, %v3504_v60  ;;  %v5497_v50 = vld [vmem:[#allocation10_spill] sm:$0xff]  ;;  %v5499_v60 = vld [vmem:[#allocation12_spill] sm:$0xff] }
 0x16d   :  { %3511 = vrcp.f32 %v1437_v9  ;;  %v3508_v43 = vpop.eup %3507  ;;  %v1444_v52 = vadd.f32 1.0, %v3506_v38  ;;  %v5498_v9 = vld [vmem:[#allocation11_spill] sm:$0xff]  ;;  %v5500_v38 = vld [vmem:[#allocation13_spill] sm:$0xff] }
 0x16e   :  { %3513 = vrcp.f32 %v1420_v46  ;;  %v5502_v46 = vld [vmem:[#allocation15_spill] sm:$0xff] }
 0x16f   :  { %3515 = vtanh.f32 %v4702_v45 }
 0x170   :  { %3517 = vrcp.f32 %v1444_v52  ;;  %v5506_v52 = vld [vmem:[#allocation19_spill] sm:$0xff] }
 0x176   :  { %v3510_v36 = vpop.eup %3509 }
 0x177   :  { %v3512_v37 = vpop.eup %3511  ;;  %v1448_v58 = vmul.f32 %v3510_v36, %v3508_v43  ;;  %v5501_v43 = vld [vmem:[#allocation14_spill] sm:$0xff]  ;;  %v5503_v36 = vld [vmem:[#allocation16_spill] sm:$0xff] }
 0x178   :  { %v1447_v35 = vmul.f32 0.0, %v3512_v37  ;;  %v3514_v30 = vpop.eup %3513  ;;  %v5504_v37 = vld [vmem:[#allocation17_spill] sm:$0xff] }
 0x179   :  { %v3516_v53 = vpop.eup %3515 }
 0x17a   :  { %v4709_v34 = vadd.f32 %v1448_v58, %v1447_v35  ;;  %v3518_v51 = vpop.eup %3517  ;;  %v1427_v33 = vmul.f32 %v3516_v53, %v3514_v30  ;;  %v5505_v58 = vld [vmem:[#allocation18_spill] sm:$0xff]  ;;  %v5507_v35 = vld [vmem:[#allocation20_spill] sm:$0xff]  ;;  %v5508_v30 = vld [vmem:[#allocation21_spill] sm:$0xff] }
 0x17b   :  { %v5509_v53 = vld [vmem:[#allocation22_spill] sm:$0xff] }
 0x17c   :  { %3519 = vtanh.f32 %v4709_v34 }
 0x186   :  { %v3520_v6 = vpop.eup %3519 }
 0x187   :  { %v1451_v16 = vmul.f32 %v3520_v6, %v3518_v51  ;;  %v5510_v51 = vld [vmem:[#allocation23_spill] sm:$0xff]  ;;  %v5511_v6 = vld [vmem:[#allocation24_spill] sm:$0xff] }
 0x189   :  { %v1452_v17 = vpack.c.bf16 %v1451_v16, %v1427_v33  ;;  %v5512_v33 = vld [vmem:[#allocation25_spill] sm:$0xff]  ;;  %v5513_v16 = vld [vmem:[#allocation26_spill] sm:$0xff] }
 0x18b   :  { %1486 = vmatmul.mubr.bf16.vlgmr.msra.gmra.mrb[40].mxu0 %v1452_v17  ;;  %1527 = vmatmul.mubr.bf16.vlgmr.msra.gmra.mrb[40].mxu1 %v1452_v17 }
 0x18c   :  { %1536 = vmatpush1.bf16.msra.mxu0 %v4272_v25  ;;  %1577 = vmatpush1.bf16.msra.mxu1 %v4276_v10 }
 0x18d   :  { %1537 = vmatprep.subr.bf16.mxu0 %v4278_v31  ;;  %1578 = vmatprep.subr.bf16.mxu1 %v4281_v32 }
 0x18e   :  { %1567 = vmatprep.mubr.bf16.mxu0 %v5429_v22  ;;  %1608 = vmatprep.mubr.bf16.mxu1 %v5429_v22 }
 0x190   :  { %1538 = vmatpush1.bf16.msra.mxu0 %v4298_v27  ;;  %1579 = vmatpush1.bf16.msra.mxu1 %v4302_v47 }
 0x191   :  { %1539 = vmatprep.subr.bf16.mxu0 %v4304_v48  ;;  %1580 = vmatprep.subr.bf16.mxu1 %v4307_v49 }
 0x194   :  { %1540 = vmatpush1.bf16.msra.mxu0 %v4324_v40  ;;  %1581 = vmatpush1.bf16.msra.mxu1 %v4328_v63 }
 0x195   :  { %1541 = vmatprep.subr.bf16.mxu0 %v4330_v0  ;;  %1582 = vmatprep.subr.bf16.mxu1 %v4333_v1 }
 0x198   :  { %1542 = vmatpush1.bf16.msra.mxu0 %v4348_v59  ;;  %1583 = vmatpush1.bf16.msra.mxu1 %v5486_v3 }
 0x199   :  { %1543 = vmatprep.subr.bf16.mxu0 %v5487_v5  ;;  %1584 = vmatprep.subr.bf16.mxu1 %v5488_v14 }
 0x19c   :  { %1544 = vmatpush1.bf16.msra.mxu0 %v5489_v7  ;;  %1585 = vmatpush1.bf16.msra.mxu1 %v5490_v62 }
 0x19d   :  { %1545 = vmatprep.subr.bf16.mxu0 %v5491_v4  ;;  %1586 = vmatprep.subr.bf16.mxu1 %v5492_v44 }
 0x1a0   :  { %1546 = vmatpush1.bf16.msra.mxu0 %v4396_v11  ;;  %1587 = vmatpush1.bf16.msra.mxu1 %v4400_v39 }
 0x1a1   :  { %1547 = vmatprep.subr.bf16.mxu0 %v4402_v24  ;;  %1588 = vmatprep.subr.bf16.mxu1 %v4405_v23 }
 0x1a4   :  { %1548 = vmatpush1.bf16.msra.mxu0 %v4420_v42  ;;  %1589 = vmatpush1.bf16.msra.mxu1 %v4424_v57 }
 0x1a5   :  { %1549 = vmatprep.subr.bf16.mxu0 %v4426_v56  ;;  %1590 = vmatprep.subr.bf16.mxu1 %v4429_v55 }
 0x1a8   :  { %1550 = vmatpush1.bf16.msra.mxu0 %v4432_v54  ;;  %1591 = vmatpush1.bf16.msra.mxu1 %v4436_v8 }
 0x1a9   :  { %1682 = vmatprep.subr.bf16.mxu0 %v4047_v12  ;;  %1723 = vmatprep.subr.bf16.mxu1 %v4050_v13 }
 0x1ab   :  { %1568 = vmatmul.mubr.bf16.vlgmr.msra.gmra.mrb[44].mxu0 %v1452_v17  ;;  %1609 = vmatmul.mubr.bf16.vlgmr.msra.gmra.mrb[44].mxu1 %v1452_v17  ;;  %v5514_v17 = vld [vmem:[#allocation27_spill] sm:$0xff] }
 0x1ac   :  { %1683 = vmatpush1.bf16.msra.mxu0 %v4065_v18  ;;  %1724 = vmatpush1.bf16.msra.mxu1 %v4068_v19 }
 0x1ad   :  { %1684 = vmatprep.subr.bf16.mxu0 %v4070_v20  ;;  %1725 = vmatprep.subr.bf16.mxu1 %v4073_v21 }
 0x1ae   :  { %1714 = vmatprep.mubr.bf16.mxu0 %v5429_v22  ;;  %1755 = vmatprep.mubr.bf16.mxu1 %v5429_v22 }
 0x1b0   :  { %1685 = vmatpush1.bf16.msra.mxu0 %v4090_v26  ;;  %1726 = vmatpush1.bf16.msra.mxu1 %v4094_v28 }
 0x1b1   :  { %1686 = vmatprep.subr.bf16.mxu0 %v4096_v29  ;;  %1727 = vmatprep.subr.bf16.mxu1 %v5493_v2  ;;  %v5525_v2 = vld [vmem:[#allocation93_spill] sm:$0xff] }
 0x1b4   :  { %1687 = vmatpush1.bf16.msra.mxu0 %v5494_v15  ;;  %1728 = vmatpush1.bf16.msra.mxu1 %v5495_v41 }
 0x1b5   :  { %1688 = vmatprep.subr.bf16.mxu0 %v5496_v61  ;;  %1729 = vmatprep.subr.bf16.mxu1 %v5497_v50 }
 0x1b8   :  { %1689 = vmatpush1.bf16.msra.mxu0 %v5498_v9  ;;  %1730 = vmatpush1.bf16.msra.mxu1 %v5499_v60  ;;  %v5521_v60 = vld [vmem:[#allocation41_spill] sm:$0xff] }
 0x1b9   :  { %1690 = vmatprep.subr.bf16.mxu0 %v5500_v38  ;;  %1731 = vmatprep.subr.bf16.mxu1 %v5501_v43  ;;  %v5520_v38 = vld [vmem:[#allocation39_spill] sm:$0xff] }
 0x1bc   :  { %1691 = vmatpush1.bf16.msra.mxu0 %v5502_v46  ;;  %1732 = vmatpush1.bf16.msra.mxu1 %v5503_v36  ;;  %v5518_v36 = vld [vmem:[#allocation38_spill] sm:$0xff]  ;;  %v5519_v46 = vld [vmem:[#allocation40_spill] sm:$0xff] }
 0x1bd   :  { %1692 = vmatprep.subr.bf16.mxu0 %v5504_v37  ;;  %1733 = vmatprep.subr.bf16.mxu1 %v5505_v58  ;;  %v5515_v37 = vld [vmem:[#allocation28_spill] sm:$0xff]  ;;  %v5516_v58 = vld [vmem:[#allocation29_spill] sm:$0xff] }
 0x1c0   :  { %1693 = vmatpush1.bf16.msra.mxu0 %v5506_v52  ;;  %1734 = vmatpush1.bf16.msra.mxu1 %v5507_v35  ;;  %v5517_v52 = vld [vmem:[#allocation30_spill] sm:$0xff] }
 0x1c1   :  { %1694 = vmatprep.subr.bf16.mxu0 %v5508_v30  ;;  %1735 = vmatprep.subr.bf16.mxu1 %v5509_v53 }
 0x1c4   :  { %1695 = vmatpush1.bf16.msra.mxu0 %v5510_v51  ;;  %1736 = vmatpush1.bf16.msra.mxu1 %v5511_v6 }
 0x1c5   :  { %1696 = vmatprep.subr.bf16.mxu0 %v5512_v33  ;;  %1737 = vmatprep.subr.bf16.mxu1 %v5513_v16 }
 0x1c8   :  { %1697 = vmatpush1.bf16.msra.mxu0 %v5514_v17  ;;  %1738 = vmatpush1.bf16.msra.mxu1 %v5515_v37 }
 0x1c9   :  { %1764 = vmatprep.subr.bf16.mxu0 %v5516_v58  ;;  %1805 = vmatprep.subr.bf16.mxu1 %v5517_v52 }
 0x25e   :  { %v1487_v35 = vpop.f32.mrb[40].mxu0  ;;  %v1528_v30 = vpop.f32.mrb[40].mxu1 }
 0x25f   :  { %v1621_v53 = vadd.f32 %v1487_v35, %v5518_v36  ;;  %v1623_v51 = vadd.f32 %v1528_v30, %v5519_v46  ;;  %v1489_v43 = vpop.f32.mrb[41].mxu0  ;;  %v1530_v6 = vpop.f32.mrb[41].mxu1 }
 0x260   :  { %v1622_v33 = vadd.f32 %v1489_v43, %v5520_v38  ;;  %v1624_v16 = vadd.f32 %v1530_v6, %v5521_v60  ;;  %v1491_v9 = vpop.f32.mrb[42].mxu0  ;;  %v1532_v17 = vpop.f32.mrb[42].mxu1  ;;  %v5522_v6 = vld [vmem:[#allocation90_spill] sm:$0xff] }
 0x261   :  { %v3385_v50 = vmul.f32 -1.442695, %v1621_v53  ;;  %v1492_v37 = vpop.f32.mrb[43].mxu0  ;;  %v1533_v61 = vpop.f32.mrb[43].mxu1  ;;  %v5524_v17 = vld [vmem:[#allocation91_spill] sm:$0xff] }
 0x262   :  { %v3386_v58 = vmul.f32 -1.442695, %v1622_v33 }
 0x263   :  { %3521 = vpow2.f32 %v3385_v50 }
 0x264   :  { %3523 = vpow2.f32 %v3386_v58 }
 0x265   :  { %3525 = vtanh.f32 %v1623_v51  ;;  %v5523_v51 = vld [vmem:[#allocation92_spill] sm:$0xff] }
 0x26d   :  { %v3522_v52 = vpop.eup %3521 }
 0x26e   :  { %v3524_v41 = vpop.eup %3523  ;;  %v1636_v15 = vadd.f32 1.0, %v3522_v52 }
 0x26f   :  { %v1642_v36 = vadd.f32 1.0, %v3524_v41  ;;  %v3526_v46 = vpop.eup %3525 }
 0x270   :  { %3527 = vrcp.f32 %v1636_v15 }
 0x271   :  { %3529 = vrcp.f32 %v1642_v36 }
 0x27a   :  { %v3528_v35 = vpop.eup %3527 }
 0x27b   :  { %v3530_v38 = vpop.eup %3529  ;;  %v1653_v43 = vmul.f32 %v3528_v35, %v3526_v46 }
 0x27c   :  { %v1652_v9 = vmul.f32 %v3530_v38, %v4702_v45  ;;  %v3387_v38 = vmul.f32 -1.442695, %v1624_v16 }
 0x27e   :  { %v4785_v60 = vadd.f32 %v1653_v43, %v1652_v9  ;;  %v1569_v37 = vpop.f32.mrb[44].mxu0  ;;  %v1610_v61 = vpop.f32.mrb[44].mxu1 }
 0x27f   :  { %v1570_v30 = vpop.f32.mrb[45].mxu0  ;;  %v1611_v50 = vpop.f32.mrb[45].mxu1 }
 0x280   :  { %v1571_v58 = vpop.f32.mrb[46].mxu0  ;;  %v1612_v53 = vpop.f32.mrb[46].mxu1 }
 0x281   :  { %v1629_v52 = vadd.f32 %v1571_v58, %v5522_v6  ;;  %v1631_v41 = vadd.f32 %v1612_v53, %v5523_v51  ;;  %v1573_v15 = vpop.f32.mrb[47].mxu0  ;;  %v1614_v33 = vpop.f32.mrb[47].mxu1 }
 0x282   :  { %v1630_v36 = vadd.f32 %v1573_v15, %v5524_v17  ;;  %v1632_v46 = vadd.f32 %v1614_v33, %v5525_v2 }
 0x283   :  { %v3388_v35 = vmul.f32 -1.442695, %v1629_v52 }
 0x284   :  { %v3389_v45 = vmul.f32 -1.442695, %v1630_v36  ;;  %v3390_v43 = vmul.f32 -1.442695, %v1632_v46 }
 0x285   :  { %3531 = vpow2.f32 %v3388_v35 }
 0x286   :  { %3533 = vpow2.f32 %v3389_v45 }
 0x287   :  { %3535 = vpow2.f32 %v3387_v38 }
 0x288   :  { %3537 = vpow2.f32 %v3390_v43  ;;  %v5527_v43 = vld [vmem:[#allocation7_spill] sm:$0xff] }
 0x289   :  { %3539 = vtanh.f32 %v1631_v41 }
 0x28f   :  { %v3532_v9 = vpop.eup %3531 }
 0x290   :  { %v3534_v37 = vpop.eup %3533  ;;  %v1660_v61 = vadd.f32 1.0, %v3532_v9  ;;  %v5528_v9 = vld [vmem:[#allocation8_spill] sm:$0xff] }
 0x291   :  { %v1666_v30 = vadd.f32 1.0, %v3534_v37  ;;  %v3536_v50 = vpop.eup %3535  ;;  %v5529_v37 = vld [vmem:[#allocation9_spill] sm:$0xff] }
 0x292   :  { %3541 = vrcp.f32 %v1660_v61  ;;  %v3538_v58 = vpop.eup %3537  ;;  %v1649_v6 = vadd.f32 1.0, %v3536_v50  ;;  %v5530_v61 = vld [vmem:[#allocation10_spill] sm:$0xff]  ;;  %v5532_v50 = vld [vmem:[#allocation12_spill] sm:$0xff] }
 0x293   :  { %3543 = vrcp.f32 %v1666_v30  ;;  %v3540_v53 = vpop.eup %3539  ;;  %v1673_v15 = vadd.f32 1.0, %v3538_v58  ;;  %v5531_v30 = vld [vmem:[#allocation11_spill] sm:$0xff]  ;;  %v5533_v58 = vld [vmem:[#allocation13_spill] sm:$0xff] }
 0x294   :  { %3545 = vrcp.f32 %v1649_v6  ;;  %v5535_v6 = vld [vmem:[#allocation15_spill] sm:$0xff] }
 0x295   :  { %3547 = vtanh.f32 %v4785_v60 }
 0x296   :  { %3549 = vrcp.f32 %v1673_v15  ;;  %v5539_v15 = vld [vmem:[#allocation19_spill] sm:$0xff] }
 0x29c   :  { %v3542_v2 = vpop.eup %3541 }
 0x29d   :  { %v3544_v52 = vpop.eup %3543  ;;  %v1677_v51 = vmul.f32 %v3542_v2, %v3540_v53  ;;  %v5534_v53 = vld [vmem:[#allocation14_spill] sm:$0xff]  ;;  %v5536_v2 = vld [vmem:[#allocation16_spill] sm:$0xff] }
 0x29e   :  { %v1676_v16 = vmul.f32 %v3544_v52, %v4709_v34  ;;  %v3546_v41 = vpop.eup %3545  ;;  %v5526_v34 = vld [vmem:[#allocation6_spill] sm:$0xff]  ;;  %v5537_v52 = vld [vmem:[#allocation17_spill] sm:$0xff] }
 0x29f   :  { %v3548_v17 = vpop.eup %3547 }
 0x2a0   :  { %v4793_v33 = vadd.f32 %v1677_v51, %v1676_v16  ;;  %v3550_v36 = vpop.eup %3549  ;;  %v1656_v35 = vmul.f32 %v3548_v17, %v3546_v41  ;;  %v5538_v51 = vld [vmem:[#allocation18_spill] sm:$0xff]  ;;  %v5540_v16 = vld [vmem:[#allocation20_spill] sm:$0xff]  ;;  %v5541_v41 = vld [vmem:[#allocation21_spill] sm:$0xff] }
 0x2a1   :  { %v5542_v17 = vld [vmem:[#allocation22_spill] sm:$0xff] }
 0x2a2   :  { %3551 = vtanh.f32 %v4793_v33 }
 0x2ac   :  { %v3552_v46 = vpop.eup %3551 }
 0x2ad   :  { %v1680_v45 = vmul.f32 %v3552_v46, %v3550_v36  ;;  %v5543_v36 = vld [vmem:[#allocation23_spill] sm:$0xff]  ;;  %v5544_v46 = vld [vmem:[#allocation24_spill] sm:$0xff] }
 0x2af   :  { %v1681_v38 = vpack.c.bf16 %v1680_v45, %v1656_v35  ;;  %v5545_v35 = vld [vmem:[#allocation25_spill] sm:$0xff]  ;;  %v5546_v45 = vld [vmem:[#allocation26_spill] sm:$0xff] }
 0x2b1   :  { %1715 = vmatmul.mubr.bf16.vlgmr.msra.gmra.mrb[48].mxu0 %v1681_v38  ;;  %1756 = vmatmul.mubr.bf16.vlgmr.msra.gmra.mrb[48].mxu1 %v1681_v38 }
 0x2b2   :  { %1765 = vmatpush1.bf16.msra.mxu0 %v4272_v25  ;;  %1806 = vmatpush1.bf16.msra.mxu1 %v4276_v10 }
 0x2b3   :  { %1766 = vmatprep.subr.bf16.mxu0 %v4278_v31  ;;  %1807 = vmatprep.subr.bf16.mxu1 %v4281_v32 }
 0x2b4   :  { %1796 = vmatprep.mubr.bf16.mxu0 %v5429_v22  ;;  %1837 = vmatprep.mubr.bf16.mxu1 %v5429_v22 }
 0x2b6   :  { %1767 = vmatpush1.bf16.msra.mxu0 %v4298_v27  ;;  %1808 = vmatpush1.bf16.msra.mxu1 %v4302_v47 }
 0x2b7   :  { %1768 = vmatprep.subr.bf16.mxu0 %v4304_v48  ;;  %1809 = vmatprep.subr.bf16.mxu1 %v4307_v49 }
 0x2ba   :  { %1769 = vmatpush1.bf16.msra.mxu0 %v4324_v40  ;;  %1810 = vmatpush1.bf16.msra.mxu1 %v4328_v63 }
 0x2bb   :  { %1770 = vmatprep.subr.bf16.mxu0 %v4330_v0  ;;  %1811 = vmatprep.subr.bf16.mxu1 %v4333_v1 }
 0x2be   :  { %1771 = vmatpush1.bf16.msra.mxu0 %v4348_v59  ;;  %1812 = vmatpush1.bf16.msra.mxu1 %v5486_v3 }
 0x2bf   :  { %1772 = vmatprep.subr.bf16.mxu0 %v5487_v5  ;;  %1813 = vmatprep.subr.bf16.mxu1 %v5488_v14 }
 0x2c2   :  { %1773 = vmatpush1.bf16.msra.mxu0 %v5489_v7  ;;  %1814 = vmatpush1.bf16.msra.mxu1 %v5490_v62 }
 0x2c3   :  { %1774 = vmatprep.subr.bf16.mxu0 %v5491_v4  ;;  %1815 = vmatprep.subr.bf16.mxu1 %v5492_v44 }
 0x2c6   :  { %1775 = vmatpush1.bf16.msra.mxu0 %v4396_v11  ;;  %1816 = vmatpush1.bf16.msra.mxu1 %v4400_v39 }
 0x2c7   :  { %1776 = vmatprep.subr.bf16.mxu0 %v4402_v24  ;;  %1817 = vmatprep.subr.bf16.mxu1 %v4405_v23 }
 0x2ca   :  { %1777 = vmatpush1.bf16.msra.mxu0 %v4420_v42  ;;  %1818 = vmatpush1.bf16.msra.mxu1 %v4424_v57 }
 0x2cb   :  { %1778 = vmatprep.subr.bf16.mxu0 %v4426_v56  ;;  %1819 = vmatprep.subr.bf16.mxu1 %v4429_v55 }
 0x2ce   :  { %1779 = vmatpush1.bf16.msra.mxu0 %v4432_v54  ;;  %1820 = vmatpush1.bf16.msra.mxu1 %v4436_v8 }
 0x2cf   :  { %1911 = vmatprep.subr.bf16.mxu0 %v4047_v12  ;;  %1952 = vmatprep.subr.bf16.mxu1 %v4050_v13 }
 0x2d1   :  { %1797 = vmatmul.mubr.bf16.vlgmr.msra.gmra.mrb[52].mxu0 %v1681_v38  ;;  %1838 = vmatmul.mubr.bf16.vlgmr.msra.gmra.mrb[52].mxu1 %v1681_v38  ;;  %v5547_v38 = vld [vmem:[#allocation27_spill] sm:$0xff] }
 0x2d2   :  { %1912 = vmatpush1.bf16.msra.mxu0 %v4065_v18  ;;  %1953 = vmatpush1.bf16.msra.mxu1 %v4068_v19 }
 0x2d3   :  { %1913 = vmatprep.subr.bf16.mxu0 %v4070_v20  ;;  %1954 = vmatprep.subr.bf16.mxu1 %v4073_v21 }
 0x2d4   :  { %1943 = vmatprep.mubr.bf16.mxu0 %v5429_v22  ;;  %1984 = vmatprep.mubr.bf16.mxu1 %v5429_v22 }
 0x2d6   :  { %1914 = vmatpush1.bf16.msra.mxu0 %v4090_v26  ;;  %1955 = vmatpush1.bf16.msra.mxu1 %v4094_v28 }
 0x2d7   :  { %1915 = vmatprep.subr.bf16.mxu0 %v4096_v29  ;;  %1956 = vmatprep.subr.bf16.mxu1 %v5526_v34  ;;  %v5558_v34 = vld [vmem:[#allocation89_spill] sm:$0xff] }
 0x2da   :  { %1916 = vmatpush1.bf16.msra.mxu0 %v5527_v43  ;;  %1957 = vmatpush1.bf16.msra.mxu1 %v5528_v9 }
 0x2db   :  { %1917 = vmatprep.subr.bf16.mxu0 %v5529_v37  ;;  %1958 = vmatprep.subr.bf16.mxu1 %v5530_v61 }
 0x2de   :  { %1918 = vmatpush1.bf16.msra.mxu0 %v5531_v30  ;;  %1959 = vmatpush1.bf16.msra.mxu1 %v5532_v50  ;;  %v5554_v50 = vld [vmem:[#allocation46_spill] sm:$0xff] }
 0x2df   :  { %1919 = vmatprep.subr.bf16.mxu0 %v5533_v58  ;;  %1960 = vmatprep.subr.bf16.mxu1 %v5534_v53  ;;  %v5553_v58 = vld [vmem:[#allocation43_spill] sm:$0xff] }
 0x2e2   :  { %1920 = vmatpush1.bf16.msra.mxu0 %v5535_v6  ;;  %1961 = vmatpush1.bf16.msra.mxu1 %v5536_v2  ;;  %v5551_v2 = vld [vmem:[#allocation42_spill] sm:$0xff]  ;;  %v5552_v6 = vld [vmem:[#allocation44_spill] sm:$0xff] }
 0x2e3   :  { %1921 = vmatprep.subr.bf16.mxu0 %v5537_v52  ;;  %1962 = vmatprep.subr.bf16.mxu1 %v5538_v51  ;;  %v5548_v52 = vld [vmem:[#allocation28_spill] sm:$0xff]  ;;  %v5549_v51 = vld [vmem:[#allocation29_spill] sm:$0xff] }
 0x2e6   :  { %1922 = vmatpush1.bf16.msra.mxu0 %v5539_v15  ;;  %1963 = vmatpush1.bf16.msra.mxu1 %v5540_v16  ;;  %v5550_v15 = vld [vmem:[#allocation30_spill] sm:$0xff] }
 0x2e7   :  { %1923 = vmatprep.subr.bf16.mxu0 %v5541_v41  ;;  %1964 = vmatprep.subr.bf16.mxu1 %v5542_v17 }
 0x2ea   :  { %1924 = vmatpush1.bf16.msra.mxu0 %v5543_v36  ;;  %1965 = vmatpush1.bf16.msra.mxu1 %v5544_v46 }
 0x2eb   :  { %1925 = vmatprep.subr.bf16.mxu0 %v5545_v35  ;;  %1966 = vmatprep.subr.bf16.mxu1 %v5546_v45 }
 0x2ee   :  { %1926 = vmatpush1.bf16.msra.mxu0 %v5547_v38  ;;  %1967 = vmatpush1.bf16.msra.mxu1 %v5548_v52 }
 0x2ef   :  { %1993 = vmatprep.subr.bf16.mxu0 %v5549_v51  ;;  %2034 = vmatprep.subr.bf16.mxu1 %v5550_v15 }
 0x384   :  { %v1716_v16 = vpop.f32.mrb[48].mxu0  ;;  %v1757_v41 = vpop.f32.mrb[48].mxu1 }
 0x385   :  { %v1850_v17 = vadd.f32 %v1716_v16, %v5551_v2  ;;  %v1852_v36 = vadd.f32 %v1757_v41, %v5552_v6  ;;  %v1718_v53 = vpop.f32.mrb[49].mxu0  ;;  %v1759_v46 = vpop.f32.mrb[49].mxu1 }
 0x386   :  { %v1851_v35 = vadd.f32 %v1718_v53, %v5553_v58  ;;  %v1853_v45 = vadd.f32 %v1759_v46, %v5554_v50  ;;  %v1720_v30 = vpop.f32.mrb[50].mxu0  ;;  %v1761_v38 = vpop.f32.mrb[50].mxu1  ;;  %v5555_v46 = vld [vmem:[#allocation85_spill] sm:$0xff] }
 0x387   :  { %v3391_v61 = vmul.f32 -1.442695, %v1850_v17  ;;  %v1721_v52 = vpop.f32.mrb[51].mxu0  ;;  %v1762_v37 = vpop.f32.mrb[51].mxu1  ;;  %v5557_v38 = vld [vmem:[#allocation87_spill] sm:$0xff] }
 0x388   :  { %v3392_v51 = vmul.f32 -1.442695, %v1851_v35 }
 0x389   :  { %3553 = vpow2.f32 %v3391_v61 }
 0x38a   :  { %3555 = vpow2.f32 %v3392_v51 }
 0x38b   :  { %3557 = vtanh.f32 %v1852_v36  ;;  %v5556_v36 = vld [vmem:[#allocation88_spill] sm:$0xff] }
 0x393   :  { %v3554_v15 = vpop.eup %3553 }
 0x394   :  { %v3556_v9 = vpop.eup %3555  ;;  %v1865_v43 = vadd.f32 1.0, %v3554_v15 }
 0x395   :  { %v1871_v2 = vadd.f32 1.0, %v3556_v9  ;;  %v3558_v6 = vpop.eup %3557 }
 0x396   :  { %3559 = vrcp.f32 %v1865_v43 }
 0x397   :  { %3561 = vrcp.f32 %v1871_v2 }
 0x3a0   :  { %v3560_v16 = vpop.eup %3559 }
 0x3a1   :  { %v3562_v58 = vpop.eup %3561  ;;  %v1882_v53 = vmul.f32 %v3560_v16, %v3558_v6 }
 0x3a2   :  { %v1881_v30 = vmul.f32 %v3562_v58, %v4785_v60  ;;  %v3393_v58 = vmul.f32 -1.442695, %v1853_v45 }
 0x3a4   :  { %v4869_v50 = vadd.f32 %v1882_v53, %v1881_v30  ;;  %v1798_v52 = vpop.f32.mrb[52].mxu0  ;;  %v1839_v37 = vpop.f32.mrb[52].mxu1 }
 0x3a5   :  { %v1799_v41 = vpop.f32.mrb[53].mxu0  ;;  %v1840_v61 = vpop.f32.mrb[53].mxu1 }
 0x3a6   :  { %v1800_v51 = vpop.f32.mrb[54].mxu0  ;;  %v1841_v17 = vpop.f32.mrb[54].mxu1 }
 0x3a7   :  { %v1858_v15 = vadd.f32 %v1800_v51, %v5555_v46  ;;  %v1860_v9 = vadd.f32 %v1841_v17, %v5556_v36  ;;  %v1802_v43 = vpop.f32.mrb[55].mxu0  ;;  %v1843_v35 = vpop.f32.mrb[55].mxu1 }
 0x3a8   :  { %v1859_v2 = vadd.f32 %v1802_v43, %v5557_v38  ;;  %v1861_v6 = vadd.f32 %v1843_v35, %v5558_v34 }
 0x3a9   :  { %v3394_v16 = vmul.f32 -1.442695, %v1858_v15 }
 0x3aa   :  { %v3395_v60 = vmul.f32 -1.442695, %v1859_v2  ;;  %v3396_v53 = vmul.f32 -1.442695, %v1861_v6 }
 0x3ab   :  { %3563 = vpow2.f32 %v3394_v16 }
 0x3ac   :  { %3565 = vpow2.f32 %v3395_v60 }
 0x3ad   :  { %3567 = vpow2.f32 %v3393_v58 }
 0x3ae   :  { %3569 = vpow2.f32 %v3396_v53  ;;  %v5560_v53 = vld [vmem:[#allocation7_spill] sm:$0xff] }
 0x3af   :  { %3571 = vtanh.f32 %v1860_v9 }
 0x3b5   :  { %v3564_v30 = vpop.eup %3563 }
 0x3b6   :  { %v3566_v52 = vpop.eup %3565  ;;  %v1889_v37 = vadd.f32 1.0, %v3564_v30  ;;  %v5561_v30 = vld [vmem:[#allocation8_spill] sm:$0xff] }
 0x3b7   :  { %v1895_v41 = vadd.f32 1.0, %v3566_v52  ;;  %v3568_v61 = vpop.eup %3567  ;;  %v5562_v52 = vld [vmem:[#allocation9_spill] sm:$0xff] }
 0x3b8   :  { %3573 = vrcp.f32 %v1889_v37  ;;  %v3570_v51 = vpop.eup %3569  ;;  %v1878_v46 = vadd.f32 1.0, %v3568_v61  ;;  %v5563_v37 = vld [vmem:[#allocation10_spill] sm:$0xff]  ;;  %v5565_v61 = vld [vmem:[#allocation12_spill] sm:$0xff] }
 0x3b9   :  { %3575 = vrcp.f32 %v1895_v41  ;;  %v3572_v17 = vpop.eup %3571  ;;  %v1902_v43 = vadd.f32 1.0, %v3570_v51  ;;  %v5564_v41 = vld [vmem:[#allocation11_spill] sm:$0xff]  ;;  %v5566_v51 = vld [vmem:[#allocation13_spill] sm:$0xff] }
 0x3ba   :  { %3577 = vrcp.f32 %v1878_v46  ;;  %v5568_v46 = vld [vmem:[#allocation15_spill] sm:$0xff] }
 0x3bb   :  { %3579 = vtanh.f32 %v4869_v50 }
 0x3bc   :  { %3581 = vrcp.f32 %v1902_v43  ;;  %v5572_v43 = vld [vmem:[#allocation19_spill] sm:$0xff] }
 0x3c2   :  { %v3574_v34 = vpop.eup %3573 }
 0x3c3   :  { %v3576_v15 = vpop.eup %3575  ;;  %v1906_v36 = vmul.f32 %v3574_v34, %v3572_v17  ;;  %v5567_v17 = vld [vmem:[#allocation14_spill] sm:$0xff]  ;;  %v5569_v34 = vld [vmem:[#allocation16_spill] sm:$0xff] }
 0x3c4   :  { %v1905_v45 = vmul.f32 %v3576_v15, %v4793_v33  ;;  %v3578_v9 = vpop.eup %3577  ;;  %v5559_v33 = vld [vmem:[#allocation6_spill] sm:$0xff]  ;;  %v5570_v15 = vld [vmem:[#allocation17_spill] sm:$0xff] }
 0x3c5   :  { %v3580_v38 = vpop.eup %3579 }
 0x3c6   :  { %v4877_v35 = vadd.f32 %v1906_v36, %v1905_v45  ;;  %v3582_v2 = vpop.eup %3581  ;;  %v1885_v16 = vmul.f32 %v3580_v38, %v3578_v9  ;;  %v5571_v36 = vld [vmem:[#allocation18_spill] sm:$0xff]  ;;  %v5573_v45 = vld [vmem:[#allocation20_spill] sm:$0xff]  ;;  %v5574_v9 = vld [vmem:[#allocation21_spill] sm:$0xff] }
 0x3c7   :  { %v5575_v38 = vld [vmem:[#allocation22_spill] sm:$0xff] }
 0x3c8   :  { %3583 = vtanh.f32 %v4877_v35 }
 0x3d2   :  { %v3584_v6 = vpop.eup %3583 }
 0x3d3   :  { %v1909_v60 = vmul.f32 %v3584_v6, %v3582_v2  ;;  %v5576_v2 = vld [vmem:[#allocation23_spill] sm:$0xff]  ;;  %v5577_v6 = vld [vmem:[#allocation24_spill] sm:$0xff] }
 0x3d5   :  { %v1910_v58 = vpack.c.bf16 %v1909_v60, %v1885_v16  ;;  %v5578_v16 = vld [vmem:[#allocation25_spill] sm:$0xff]  ;;  %v5579_v60 = vld [vmem:[#allocation26_spill] sm:$0xff] }
 0x3d7   :  { %1944 = vmatmul.mubr.bf16.vlgmr.msra.gmra.mrb[56].mxu0 %v1910_v58  ;;  %1985 = vmatmul.mubr.bf16.vlgmr.msra.gmra.mrb[56].mxu1 %v1910_v58 }
 0x3d8   :  { %1994 = vmatpush1.bf16.msra.mxu0 %v4272_v25  ;;  %2035 = vmatpush1.bf16.msra.mxu1 %v4276_v10 }
 0x3d9   :  { %1995 = vmatprep.subr.bf16.mxu0 %v4278_v31  ;;  %2036 = vmatprep.subr.bf16.mxu1 %v4281_v32 }
 0x3da   :  { %2025 = vmatprep.mubr.bf16.mxu0 %v5429_v22  ;;  %2066 = vmatprep.mubr.bf16.mxu1 %v5429_v22 }
 0x3dc   :  { %1996 = vmatpush1.bf16.msra.mxu0 %v4298_v27  ;;  %2037 = vmatpush1.bf16.msra.mxu1 %v4302_v47 }
 0x3dd   :  { %1997 = vmatprep.subr.bf16.mxu0 %v4304_v48  ;;  %2038 = vmatprep.subr.bf16.mxu1 %v4307_v49 }
 0x3e0   :  { %1998 = vmatpush1.bf16.msra.mxu0 %v4324_v40  ;;  %2039 = vmatpush1.bf16.msra.mxu1 %v4328_v63 }
 0x3e1   :  { %1999 = vmatprep.subr.bf16.mxu0 %v4330_v0  ;;  %2040 = vmatprep.subr.bf16.mxu1 %v4333_v1 }
 0x3e4   :  { %2000 = vmatpush1.bf16.msra.mxu0 %v4348_v59  ;;  %2041 = vmatpush1.bf16.msra.mxu1 %v5486_v3 }
 0x3e5   :  { %2001 = vmatprep.subr.bf16.mxu0 %v5487_v5  ;;  %2042 = vmatprep.subr.bf16.mxu1 %v5488_v14 }
 0x3e8   :  { %2002 = vmatpush1.bf16.msra.mxu0 %v5489_v7  ;;  %2043 = vmatpush1.bf16.msra.mxu1 %v5490_v62 }
 0x3e9   :  { %2003 = vmatprep.subr.bf16.mxu0 %v5491_v4  ;;  %2044 = vmatprep.subr.bf16.mxu1 %v5492_v44 }
 0x3ec   :  { %2004 = vmatpush1.bf16.msra.mxu0 %v4396_v11  ;;  %2045 = vmatpush1.bf16.msra.mxu1 %v4400_v39 }
 0x3ed   :  { %2005 = vmatprep.subr.bf16.mxu0 %v4402_v24  ;;  %2046 = vmatprep.subr.bf16.mxu1 %v4405_v23 }
 0x3f0   :  { %2006 = vmatpush1.bf16.msra.mxu0 %v4420_v42  ;;  %2047 = vmatpush1.bf16.msra.mxu1 %v4424_v57 }
 0x3f1   :  { %2007 = vmatprep.subr.bf16.mxu0 %v4426_v56  ;;  %2048 = vmatprep.subr.bf16.mxu1 %v4429_v55 }
 0x3f4   :  { %2008 = vmatpush1.bf16.msra.mxu0 %v4432_v54  ;;  %2049 = vmatpush1.bf16.msra.mxu1 %v4436_v8 }
 0x3f5   :  { %2140 = vmatprep.subr.bf16.mxu0 %v4047_v12  ;;  %2181 = vmatprep.subr.bf16.mxu1 %v4050_v13 }
 0x3f7   :  { %2026 = vmatmul.mubr.bf16.vlgmr.msra.gmra.mrb[60].mxu0 %v1910_v58  ;;  %2067 = vmatmul.mubr.bf16.vlgmr.msra.gmra.mrb[60].mxu1 %v1910_v58  ;;  %v5580_v58 = vld [vmem:[#allocation27_spill] sm:$0xff] }
 0x3f8   :  { %2141 = vmatpush1.bf16.msra.mxu0 %v4065_v18  ;;  %2182 = vmatpush1.bf16.msra.mxu1 %v4068_v19 }
 0x3f9   :  { %2142 = vmatprep.subr.bf16.mxu0 %v4070_v20  ;;  %2183 = vmatprep.subr.bf16.mxu1 %v4073_v21 }
 0x3fa   :  { %2172 = vmatprep.mubr.bf16.mxu0 %v5429_v22  ;;  %2213 = vmatprep.mubr.bf16.mxu1 %v5429_v22 }
 0x3fc   :  { %2143 = vmatpush1.bf16.msra.mxu0 %v4090_v26  ;;  %2184 = vmatpush1.bf16.msra.mxu1 %v4094_v28 }
 0x3fd   :  { %2144 = vmatprep.subr.bf16.mxu0 %v4096_v29  ;;  %2185 = vmatprep.subr.bf16.mxu1 %v5559_v33  ;;  %v5591_v33 = vld [vmem:[#allocation86_spill] sm:$0xff] }
 0x400   :  { %2145 = vmatpush1.bf16.msra.mxu0 %v5560_v53  ;;  %2186 = vmatpush1.bf16.msra.mxu1 %v5561_v30 }
 0x401   :  { %2146 = vmatprep.subr.bf16.mxu0 %v5562_v52  ;;  %2187 = vmatprep.subr.bf16.mxu1 %v5563_v37 }
 0x404   :  { %2147 = vmatpush1.bf16.msra.mxu0 %v5564_v41  ;;  %2188 = vmatpush1.bf16.msra.mxu1 %v5565_v61  ;;  %v5587_v61 = vld [vmem:[#allocation49_spill] sm:$0xff] }
 0x405   :  { %2148 = vmatprep.subr.bf16.mxu0 %v5566_v51  ;;  %2189 = vmatprep.subr.bf16.mxu1 %v5567_v17  ;;  %v5586_v51 = vld [vmem:[#allocation47_spill] sm:$0xff] }
 0x408   :  { %2149 = vmatpush1.bf16.msra.mxu0 %v5568_v46  ;;  %2190 = vmatpush1.bf16.msra.mxu1 %v5569_v34  ;;  %v5584_v34 = vld [vmem:[#allocation45_spill] sm:$0xff]  ;;  %v5585_v46 = vld [vmem:[#allocation48_spill] sm:$0xff] }
 0x409   :  { %2150 = vmatprep.subr.bf16.mxu0 %v5570_v15  ;;  %2191 = vmatprep.subr.bf16.mxu1 %v5571_v36  ;;  %v5581_v15 = vld [vmem:[#allocation28_spill] sm:$0xff]  ;;  %v5582_v36 = vld [vmem:[#allocation29_spill] sm:$0xff] }
 0x40c   :  { %2151 = vmatpush1.bf16.msra.mxu0 %v5572_v43  ;;  %2192 = vmatpush1.bf16.msra.mxu1 %v5573_v45  ;;  %v5583_v43 = vld [vmem:[#allocation30_spill] sm:$0xff] }
 0x40d   :  { %2152 = vmatprep.subr.bf16.mxu0 %v5574_v9  ;;  %2193 = vmatprep.subr.bf16.mxu1 %v5575_v38 }
 0x410   :  { %2153 = vmatpush1.bf16.msra.mxu0 %v5576_v2  ;;  %2194 = vmatpush1.bf16.msra.mxu1 %v5577_v6 }
 0x411   :  { %2154 = vmatprep.subr.bf16.mxu0 %v5578_v16  ;;  %2195 = vmatprep.subr.bf16.mxu1 %v5579_v60 }
 0x414   :  { %2155 = vmatpush1.bf16.msra.mxu0 %v5580_v58  ;;  %2196 = vmatpush1.bf16.msra.mxu1 %v5581_v15 }
 0x415   :  { %2222 = vmatprep.subr.bf16.mxu0 %v5582_v36  ;;  %2263 = vmatprep.subr.bf16.mxu1 %v5583_v43 }
 0x4aa   :  { %v1945_v45 = vpop.f32.mrb[56].mxu0  ;;  %v1986_v9 = vpop.f32.mrb[56].mxu1 }
 0x4ab   :  { %v2079_v38 = vadd.f32 %v1945_v45, %v5584_v34  ;;  %v2081_v2 = vadd.f32 %v1986_v9, %v5585_v46  ;;  %v1947_v17 = vpop.f32.mrb[57].mxu0  ;;  %v1988_v6 = vpop.f32.mrb[57].mxu1 }
 0x4ac   :  { %v2080_v16 = vadd.f32 %v1947_v17, %v5586_v51  ;;  %v2082_v60 = vadd.f32 %v1988_v6, %v5587_v61  ;;  %v1949_v41 = vpop.f32.mrb[58].mxu0  ;;  %v1990_v58 = vpop.f32.mrb[58].mxu1  ;;  %v5588_v6 = vld [vmem:[#allocation82_spill] sm:$0xff] }
 0x4ad   :  { %v3397_v37 = vmul.f32 -1.442695, %v2079_v38  ;;  %v1950_v15 = vpop.f32.mrb[59].mxu0  ;;  %v1991_v52 = vpop.f32.mrb[59].mxu1  ;;  %v5590_v58 = vld [vmem:[#allocation83_spill] sm:$0xff] }
 0x4ae   :  { %v3398_v36 = vmul.f32 -1.442695, %v2080_v16 }
 0x4af   :  { %3585 = vpow2.f32 %v3397_v37 }
 0x4b0   :  { %3587 = vpow2.f32 %v3398_v36 }
 0x4b1   :  { %3589 = vtanh.f32 %v2081_v2  ;;  %v5589_v2 = vld [vmem:[#allocation84_spill] sm:$0xff] }
 0x4b9   :  { %v3586_v43 = vpop.eup %3585 }
 0x4ba   :  { %v3588_v30 = vpop.eup %3587  ;;  %v2094_v53 = vadd.f32 1.0, %v3586_v43 }
 0x4bb   :  { %v2100_v34 = vadd.f32 1.0, %v3588_v30  ;;  %v3590_v46 = vpop.eup %3589 }
 0x4bc   :  { %3591 = vrcp.f32 %v2094_v53 }
 0x4bd   :  { %3593 = vrcp.f32 %v2100_v34 }
 0x4c6   :  { %v3592_v45 = vpop.eup %3591 }
 0x4c7   :  { %v3594_v51 = vpop.eup %3593  ;;  %v2111_v17 = vmul.f32 %v3592_v45, %v3590_v46 }
 0x4c8   :  { %v2110_v41 = vmul.f32 %v3594_v51, %v4869_v50  ;;  %v3399_v51 = vmul.f32 -1.442695, %v2082_v60 }
 0x4ca   :  { %v4953_v61 = vadd.f32 %v2111_v17, %v2110_v41  ;;  %v2027_v15 = vpop.f32.mrb[60].mxu0  ;;  %v2068_v52 = vpop.f32.mrb[60].mxu1 }
 0x4cb   :  { %v2028_v9 = vpop.f32.mrb[61].mxu0  ;;  %v2069_v37 = vpop.f32.mrb[61].mxu1 }
 0x4cc   :  { %v2029_v36 = vpop.f32.mrb[62].mxu0  ;;  %v2070_v38 = vpop.f32.mrb[62].mxu1 }
 0x4cd   :  { %v2087_v43 = vadd.f32 %v2029_v36, %v5588_v6  ;;  %v2089_v30 = vadd.f32 %v2070_v38, %v5589_v2  ;;  %v2031_v53 = vpop.f32.mrb[63].mxu0  ;;  %v2072_v16 = vpop.f32.mrb[63].mxu1 }
 0x4ce   :  { %v2088_v34 = vadd.f32 %v2031_v53, %v5590_v58  ;;  %v2090_v46 = vadd.f32 %v2072_v16, %v5591_v33 }
 0x4cf   :  { %v3400_v45 = vmul.f32 -1.442695, %v2087_v43 }
 0x4d0   :  { %v3401_v50 = vmul.f32 -1.442695, %v2088_v34  ;;  %v3402_v17 = vmul.f32 -1.442695, %v2090_v46 }
 0x4d1   :  { %3595 = vpow2.f32 %v3400_v45 }
 0x4d2   :  { %3597 = vpow2.f32 %v3401_v50 }
 0x4d3   :  { %3599 = vpow2.f32 %v3399_v51 }
 0x4d4   :  { %3601 = vpow2.f32 %v3402_v17  ;;  %v5593_v17 = vld [vmem:[#allocation7_spill] sm:$0xff] }
 0x4d5   :  { %3603 = vtanh.f32 %v2089_v30 }
 0x4db   :  { %v3596_v41 = vpop.eup %3595 }
 0x4dc   :  { %v3598_v15 = vpop.eup %3597  ;;  %v2118_v52 = vadd.f32 1.0, %v3596_v41  ;;  %v5594_v41 = vld [vmem:[#allocation8_spill] sm:$0xff] }
 0x4dd   :  { %v2124_v9 = vadd.f32 1.0, %v3598_v15  ;;  %v3600_v37 = vpop.eup %3599  ;;  %v5595_v15 = vld [vmem:[#allocation9_spill] sm:$0xff] }
 0x4de   :  { %3605 = vrcp.f32 %v2118_v52  ;;  %v3602_v36 = vpop.eup %3601  ;;  %v2107_v6 = vadd.f32 1.0, %v3600_v37  ;;  %v5596_v52 = vld [vmem:[#allocation10_spill] sm:$0xff]  ;;  %v5598_v37 = vld [vmem:[#allocation12_spill] sm:$0xff] }
 0x4df   :  { %3607 = vrcp.f32 %v2124_v9  ;;  %v3604_v38 = vpop.eup %3603  ;;  %v2131_v53 = vadd.f32 1.0, %v3602_v36  ;;  %v5597_v9 = vld [vmem:[#allocation11_spill] sm:$0xff]  ;;  %v5599_v36 = vld [vmem:[#allocation13_spill] sm:$0xff] }
 0x4e0   :  { %3609 = vrcp.f32 %v2107_v6  ;;  %v5601_v6 = vld [vmem:[#allocation15_spill] sm:$0xff] }
 0x4e1   :  { %3611 = vtanh.f32 %v4953_v61 }
 0x4e2   :  { %3613 = vrcp.f32 %v2131_v53  ;;  %v5605_v53 = vld [vmem:[#allocation19_spill] sm:$0xff] }
 0x4e8   :  { %v3606_v33 = vpop.eup %3605 }
 0x4e9   :  { %v3608_v43 = vpop.eup %3607  ;;  %v2135_v2 = vmul.f32 %v3606_v33, %v3604_v38  ;;  %v5600_v38 = vld [vmem:[#allocation14_spill] sm:$0xff]  ;;  %v5602_v33 = vld [vmem:[#allocation16_spill] sm:$0xff] }
 0x4ea   :  { %v2134_v60 = vmul.f32 %v3608_v43, %v4877_v35  ;;  %v3610_v30 = vpop.eup %3609  ;;  %v5592_v35 = vld [vmem:[#allocation6_spill] sm:$0xff]  ;;  %v5603_v43 = vld [vmem:[#allocation17_spill] sm:$0xff] }
 0x4eb   :  { %v3612_v58 = vpop.eup %3611 }
 0x4ec   :  { %v4961_v16 = vadd.f32 %v2135_v2, %v2134_v60  ;;  %v3614_v34 = vpop.eup %3613  ;;  %v2114_v45 = vmul.f32 %v3612_v58, %v3610_v30  ;;  %v5604_v2 = vld [vmem:[#allocation18_spill] sm:$0xff]  ;;  %v5606_v60 = vld [vmem:[#allocation20_spill] sm:$0xff]  ;;  %v5607_v30 = vld [vmem:[#allocation21_spill] sm:$0xff] }
 0x4ed   :  { %v5608_v58 = vld [vmem:[#allocation22_spill] sm:$0xff] }
 0x4ee   :  { %3615 = vtanh.f32 %v4961_v16 }
 0x4f8   :  { %v3616_v46 = vpop.eup %3615 }
 0x4f9   :  { %v2138_v50 = vmul.f32 %v3616_v46, %v3614_v34  ;;  %v5609_v34 = vld [vmem:[#allocation23_spill] sm:$0xff]  ;;  %v5610_v46 = vld [vmem:[#allocation24_spill] sm:$0xff] }
 0x4fb   :  { %v2139_v51 = vpack.c.bf16 %v2138_v50, %v2114_v45  ;;  %v5611_v45 = vld [vmem:[#allocation25_spill] sm:$0xff]  ;;  %v5612_v50 = vld [vmem:[#allocation26_spill] sm:$0xff] }
 0x4fd   :  { %2173 = vmatmul.mubr.bf16.vlgmr.msra.gmra.mrb[64].mxu0 %v2139_v51  ;;  %2214 = vmatmul.mubr.bf16.vlgmr.msra.gmra.mrb[64].mxu1 %v2139_v51 }
 0x4fe   :  { %2223 = vmatpush1.bf16.msra.mxu0 %v4272_v25  ;;  %2264 = vmatpush1.bf16.msra.mxu1 %v4276_v10 }
 0x4ff   :  { %2224 = vmatprep.subr.bf16.mxu0 %v4278_v31  ;;  %2265 = vmatprep.subr.bf16.mxu1 %v4281_v32 }
 0x500   :  { %2254 = vmatprep.mubr.bf16.mxu0 %v5429_v22  ;;  %2295 = vmatprep.mubr.bf16.mxu1 %v5429_v22 }
 0x502   :  { %2225 = vmatpush1.bf16.msra.mxu0 %v4298_v27  ;;  %2266 = vmatpush1.bf16.msra.mxu1 %v4302_v47 }
 0x503   :  { %2226 = vmatprep.subr.bf16.mxu0 %v4304_v48  ;;  %2267 = vmatprep.subr.bf16.mxu1 %v4307_v49 }
 0x506   :  { %2227 = vmatpush1.bf16.msra.mxu0 %v4324_v40  ;;  %2268 = vmatpush1.bf16.msra.mxu1 %v4328_v63 }
 0x507   :  { %2228 = vmatprep.subr.bf16.mxu0 %v4330_v0  ;;  %2269 = vmatprep.subr.bf16.mxu1 %v4333_v1 }
 0x50a   :  { %2229 = vmatpush1.bf16.msra.mxu0 %v4348_v59  ;;  %2270 = vmatpush1.bf16.msra.mxu1 %v5486_v3 }
 0x50b   :  { %2230 = vmatprep.subr.bf16.mxu0 %v5487_v5  ;;  %2271 = vmatprep.subr.bf16.mxu1 %v5488_v14 }
 0x50e   :  { %2231 = vmatpush1.bf16.msra.mxu0 %v5489_v7  ;;  %2272 = vmatpush1.bf16.msra.mxu1 %v5490_v62 }
 0x50f   :  { %2232 = vmatprep.subr.bf16.mxu0 %v5491_v4  ;;  %2273 = vmatprep.subr.bf16.mxu1 %v5492_v44 }
 0x512   :  { %2233 = vmatpush1.bf16.msra.mxu0 %v4396_v11  ;;  %2274 = vmatpush1.bf16.msra.mxu1 %v4400_v39 }
 0x513   :  { %2234 = vmatprep.subr.bf16.mxu0 %v4402_v24  ;;  %2275 = vmatprep.subr.bf16.mxu1 %v4405_v23 }
 0x516   :  { %2235 = vmatpush1.bf16.msra.mxu0 %v4420_v42  ;;  %2276 = vmatpush1.bf16.msra.mxu1 %v4424_v57 }
 0x517   :  { %2236 = vmatprep.subr.bf16.mxu0 %v4426_v56  ;;  %2277 = vmatprep.subr.bf16.mxu1 %v4429_v55 }
 0x51a   :  { %2237 = vmatpush1.bf16.msra.mxu0 %v4432_v54  ;;  %2278 = vmatpush1.bf16.msra.mxu1 %v4436_v8 }
 0x51b   :  { %2369 = vmatprep.subr.bf16.mxu0 %v4047_v12  ;;  %2410 = vmatprep.subr.bf16.mxu1 %v4050_v13 }
 0x51d   :  { %2255 = vmatmul.mubr.bf16.vlgmr.msra.gmra.mrb[68].mxu0 %v2139_v51  ;;  %2296 = vmatmul.mubr.bf16.vlgmr.msra.gmra.mrb[68].mxu1 %v2139_v51  ;;  %v5613_v51 = vld [vmem:[#allocation27_spill] sm:$0xff] }
 0x51e   :  { %2370 = vmatpush1.bf16.msra.mxu0 %v4065_v18  ;;  %2411 = vmatpush1.bf16.msra.mxu1 %v4068_v19 }
 0x51f   :  { %2371 = vmatprep.subr.bf16.mxu0 %v4070_v20  ;;  %2412 = vmatprep.subr.bf16.mxu1 %v4073_v21 }
 0x520   :  { %2401 = vmatprep.mubr.bf16.mxu0 %v5429_v22  ;;  %2442 = vmatprep.mubr.bf16.mxu1 %v5429_v22 }
 0x522   :  { %2372 = vmatpush1.bf16.msra.mxu0 %v4090_v26  ;;  %2413 = vmatpush1.bf16.msra.mxu1 %v4094_v28 }
 0x523   :  { %2373 = vmatprep.subr.bf16.mxu0 %v4096_v29  ;;  %2414 = vmatprep.subr.bf16.mxu1 %v5592_v35  ;;  %v5624_v35 = vld [vmem:[#allocation81_spill] sm:$0xff] }
 0x526   :  { %2374 = vmatpush1.bf16.msra.mxu0 %v5593_v17  ;;  %2415 = vmatpush1.bf16.msra.mxu1 %v5594_v41 }
 0x527   :  { %2375 = vmatprep.subr.bf16.mxu0 %v5595_v15  ;;  %2416 = vmatprep.subr.bf16.mxu1 %v5596_v52 }
 0x52a   :  { %2376 = vmatpush1.bf16.msra.mxu0 %v5597_v9  ;;  %2417 = vmatpush1.bf16.msra.mxu1 %v5598_v37  ;;  %v5620_v37 = vld [vmem:[#allocation54_spill] sm:$0xff] }
 0x52b   :  { %2377 = vmatprep.subr.bf16.mxu0 %v5599_v36  ;;  %2418 = vmatprep.subr.bf16.mxu1 %v5600_v38  ;;  %v5619_v36 = vld [vmem:[#allocation51_spill] sm:$0xff] }
 0x52e   :  { %2378 = vmatpush1.bf16.msra.mxu0 %v5601_v6  ;;  %2419 = vmatpush1.bf16.msra.mxu1 %v5602_v33  ;;  %v5617_v33 = vld [vmem:[#allocation50_spill] sm:$0xff]  ;;  %v5618_v6 = vld [vmem:[#allocation52_spill] sm:$0xff] }
 0x52f   :  { %2379 = vmatprep.subr.bf16.mxu0 %v5603_v43  ;;  %2420 = vmatprep.subr.bf16.mxu1 %v5604_v2  ;;  %v5614_v43 = vld [vmem:[#allocation28_spill] sm:$0xff]  ;;  %v5615_v2 = vld [vmem:[#allocation29_spill] sm:$0xff] }
 0x532   :  { %2380 = vmatpush1.bf16.msra.mxu0 %v5605_v53  ;;  %2421 = vmatpush1.bf16.msra.mxu1 %v5606_v60  ;;  %v5616_v53 = vld [vmem:[#allocation30_spill] sm:$0xff] }
 0x533   :  { %2381 = vmatprep.subr.bf16.mxu0 %v5607_v30  ;;  %2422 = vmatprep.subr.bf16.mxu1 %v5608_v58 }
 0x536   :  { %2382 = vmatpush1.bf16.msra.mxu0 %v5609_v34  ;;  %2423 = vmatpush1.bf16.msra.mxu1 %v5610_v46 }
 0x537   :  { %2383 = vmatprep.subr.bf16.mxu0 %v5611_v45  ;;  %2424 = vmatprep.subr.bf16.mxu1 %v5612_v50 }
 0x53a   :  { %2384 = vmatpush1.bf16.msra.mxu0 %v5613_v51  ;;  %2425 = vmatpush1.bf16.msra.mxu1 %v5614_v43 }
 0x53b   :  { %2451 = vmatprep.subr.bf16.mxu0 %v5615_v2  ;;  %2492 = vmatprep.subr.bf16.mxu1 %v5616_v53 }
 0x5d0   :  { %v2174_v60 = vpop.f32.mrb[64].mxu0  ;;  %v2215_v30 = vpop.f32.mrb[64].mxu1 }
 0x5d1   :  { %v2308_v58 = vadd.f32 %v2174_v60, %v5617_v33  ;;  %v2310_v34 = vadd.f32 %v2215_v30, %v5618_v6  ;;  %v2176_v38 = vpop.f32.mrb[65].mxu0  ;;  %v2217_v46 = vpop.f32.mrb[65].mxu1 }
 0x5d2   :  { %v2309_v45 = vadd.f32 %v2176_v38, %v5619_v36  ;;  %v2311_v50 = vadd.f32 %v2217_v46, %v5620_v37  ;;  %v2178_v9 = vpop.f32.mrb[66].mxu0  ;;  %v2219_v51 = vpop.f32.mrb[66].mxu1  ;;  %v5621_v46 = vld [vmem:[#allocation77_spill] sm:$0xff] }
 0x5d3   :  { %v3403_v52 = vmul.f32 -1.442695, %v2308_v58  ;;  %v2179_v43 = vpop.f32.mrb[67].mxu0  ;;  %v2220_v15 = vpop.f32.mrb[67].mxu1  ;;  %v5623_v51 = vld [vmem:[#allocation79_spill] sm:$0xff] }
 0x5d4   :  { %v3404_v2 = vmul.f32 -1.442695, %v2309_v45 }
 0x5d5   :  { %3617 = vpow2.f32 %v3403_v52 }
 0x5d6   :  { %3619 = vpow2.f32 %v3404_v2 }
 0x5d7   :  { %3621 = vtanh.f32 %v2310_v34  ;;  %v5622_v34 = vld [vmem:[#allocation80_spill] sm:$0xff] }
 0x5df   :  { %v3618_v53 = vpop.eup %3617 }
 0x5e0   :  { %v3620_v41 = vpop.eup %3619  ;;  %v2323_v17 = vadd.f32 1.0, %v3618_v53 }
 0x5e1   :  { %v2329_v33 = vadd.f32 1.0, %v3620_v41  ;;  %v3622_v6 = vpop.eup %3621 }
 0x5e2   :  { %3623 = vrcp.f32 %v2323_v17 }
 0x5e3   :  { %3625 = vrcp.f32 %v2329_v33 }
 0x5ec   :  { %v3624_v60 = vpop.eup %3623 }
 0x5ed   :  { %v3626_v36 = vpop.eup %3625  ;;  %v2340_v38 = vmul.f32 %v3624_v60, %v3622_v6 }
 0x5ee   :  { %v2339_v9 = vmul.f32 %v3626_v36, %v4953_v61  ;;  %v3405_v36 = vmul.f32 -1.442695, %v2311_v50 }
 0x5f0   :  { %v5037_v37 = vadd.f32 %v2340_v38, %v2339_v9  ;;  %v2256_v43 = vpop.f32.mrb[68].mxu0  ;;  %v2297_v15 = vpop.f32.mrb[68].mxu1 }
 0x5f1   :  { %v2257_v30 = vpop.f32.mrb[69].mxu0  ;;  %v2298_v52 = vpop.f32.mrb[69].mxu1 }
 0x5f2   :  { %v2258_v2 = vpop.f32.mrb[70].mxu0  ;;  %v2299_v58 = vpop.f32.mrb[70].mxu1 }
 0x5f3   :  { %v2316_v53 = vadd.f32 %v2258_v2, %v5621_v46  ;;  %v2318_v41 = vadd.f32 %v2299_v58, %v5622_v34  ;;  %v2260_v17 = vpop.f32.mrb[71].mxu0  ;;  %v2301_v45 = vpop.f32.mrb[71].mxu1 }
 0x5f4   :  { %v2317_v33 = vadd.f32 %v2260_v17, %v5623_v51  ;;  %v2319_v6 = vadd.f32 %v2301_v45, %v5624_v35 }
 0x5f5   :  { %v3406_v60 = vmul.f32 -1.442695, %v2316_v53 }
 0x5f6   :  { %v3407_v61 = vmul.f32 -1.442695, %v2317_v33  ;;  %v3408_v38 = vmul.f32 -1.442695, %v2319_v6 }
 0x5f7   :  { %3627 = vpow2.f32 %v3406_v60 }
 0x5f8   :  { %3629 = vpow2.f32 %v3407_v61 }
 0x5f9   :  { %3631 = vpow2.f32 %v3405_v36 }
 0x5fa   :  { %3633 = vpow2.f32 %v3408_v38  ;;  %v5626_v38 = vld [vmem:[#allocation7_spill] sm:$0xff] }
 0x5fb   :  { %3635 = vtanh.f32 %v2318_v41 }
 0x601   :  { %v3628_v9 = vpop.eup %3627 }
 0x602   :  { %v3630_v43 = vpop.eup %3629  ;;  %v2347_v15 = vadd.f32 1.0, %v3628_v9  ;;  %v5627_v9 = vld [vmem:[#allocation8_spill] sm:$0xff] }
 0x603   :  { %v2353_v30 = vadd.f32 1.0, %v3630_v43  ;;  %v3632_v52 = vpop.eup %3631  ;;  %v5628_v43 = vld [vmem:[#allocation9_spill] sm:$0xff] }
 0x604   :  { %3637 = vrcp.f32 %v2347_v15  ;;  %v3634_v2 = vpop.eup %3633  ;;  %v2336_v46 = vadd.f32 1.0, %v3632_v52  ;;  %v5629_v15 = vld [vmem:[#allocation10_spill] sm:$0xff]  ;;  %v5631_v52 = vld [vmem:[#allocation12_spill] sm:$0xff] }
 0x605   :  { %3639 = vrcp.f32 %v2353_v30  ;;  %v3636_v58 = vpop.eup %3635  ;;  %v2360_v17 = vadd.f32 1.0, %v3634_v2  ;;  %v5630_v30 = vld [vmem:[#allocation11_spill] sm:$0xff]  ;;  %v5632_v2 = vld [vmem:[#allocation13_spill] sm:$0xff] }
 0x606   :  { %3641 = vrcp.f32 %v2336_v46  ;;  %v5634_v46 = vld [vmem:[#allocation15_spill] sm:$0xff] }
 0x607   :  { %3643 = vtanh.f32 %v5037_v37 }
 0x608   :  { %3645 = vrcp.f32 %v2360_v17  ;;  %v5638_v17 = vld [vmem:[#allocation19_spill] sm:$0xff] }
 0x60e   :  { %v3638_v35 = vpop.eup %3637 }
 0x60f   :  { %v3640_v53 = vpop.eup %3639  ;;  %v2364_v34 = vmul.f32 %v3638_v35, %v3636_v58  ;;  %v5633_v58 = vld [vmem:[#allocation14_spill] sm:$0xff]  ;;  %v5635_v35 = vld [vmem:[#allocation16_spill] sm:$0xff] }
 0x610   :  { %v2363_v50 = vmul.f32 %v3640_v53, %v4961_v16  ;;  %v3642_v41 = vpop.eup %3641  ;;  %v5625_v16 = vld [vmem:[#allocation6_spill] sm:$0xff]  ;;  %v5636_v53 = vld [vmem:[#allocation17_spill] sm:$0xff] }
 0x611   :  { %v3644_v51 = vpop.eup %3643 }
 0x612   :  { %v5045_v45 = vadd.f32 %v2364_v34, %v2363_v50  ;;  %v3646_v33 = vpop.eup %3645  ;;  %v2343_v60 = vmul.f32 %v3644_v51, %v3642_v41  ;;  %v5637_v34 = vld [vmem:[#allocation18_spill] sm:$0xff]  ;;  %v5639_v50 = vld [vmem:[#allocation20_spill] sm:$0xff]  ;;  %v5640_v41 = vld [vmem:[#allocation21_spill] sm:$0xff] }
 0x613   :  { %v5641_v51 = vld [vmem:[#allocation22_spill] sm:$0xff] }
 0x614   :  { %3647 = vtanh.f32 %v5045_v45 }
 0x61e   :  { %v3648_v6 = vpop.eup %3647 }
 0x61f   :  { %v2367_v61 = vmul.f32 %v3648_v6, %v3646_v33  ;;  %v5642_v33 = vld [vmem:[#allocation23_spill] sm:$0xff]  ;;  %v5643_v6 = vld [vmem:[#allocation24_spill] sm:$0xff] }
 0x621   :  { %v2368_v36 = vpack.c.bf16 %v2367_v61, %v2343_v60  ;;  %v5644_v60 = vld [vmem:[#allocation25_spill] sm:$0xff]  ;;  %v5645_v61 = vld [vmem:[#allocation26_spill] sm:$0xff] }
 0x623   :  { %2402 = vmatmul.mubr.bf16.vlgmr.msra.gmra.mrb[72].mxu0 %v2368_v36  ;;  %2443 = vmatmul.mubr.bf16.vlgmr.msra.gmra.mrb[72].mxu1 %v2368_v36 }
 0x624   :  { %2452 = vmatpush1.bf16.msra.mxu0 %v4272_v25  ;;  %2493 = vmatpush1.bf16.msra.mxu1 %v4276_v10 }
 0x625   :  { %2453 = vmatprep.subr.bf16.mxu0 %v4278_v31  ;;  %2494 = vmatprep.subr.bf16.mxu1 %v4281_v32 }
 0x626   :  { %2483 = vmatprep.mubr.bf16.mxu0 %v5429_v22  ;;  %2524 = vmatprep.mubr.bf16.mxu1 %v5429_v22 }
 0x628   :  { %2454 = vmatpush1.bf16.msra.mxu0 %v4298_v27  ;;  %2495 = vmatpush1.bf16.msra.mxu1 %v4302_v47 }
 0x629   :  { %2455 = vmatprep.subr.bf16.mxu0 %v4304_v48  ;;  %2496 = vmatprep.subr.bf16.mxu1 %v4307_v49 }
 0x62c   :  { %2456 = vmatpush1.bf16.msra.mxu0 %v4324_v40  ;;  %2497 = vmatpush1.bf16.msra.mxu1 %v4328_v63 }
 0x62d   :  { %2457 = vmatprep.subr.bf16.mxu0 %v4330_v0  ;;  %2498 = vmatprep.subr.bf16.mxu1 %v4333_v1 }
 0x630   :  { %2458 = vmatpush1.bf16.msra.mxu0 %v4348_v59  ;;  %2499 = vmatpush1.bf16.msra.mxu1 %v5486_v3 }
 0x631   :  { %2459 = vmatprep.subr.bf16.mxu0 %v5487_v5  ;;  %2500 = vmatprep.subr.bf16.mxu1 %v5488_v14 }
 0x634   :  { %2460 = vmatpush1.bf16.msra.mxu0 %v5489_v7  ;;  %2501 = vmatpush1.bf16.msra.mxu1 %v5490_v62 }
 0x635   :  { %2461 = vmatprep.subr.bf16.mxu0 %v5491_v4  ;;  %2502 = vmatprep.subr.bf16.mxu1 %v5492_v44 }
 0x638   :  { %2462 = vmatpush1.bf16.msra.mxu0 %v4396_v11  ;;  %2503 = vmatpush1.bf16.msra.mxu1 %v4400_v39 }
 0x639   :  { %2463 = vmatprep.subr.bf16.mxu0 %v4402_v24  ;;  %2504 = vmatprep.subr.bf16.mxu1 %v4405_v23 }
 0x63c   :  { %2464 = vmatpush1.bf16.msra.mxu0 %v4420_v42  ;;  %2505 = vmatpush1.bf16.msra.mxu1 %v4424_v57 }
 0x63d   :  { %2465 = vmatprep.subr.bf16.mxu0 %v4426_v56  ;;  %2506 = vmatprep.subr.bf16.mxu1 %v4429_v55 }
 0x640   :  { %2466 = vmatpush1.bf16.msra.mxu0 %v4432_v54  ;;  %2507 = vmatpush1.bf16.msra.mxu1 %v4436_v8 }
 0x641   :  { %2598 = vmatprep.subr.bf16.mxu0 %v4047_v12  ;;  %2639 = vmatprep.subr.bf16.mxu1 %v4050_v13 }
 0x643   :  { %2484 = vmatmul.mubr.bf16.vlgmr.msra.gmra.mrb[76].mxu0 %v2368_v36  ;;  %2525 = vmatmul.mubr.bf16.vlgmr.msra.gmra.mrb[76].mxu1 %v2368_v36  ;;  %v5646_v36 = vld [vmem:[#allocation27_spill] sm:$0xff] }
 0x644   :  { %2599 = vmatpush1.bf16.msra.mxu0 %v4065_v18  ;;  %2640 = vmatpush1.bf16.msra.mxu1 %v4068_v19 }
 0x645   :  { %2600 = vmatprep.subr.bf16.mxu0 %v4070_v20  ;;  %2641 = vmatprep.subr.bf16.mxu1 %v4073_v21 }
 0x646   :  { %2630 = vmatprep.mubr.bf16.mxu0 %v5429_v22  ;;  %2671 = vmatprep.mubr.bf16.mxu1 %v5429_v22 }
 0x648   :  { %2601 = vmatpush1.bf16.msra.mxu0 %v4090_v26  ;;  %2642 = vmatpush1.bf16.msra.mxu1 %v4094_v28 }
 0x649   :  { %2602 = vmatprep.subr.bf16.mxu0 %v4096_v29  ;;  %2643 = vmatprep.subr.bf16.mxu1 %v5625_v16  ;;  %v5657_v16 = vld [vmem:[#allocation78_spill] sm:$0xff] }
 0x64c   :  { %2603 = vmatpush1.bf16.msra.mxu0 %v5626_v38  ;;  %2644 = vmatpush1.bf16.msra.mxu1 %v5627_v9 }
 0x64d   :  { %2604 = vmatprep.subr.bf16.mxu0 %v5628_v43  ;;  %2645 = vmatprep.subr.bf16.mxu1 %v5629_v15 }
 0x650   :  { %2605 = vmatpush1.bf16.msra.mxu0 %v5630_v30  ;;  %2646 = vmatpush1.bf16.msra.mxu1 %v5631_v52  ;;  %v5653_v52 = vld [vmem:[#allocation57_spill] sm:$0xff] }
 0x651   :  { %2606 = vmatprep.subr.bf16.mxu0 %v5632_v2  ;;  %2647 = vmatprep.subr.bf16.mxu1 %v5633_v58  ;;  %v5652_v2 = vld [vmem:[#allocation55_spill] sm:$0xff] }
 0x654   :  { %2607 = vmatpush1.bf16.msra.mxu0 %v5634_v46  ;;  %2648 = vmatpush1.bf16.msra.mxu1 %v5635_v35  ;;  %v5650_v35 = vld [vmem:[#allocation53_spill] sm:$0xff]  ;;  %v5651_v46 = vld [vmem:[#allocation56_spill] sm:$0xff] }
 0x655   :  { %2608 = vmatprep.subr.bf16.mxu0 %v5636_v53  ;;  %2649 = vmatprep.subr.bf16.mxu1 %v5637_v34  ;;  %v5647_v53 = vld [vmem:[#allocation28_spill] sm:$0xff]  ;;  %v5648_v34 = vld [vmem:[#allocation29_spill] sm:$0xff] }
 0x658   :  { %2609 = vmatpush1.bf16.msra.mxu0 %v5638_v17  ;;  %2650 = vmatpush1.bf16.msra.mxu1 %v5639_v50  ;;  %v5649_v17 = vld [vmem:[#allocation30_spill] sm:$0xff] }
 0x659   :  { %2610 = vmatprep.subr.bf16.mxu0 %v5640_v41  ;;  %2651 = vmatprep.subr.bf16.mxu1 %v5641_v51 }
 0x65c   :  { %2611 = vmatpush1.bf16.msra.mxu0 %v5642_v33  ;;  %2652 = vmatpush1.bf16.msra.mxu1 %v5643_v6 }
 0x65d   :  { %2612 = vmatprep.subr.bf16.mxu0 %v5644_v60  ;;  %2653 = vmatprep.subr.bf16.mxu1 %v5645_v61 }
 0x660   :  { %2613 = vmatpush1.bf16.msra.mxu0 %v5646_v36  ;;  %2654 = vmatpush1.bf16.msra.mxu1 %v5647_v53 }
 0x661   :  { %2680 = vmatprep.subr.bf16.mxu0 %v5648_v34  ;;  %2721 = vmatprep.subr.bf16.mxu1 %v5649_v17 }
 0x6f6   :  { %v2403_v50 = vpop.f32.mrb[72].mxu0  ;;  %v2444_v41 = vpop.f32.mrb[72].mxu1 }
 0x6f7   :  { %v2537_v51 = vadd.f32 %v2403_v50, %v5650_v35  ;;  %v2539_v33 = vadd.f32 %v2444_v41, %v5651_v46  ;;  %v2405_v58 = vpop.f32.mrb[73].mxu0  ;;  %v2446_v6 = vpop.f32.mrb[73].mxu1 }
 0x6f8   :  { %v2538_v60 = vadd.f32 %v2405_v58, %v5652_v2  ;;  %v2540_v61 = vadd.f32 %v2446_v6, %v5653_v52  ;;  %v2407_v30 = vpop.f32.mrb[74].mxu0  ;;  %v2448_v36 = vpop.f32.mrb[74].mxu1  ;;  %v5654_v6 = vld [vmem:[#allocation74_spill] sm:$0xff] }
 0x6f9   :  { %v3409_v15 = vmul.f32 -1.442695, %v2537_v51  ;;  %v2408_v53 = vpop.f32.mrb[75].mxu0  ;;  %v2449_v43 = vpop.f32.mrb[75].mxu1  ;;  %v5656_v36 = vld [vmem:[#allocation75_spill] sm:$0xff] }
 0x6fa   :  { %v3410_v34 = vmul.f32 -1.442695, %v2538_v60 }
 0x6fb   :  { %3649 = vpow2.f32 %v3409_v15 }
 0x6fc   :  { %3651 = vpow2.f32 %v3410_v34 }
 0x6fd   :  { %3653 = vtanh.f32 %v2539_v33  ;;  %v5655_v33 = vld [vmem:[#allocation76_spill] sm:$0xff] }
 0x705   :  { %v3650_v17 = vpop.eup %3649 }
 0x706   :  { %v3652_v9 = vpop.eup %3651  ;;  %v2552_v38 = vadd.f32 1.0, %v3650_v17 }
 0x707   :  { %v2558_v35 = vadd.f32 1.0, %v3652_v9  ;;  %v3654_v46 = vpop.eup %3653 }
 0x708   :  { %3655 = vrcp.f32 %v2552_v38 }
 0x709   :  { %3657 = vrcp.f32 %v2558_v35 }
 0x712   :  { %v3656_v50 = vpop.eup %3655 }
 0x713   :  { %v3658_v2 = vpop.eup %3657  ;;  %v2569_v58 = vmul.f32 %v3656_v50, %v3654_v46 }
 0x714   :  { %v2568_v30 = vmul.f32 %v3658_v2, %v5037_v37  ;;  %v3411_v2 = vmul.f32 -1.442695, %v2540_v61 }
 0x716   :  { %v5121_v52 = vadd.f32 %v2569_v58, %v2568_v30  ;;  %v2485_v53 = vpop.f32.mrb[76].mxu0  ;;  %v2526_v43 = vpop.f32.mrb[76].mxu1 }
 0x717   :  { %v2486_v41 = vpop.f32.mrb[77].mxu0  ;;  %v2527_v15 = vpop.f32.mrb[77].mxu1 }
 0x718   :  { %v2487_v34 = vpop.f32.mrb[78].mxu0  ;;  %v2528_v51 = vpop.f32.mrb[78].mxu1 }
 0x719   :  { %v2545_v17 = vadd.f32 %v2487_v34, %v5654_v6  ;;  %v2547_v9 = vadd.f32 %v2528_v51, %v5655_v33  ;;  %v2489_v38 = vpop.f32.mrb[79].mxu0  ;;  %v2530_v60 = vpop.f32.mrb[79].mxu1 }
 0x71a   :  { %v2546_v35 = vadd.f32 %v2489_v38, %v5656_v36  ;;  %v2548_v46 = vadd.f32 %v2530_v60, %v5657_v16 }
 0x71b   :  { %v3412_v50 = vmul.f32 -1.442695, %v2545_v17 }
 0x71c   :  { %v3413_v37 = vmul.f32 -1.442695, %v2546_v35  ;;  %v3414_v58 = vmul.f32 -1.442695, %v2548_v46 }
 0x71d   :  { %3659 = vpow2.f32 %v3412_v50 }
 0x71e   :  { %3661 = vpow2.f32 %v3413_v37 }
 0x71f   :  { %3663 = vpow2.f32 %v3411_v2 }
 0x720   :  { %3665 = vpow2.f32 %v3414_v58  ;;  %v5665_v58 = vld [vmem:[#allocation13_spill] sm:$0xff] }
 0x721   :  { %3667 = vtanh.f32 %v2547_v9 }
 0x727   :  { %v3660_v30 = vpop.eup %3659 }
 0x728   :  { %v3662_v53 = vpop.eup %3661  ;;  %v2576_v43 = vadd.f32 1.0, %v3660_v30  ;;  %v5669_v30 = vld [vmem:[#allocation17_spill] sm:$0xff] }
 0x729   :  { %v2582_v41 = vadd.f32 1.0, %v3662_v53  ;;  %v3664_v15 = vpop.eup %3663  ;;  %v5670_v53 = vld [vmem:[#allocation18_spill] sm:$0xff] }
 0x72a   :  { %3669 = vrcp.f32 %v2576_v43  ;;  %v3666_v34 = vpop.eup %3665  ;;  %v2565_v6 = vadd.f32 1.0, %v3664_v15  ;;  %v5671_v43 = vld [vmem:[#allocation19_spill] sm:$0xff]  ;;  %v5673_v15 = vld [vmem:[#allocation21_spill] sm:$0xff] }
 0x72b   :  { %3671 = vrcp.f32 %v2582_v41  ;;  %v3668_v51 = vpop.eup %3667  ;;  %v2589_v38 = vadd.f32 1.0, %v3666_v34  ;;  %v5672_v41 = vld [vmem:[#allocation20_spill] sm:$0xff]  ;;  %v5674_v34 = vld [vmem:[#allocation22_spill] sm:$0xff] }
 0x72c   :  { %3673 = vrcp.f32 %v2565_v6  ;;  %v5676_v6 = vld [vmem:[#allocation24_spill] sm:$0xff] }
 0x72d   :  { %3675 = vtanh.f32 %v5121_v52 }
 0x72e   :  { %3677 = vrcp.f32 %v2589_v38  ;;  %v5680_v38 = vld [vmem:[#allocation28_spill] sm:$0xff] }
 0x734   :  { %v3670_v16 = vpop.eup %3669 }
 0x735   :  { %v3672_v17 = vpop.eup %3671  ;;  %v2593_v33 = vmul.f32 %v3670_v16, %v3668_v51  ;;  %v5675_v51 = vld [vmem:[#allocation23_spill] sm:$0xff]  ;;  %v5677_v16 = vld [vmem:[#allocation25_spill] sm:$0xff] }
 0x736   :  { %v2592_v61 = vmul.f32 %v3672_v17, %v5045_v45  ;;  %v3674_v9 = vpop.eup %3673  ;;  %v5664_v45 = vld [vmem:[#allocation12_spill] sm:$0xff]  ;;  %v5678_v17 = vld [vmem:[#allocation26_spill] sm:$0xff] }
 0x737   :  { %v3676_v36 = vpop.eup %3675 }
 0x738   :  { %v5129_v60 = vadd.f32 %v2593_v33, %v2592_v61  ;;  %v3678_v35 = vpop.eup %3677  ;;  %v2572_v50 = vmul.f32 %v3676_v36, %v3674_v9  ;;  %v5679_v33 = vld [vmem:[#allocation27_spill] sm:$0xff]  ;;  %v5681_v61 = vld [vmem:[#allocation29_spill] sm:$0xff]  ;;  %v5682_v9 = vld [vmem:[#allocation30_spill] sm:$0xff] }
 0x73a   :  { %3679 = vtanh.f32 %v5129_v60 }
 0x744   :  { %v3680_v46 = vpop.eup %3679 }
 0x745   :  { %v2596_v37 = vmul.f32 %v3680_v46, %v3678_v35  ;;  %v5683_v46 = vld [vmem:[#allocation58_spill] sm:$0xff] }
 0x747   :  { %v2597_v2 = vpack.c.bf16 %v2596_v37, %v2572_v50  ;;  %v5684_v37 = vld [vmem:[#allocation60_spill] sm:$0xff] }
 0x749   :  { %2631 = vmatmul.mubr.bf16.vlgmr.msra.gmra.mrb[80].mxu0 %v2597_v2  ;;  %2672 = vmatmul.mubr.bf16.vlgmr.msra.gmra.mrb[80].mxu1 %v2597_v2 }
 0x74a   :  { %2681 = vmatpush1.bf16.msra.mxu0 %v4272_v25  ;;  %2722 = vmatpush1.bf16.msra.mxu1 %v4276_v10 }
 0x74b   :  { %2682 = vmatprep.subr.bf16.mxu0 %v4278_v31  ;;  %2723 = vmatprep.subr.bf16.mxu1 %v4281_v32 }
 0x74c   :  { %2712 = vmatprep.mubr.bf16.mxu0 %v5429_v22  ;;  %2753 = vmatprep.mubr.bf16.mxu1 %v5429_v22 }
 0x74e   :  { %2683 = vmatpush1.bf16.msra.mxu0 %v4298_v27  ;;  %2724 = vmatpush1.bf16.msra.mxu1 %v4302_v47 }
 0x74f   :  { %2684 = vmatprep.subr.bf16.mxu0 %v4304_v48  ;;  %2725 = vmatprep.subr.bf16.mxu1 %v4307_v49 }
 0x752   :  { %2685 = vmatpush1.bf16.msra.mxu0 %v4324_v40  ;;  %2726 = vmatpush1.bf16.msra.mxu1 %v4328_v63 }
 0x753   :  { %2686 = vmatprep.subr.bf16.mxu0 %v4330_v0  ;;  %2727 = vmatprep.subr.bf16.mxu1 %v4333_v1 }
 0x756   :  { %2687 = vmatpush1.bf16.msra.mxu0 %v4348_v59  ;;  %2728 = vmatpush1.bf16.msra.mxu1 %v5486_v3 }
 0x757   :  { %2688 = vmatprep.subr.bf16.mxu0 %v5487_v5  ;;  %2729 = vmatprep.subr.bf16.mxu1 %v5488_v14 }
 0x75a   :  { %2689 = vmatpush1.bf16.msra.mxu0 %v5489_v7  ;;  %2730 = vmatpush1.bf16.msra.mxu1 %v5490_v62 }
 0x75b   :  { %2690 = vmatprep.subr.bf16.mxu0 %v5491_v4  ;;  %2731 = vmatprep.subr.bf16.mxu1 %v5492_v44 }
 0x75e   :  { %2691 = vmatpush1.bf16.msra.mxu0 %v4396_v11  ;;  %2732 = vmatpush1.bf16.msra.mxu1 %v4400_v39 }
 0x75f   :  { %2692 = vmatprep.subr.bf16.mxu0 %v4402_v24  ;;  %2733 = vmatprep.subr.bf16.mxu1 %v4405_v23 }
 0x762   :  { %2693 = vmatpush1.bf16.msra.mxu0 %v4420_v42  ;;  %2734 = vmatpush1.bf16.msra.mxu1 %v4424_v57 }
 0x763   :  { %2694 = vmatprep.subr.bf16.mxu0 %v4426_v56  ;;  %2735 = vmatprep.subr.bf16.mxu1 %v4429_v55 }
 0x766   :  { %2695 = vmatpush1.bf16.msra.mxu0 %v4432_v54  ;;  %2736 = vmatpush1.bf16.msra.mxu1 %v4436_v8 }
 0x767   :  { %2827 = vmatprep.subr.bf16.mxu0 %v4047_v12  ;;  %2868 = vmatprep.subr.bf16.mxu1 %v4050_v13  ;;  %v5658_v12 = vld [vmem:[#allocation6_spill] sm:$0xff]  ;;  %v5659_v13 = vld [vmem:[#allocation7_spill] sm:$0xff] }
 0x769   :  { %2713 = vmatmul.mubr.bf16.vlgmr.msra.gmra.mrb[84].mxu0 %v2597_v2  ;;  %2754 = vmatmul.mubr.bf16.vlgmr.msra.gmra.mrb[84].mxu1 %v2597_v2 }
 0x76a   :  { %2828 = vmatpush1.bf16.msra.mxu0 %v4065_v18  ;;  %2869 = vmatpush1.bf16.msra.mxu1 %v4068_v19  ;;  %v5660_v18 = vld [vmem:[#allocation8_spill] sm:$0xff]  ;;  %v5661_v19 = vld [vmem:[#allocation9_spill] sm:$0xff] }
 0x76b   :  { %2829 = vmatprep.subr.bf16.mxu0 %v4070_v20  ;;  %2870 = vmatprep.subr.bf16.mxu1 %v4073_v21  ;;  %v5662_v20 = vld [vmem:[#allocation10_spill] sm:$0xff]  ;;  %v5663_v21 = vld [vmem:[#allocation11_spill] sm:$0xff] }
 0x76c   :  { %2859 = vmatprep.mubr.bf16.mxu0 %v5429_v22  ;;  %2900 = vmatprep.mubr.bf16.mxu1 %v5429_v22 }
 0x76e   :  { %2830 = vmatpush1.bf16.msra.mxu0 %v4090_v26  ;;  %2871 = vmatpush1.bf16.msra.mxu1 %v4094_v28  ;;  %v5666_v26 = vld [vmem:[#allocation14_spill] sm:$0xff]  ;;  %v5667_v28 = vld [vmem:[#allocation15_spill] sm:$0xff] }
 0x76f   :  { %2831 = vmatprep.subr.bf16.mxu0 %v4096_v29  ;;  %2872 = vmatprep.subr.bf16.mxu1 %v5658_v12  ;;  %v5668_v29 = vld [vmem:[#allocation16_spill] sm:$0xff] }
 0x772   :  { %2832 = vmatpush1.bf16.msra.mxu0 %v5659_v13  ;;  %2873 = vmatpush1.bf16.msra.mxu1 %v5660_v18  ;;  %v5685_v18 = vld [vmem:[#allocation59_spill] sm:$0xff] }
 0x773   :  { %2833 = vmatprep.subr.bf16.mxu0 %v5661_v19  ;;  %2874 = vmatprep.subr.bf16.mxu1 %v5662_v20  ;;  %v5686_v20 = vld [vmem:[#allocation62_spill] sm:$0xff] }
 0x776   :  { %2834 = vmatpush1.bf16.msra.mxu0 %v5663_v21  ;;  %2875 = vmatpush1.bf16.msra.mxu1 %v5664_v45 }
 0x777   :  { %2835 = vmatprep.subr.bf16.mxu0 %v5665_v58  ;;  %2876 = vmatprep.subr.bf16.mxu1 %v5666_v26 }
 0x77a   :  { %2836 = vmatpush1.bf16.msra.mxu0 %v5667_v28  ;;  %2877 = vmatpush1.bf16.msra.mxu1 %v5668_v29 }
 0x77b   :  { %2837 = vmatprep.subr.bf16.mxu0 %v5669_v30  ;;  %2878 = vmatprep.subr.bf16.mxu1 %v5670_v53 }
 0x77e   :  { %2838 = vmatpush1.bf16.msra.mxu0 %v5671_v43  ;;  %2879 = vmatpush1.bf16.msra.mxu1 %v5672_v41 }
 0x77f   :  { %2839 = vmatprep.subr.bf16.mxu0 %v5673_v15  ;;  %2880 = vmatprep.subr.bf16.mxu1 %v5674_v34 }
 0x782   :  { %2840 = vmatpush1.bf16.msra.mxu0 %v5675_v51  ;;  %2881 = vmatpush1.bf16.msra.mxu1 %v5676_v6 }
 0x783   :  { %2841 = vmatprep.subr.bf16.mxu0 %v5677_v16  ;;  %2882 = vmatprep.subr.bf16.mxu1 %v5678_v17 }
 0x786   :  { %2842 = vmatpush1.bf16.msra.mxu0 %v5679_v33  ;;  %2883 = vmatpush1.bf16.msra.mxu1 %v5680_v38 }
 0x787   :  { %2909 = vmatprep.subr.bf16.mxu0 %v5681_v61  ;;  %2950 = vmatprep.subr.bf16.mxu1 %v5682_v9 }
 0x81c   :  { %v2632_v36 = vpop.f32.mrb[80].mxu0  ;;  %v2673_v35 = vpop.f32.mrb[80].mxu1 }
 0x81d   :  { %v2766_v50 = vadd.f32 %v2632_v36, %v5683_v46  ;;  %v2768_v2 = vadd.f32 %v2673_v35, %v5684_v37  ;;  %v2634_v12 = vpop.f32.mrb[81].mxu0  ;;  %v2675_v13 = vpop.f32.mrb[81].mxu1 }
 0x81e   :  { %v2767_v19 = vadd.f32 %v2634_v12, %v5685_v18  ;;  %v2769_v21 = vadd.f32 %v2675_v13, %v5686_v20  ;;  %v2636_v45 = vpop.f32.mrb[82].mxu0  ;;  %v2677_v58 = vpop.f32.mrb[82].mxu1 }
 0x81f   :  { %v3415_v26 = vmul.f32 -1.442695, %v2766_v50  ;;  %v2637_v28 = vpop.f32.mrb[83].mxu0  ;;  %v2678_v29 = vpop.f32.mrb[83].mxu1  ;;  %v5687_v50 = vld [vmem:[#allocation69_spill] sm:$0xff] }
 0x820   :  { %v3416_v30 = vmul.f32 -1.442695, %v2767_v19  ;;  %v5689_v19 = vld [vmem:[#allocation71_spill] sm:$0xff]  ;;  %v5690_v45 = vld [vmem:[#allocation73_spill] sm:$0xff]  ;;  %v3417_v28 = vmul.f32 -1.442695, %v2769_v21 }
 0x821   :  { %3681 = vpow2.f32 %v3415_v26 }
 0x822   :  { %3683 = vpow2.f32 %v3416_v30 }
 0x823   :  { %3685 = vtanh.f32 %v2768_v2  ;;  %v5688_v2 = vld [vmem:[#allocation72_spill] sm:$0xff] }
 0x82b   :  { %v3682_v53 = vpop.eup %3681 }
 0x82c   :  { %v3684_v43 = vpop.eup %3683  ;;  %v2781_v41 = vadd.f32 1.0, %v3682_v53 }
 0x82d   :  { %v2787_v15 = vadd.f32 1.0, %v3684_v43  ;;  %v3686_v34 = vpop.eup %3685 }
 0x82e   :  { %3687 = vrcp.f32 %v2781_v41 }
 0x82f   :  { %3689 = vrcp.f32 %v2787_v15 }
 0x838   :  { %v3688_v51 = vpop.eup %3687 }
 0x839   :  { %v3690_v6 = vpop.eup %3689  ;;  %v2798_v16 = vmul.f32 %v3688_v51, %v3686_v34 }
 0x83a   :  { %v2797_v17 = vmul.f32 %v3690_v6, %v5121_v52 }
 0x83c   :  { %v5205_v33 = vadd.f32 %v2798_v16, %v2797_v17  ;;  %v2714_v38 = vpop.f32.mrb[84].mxu0  ;;  %v2755_v61 = vpop.f32.mrb[84].mxu1 }
 0x83d   :  { %v2715_v9 = vpop.f32.mrb[85].mxu0  ;;  %v2756_v36 = vpop.f32.mrb[85].mxu1 }
 0x83e   :  { %v2716_v35 = vpop.f32.mrb[86].mxu0  ;;  %v2757_v46 = vpop.f32.mrb[86].mxu1 }
 0x83f   :  { %v2774_v37 = vadd.f32 %v2716_v35, %v5687_v50  ;;  %v2776_v12 = vadd.f32 %v2757_v46, %v5688_v2  ;;  %v2718_v13 = vpop.f32.mrb[87].mxu0  ;;  %v2759_v18 = vpop.f32.mrb[87].mxu1 }
 0x840   :  { %v2775_v20 = vadd.f32 %v2718_v13, %v5689_v19  ;;  %v2777_v58 = vadd.f32 %v2759_v18, %v5690_v45 }
 0x841   :  { %v3418_v26 = vmul.f32 -1.442695, %v2774_v37 }
 0x842   :  { %v3419_v52 = vmul.f32 -1.442695, %v2775_v20  ;;  %v3420_v29 = vmul.f32 -1.442695, %v2777_v58 }
 0x843   :  { %3691 = vpow2.f32 %v3418_v26 }
 0x844   :  { %3693 = vpow2.f32 %v3419_v52 }
 0x845   :  { %3695 = vpow2.f32 %v3417_v28 }
 0x846   :  { %3697 = vpow2.f32 %v3420_v29 }
 0x847   :  { %3699 = vtanh.f32 %v2776_v12 }
 0x84d   :  { %v3692_v30 = vpop.eup %3691 }
 0x84e   :  { %v3694_v53 = vpop.eup %3693  ;;  %v2805_v43 = vadd.f32 1.0, %v3692_v30 }
 0x84f   :  { %v2811_v41 = vadd.f32 1.0, %v3694_v53  ;;  %v3696_v15 = vpop.eup %3695 }
 0x850   :  { %3701 = vrcp.f32 %v2805_v43  ;;  %v3698_v34 = vpop.eup %3697  ;;  %v2794_v6 = vadd.f32 1.0, %v3696_v15 }
 0x851   :  { %3703 = vrcp.f32 %v2811_v41  ;;  %v3700_v51 = vpop.eup %3699  ;;  %v2818_v61 = vadd.f32 1.0, %v3698_v34 }
 0x852   :  { %3705 = vrcp.f32 %v2794_v6 }
 0x853   :  { %3707 = vtanh.f32 %v5205_v33 }
 0x854   :  { %3709 = vrcp.f32 %v2818_v61  ;;  %v5695_v61 = vld [vmem:[#allocation66_spill] sm:$0xff] }
 0x85a   :  { %v3702_v16 = vpop.eup %3701 }
 0x85b   :  { %v3704_v17 = vpop.eup %3703  ;;  %v2822_v38 = vmul.f32 %v3702_v16, %v3700_v51 }
 0x85c   :  { %v2821_v21 = vmul.f32 %v3704_v17, %v5129_v60  ;;  %v3706_v36 = vpop.eup %3705 }
 0x85d   :  { %v3708_v35 = vpop.eup %3707 }
 0x85e   :  { %v5213_v9 = vadd.f32 %v2822_v38, %v2821_v21  ;;  %v3710_v46 = vpop.eup %3709  ;;  %v2801_v37 = vmul.f32 %v3708_v35, %v3706_v36  ;;  %v5696_v36 = vld [vmem:[#allocation68_spill] sm:$0xff] }
 0x860   :  { %3711 = vtanh.f32 %v5213_v9 }
 0x86a   :  { %v3712_v50 = vpop.eup %3711 }
 0x86b   :  { %v2825_v2 = vmul.f32 %v3712_v50, %v3710_v46 }
 0x86d   :  { %v2826_v12 = vpack.c.bf16 %v2825_v2, %v2801_v37  ;;  %v5697_v37 = vld [vmem:[#allocation67_spill] sm:$0xff] }
 0x86f   :  { %2860 = vmatmul.mubr.bf16.vlgmr.msra.gmra.mrb[88].mxu0 %v2826_v12  ;;  %2901 = vmatmul.mubr.bf16.vlgmr.msra.gmra.mrb[88].mxu1 %v2826_v12 }
 0x870   :  { %2910 = vmatpush1.bf16.msra.mxu0 %v4272_v25  ;;  %2951 = vmatpush1.bf16.msra.mxu1 %v4276_v10  ;;  %v3473_v25 = vld [vmem:[%s5325_s4 + $0x40] sm:$0xff]  }
 0x871   :  { %2911 = vmatprep.subr.bf16.mxu0 %v4278_v31  ;;  %2952 = vmatprep.subr.bf16.mxu1 %v4281_v32  ;;  %v3474_v10 = vld [vmem:[%s5325_s4] sm:$0xff]   ;;  %v3475_v31 = vld [vmem:[%s5325_s4 + $0x48] sm:$0xff]  }
 0x872   :  { %2941 = vmatprep.mubr.bf16.mxu0 %v5429_v22  ;;  %2982 = vmatprep.mubr.bf16.mxu1 %v5429_v22  ;;  %v3476_v32 = vld [vmem:[%s5325_s4 + $0x8] sm:$0xff]  }
 0x874   :  { %2912 = vmatpush1.bf16.msra.mxu0 %v4298_v27  ;;  %2953 = vmatpush1.bf16.msra.mxu1 %v4302_v47  ;;  %v3478_v27 = vld [vmem:[%s5325_s4 + $0x10] sm:$0xff]   ;;  %v3479_v47 = vld [vmem:[%s5325_s4 + $0x58] sm:$0xff]  }
 0x875   :  { %2913 = vmatprep.subr.bf16.mxu0 %v4304_v48  ;;  %2954 = vmatprep.subr.bf16.mxu1 %v4307_v49  ;;  %v3480_v48 = vld [vmem:[%s5325_s4 + $0x18] sm:$0xff]   ;;  %v3481_v49 = vld [vmem:[%s5325_s4 + $0x60] sm:$0xff]  }
 0x878   :  { %2914 = vmatpush1.bf16.msra.mxu0 %v4324_v40  ;;  %2955 = vmatpush1.bf16.msra.mxu1 %v4328_v63  ;;  %v3482_v40 = vld [vmem:[%s5325_s4 + $0x20] sm:$0xff]   ;;  %v3483_v63 = vld [vmem:[%s5325_s4 + $0x68] sm:$0xff]  }
 0x879   :  { %2915 = vmatprep.subr.bf16.mxu0 %v4330_v0  ;;  %2956 = vmatprep.subr.bf16.mxu1 %v4333_v1  ;;  %v3484_v0 = vld [vmem:[%s5325_s4 + $0x28] sm:$0xff]   ;;  %v3485_v1 = vld [vmem:[%s5325_s4 + $0x70] sm:$0xff]  }
 0x87c   :  { %2916 = vmatpush1.bf16.msra.mxu0 %v4348_v59  ;;  %2957 = vmatpush1.bf16.msra.mxu1 %v5486_v3  ;;  %v3486_v59 = vld [vmem:[%s5325_s4 + $0x30] sm:$0xff]  }
 0x87d   :  { %2917 = vmatprep.subr.bf16.mxu0 %v5487_v5  ;;  %2958 = vmatprep.subr.bf16.mxu1 %v5488_v14  ;;  %v5693_v3 = vld [vmem:[#allocation63_spill] sm:$0xff]  ;;  %v5694_v14 = vld [vmem:[#allocation65_spill] sm:$0xff] }
 0x880   :  { %2918 = vmatpush1.bf16.msra.mxu0 %v5489_v7  ;;  %2959 = vmatpush1.bf16.msra.mxu1 %v5490_v62 }
 0x881   :  { %2919 = vmatprep.subr.bf16.mxu0 %v5491_v4  ;;  %2960 = vmatprep.subr.bf16.mxu1 %v5492_v44 }
 0x884   :  { %2920 = vmatpush1.bf16.msra.mxu0 %v4396_v11  ;;  %2961 = vmatpush1.bf16.msra.mxu1 %v4400_v39  ;;  %v3477_v39 = vld [vmem:[%s5325_s4 + $0x50] sm:$0xff]   ;;  %v5692_v11 = vld [vmem:[#allocation64_spill] sm:$0xff] }
 0x885   :  { %2921 = vmatprep.subr.bf16.mxu0 %v4402_v24  ;;  %2962 = vmatprep.subr.bf16.mxu1 %v4405_v23  ;;  %v3487_v23 = vld [vmem:[%s5325_s4 + $0x78] sm:$0xff]  }
 0x886   :  { %v3488_v24 = vld [vmem:[%s5325_s4 + $0x38] sm:$0xff]  }
 0x888   :  { %2922 = vmatpush1.bf16.msra.mxu0 %v4420_v42  ;;  %2963 = vmatpush1.bf16.msra.mxu1 %v4424_v57 }
 0x889   :  { %2923 = vmatprep.subr.bf16.mxu0 %v4426_v56  ;;  %2964 = vmatprep.subr.bf16.mxu1 %v4429_v55  ;;  %v5691_v56 = vld [vmem:[#allocation61_spill] sm:$0xff] }
 0x88c   :  { %2924 = vmatpush1.bf16.msra.mxu0 %v4432_v54  ;;  %2965 = vmatpush1.bf16.msra.mxu1 %v4436_v8 }
 0x88d   :  { %3444 = vmatprep.subr.bf16.mxu0 %v3473_v25 }
 0x88f   :  { %2942 = vmatmul.mubr.bf16.vlgmr.msra.gmra.mrb[92].mxu0 %v2826_v12  ;;  %2983 = vmatmul.mubr.bf16.vlgmr.msra.gmra.mrb[92].mxu1 %v2826_v12  ;;  %v5698_v12 = vld [vmem:[#allocation70_spill] sm:$0xff] }
 0x890   :  { %3445 = vmatpush3.bf16.msra.mxu0 %v3474_v10 }
 0x891   :  { %3446 = vmatprep.subr.bf16.mxu0 %v3475_v31 }
 0x894   :  { %3447 = vmatpush3.bf16.msra.mxu0 %v3476_v32 }
 0x895   :  { %3448 = vmatprep.subr.bf16.mxu0 %v3477_v39 }
 0x898   :  { %3449 = vmatpush3.bf16.msra.mxu0 %v3478_v27 }
 0x899   :  { %3450 = vmatprep.subr.bf16.mxu0 %v3479_v47 }
 0x89c   :  { %3451 = vmatpush3.bf16.msra.mxu0 %v3480_v48 }
 0x89d   :  { %3452 = vmatprep.subr.bf16.mxu0 %v3481_v49 }
 0x8a0   :  { %3453 = vmatpush3.bf16.msra.mxu0 %v3482_v40 }
 0x8a1   :  { %3454 = vmatprep.subr.bf16.mxu0 %v3483_v63 }
 0x8a4   :  { %3455 = vmatpush3.bf16.msra.mxu0 %v3484_v0 }
 0x8a5   :  { %3456 = vmatprep.subr.bf16.mxu0 %v3485_v1 }
 0x8a8   :  { %3457 = vmatpush3.bf16.msra.mxu0 %v3486_v59 }
 0x8a9   :  { %3458 = vmatprep.subr.bf16.mxu0 %v3487_v23 }
 0x8ac   :  { %3459 = vmatpush3.bf16.msra.mxu0 %v3488_v24 }
 0x942   :  { %v2861_v54 = vpop.f32.mrb[88].mxu0  ;;  %v2902_v55 = vpop.f32.mrb[88].mxu1 }
 0x943   :  { %v2995_v57 = vadd.f32 %v2861_v54, %v5691_v56  ;;  %v2997_v42 = vadd.f32 %v2902_v55, %v5692_v11  ;;  %v2863_v8 = vpop.f32.mrb[89].mxu0  ;;  %v2904_v22 = vpop.f32.mrb[89].mxu1 }
 0x944   :  { %v2996_v5 = vadd.f32 %v2863_v8, %v5693_v3  ;;  %v2998_v7 = vadd.f32 %v2904_v22, %v5694_v14  ;;  %v2865_v62 = vpop.f32.mrb[90].mxu0  ;;  %v2906_v4 = vpop.f32.mrb[90].mxu1 }
 0x945   :  { %v3421_v44 = vmul.f32 -1.442695, %v2995_v57  ;;  %v2866_v60 = vpop.f32.mrb[91].mxu0  ;;  %v2907_v13 = vpop.f32.mrb[91].mxu1 }
 0x946   :  { %v3422_v18 = vmul.f32 -1.442695, %v2996_v5  ;;  %v3423_v19 = vmul.f32 -1.442695, %v2998_v7  ;;  %v3427_v5 = vld [vmem:[%s5326_s5] ss:$0 sm:$0xff] }
 0x947   :  { %3713 = vpow2.f32 %v3421_v44 }
 0x948   :  { %3715 = vpow2.f32 %v3422_v18 }
 0x949   :  { %3717 = vpow2.f32 %v3423_v19 }
 0x94a   :  { %3719 = vtanh.f32 %v2997_v42 }
 0x951   :  { %v3714_v20 = vpop.eup %3713 }
 0x952   :  { %v3716_v45 = vpop.eup %3715  ;;  %v3010_v58 = vadd.f32 1.0, %v3714_v20 }
 0x953   :  { %v3016_v26 = vadd.f32 1.0, %v3716_v45  ;;  %v3718_v52 = vpop.eup %3717 }
 0x954   :  { %3721 = vrcp.f32 %v3010_v58  ;;  %v3720_v28 = vpop.eup %3719  ;;  %v3023_v43 = vadd.f32 1.0, %v3718_v52 }
 0x955   :  { %3723 = vrcp.f32 %v3016_v26 }
 0x956   :  { %3725 = vrcp.f32 %v3023_v43 }
 0x95e   :  { %v3722_v29 = vpop.eup %3721 }
 0x95f   :  { %v3724_v30 = vpop.eup %3723  ;;  %v3027_v53 = vmul.f32 %v3722_v29, %v3720_v28 }
 0x960   :  { %v3026_v41 = vmul.f32 %v3724_v30, %v5205_v33  ;;  %v3726_v31 = vpop.eup %3725 }
 0x962   :  { %v3028_v15 = vadd.f32 %v3027_v53, %v3026_v41  ;;  %v2943_v34 = vpop.f32.mrb[92].mxu0  ;;  %v2984_v51 = vpop.f32.mrb[92].mxu1 }
 0x963   :  { %v2944_v6 = vpop.f32.mrb[93].mxu0  ;;  %v2985_v16 = vpop.f32.mrb[93].mxu1 }
 0x964   :  { %3727 = vtanh.f32 %v3028_v15  ;;  %v2945_v17 = vpop.f32.mrb[94].mxu0  ;;  %v2986_v38 = vpop.f32.mrb[94].mxu1 }
 0x965   :  { %v3003_v21 = vadd.f32 %v2945_v17, %v5695_v61  ;;  %v3005_v35 = vadd.f32 %v2986_v38, %v5696_v36  ;;  %v2947_v46 = vpop.f32.mrb[95].mxu0  ;;  %v2988_v50 = vpop.f32.mrb[95].mxu1 }
 0x966   :  { %v3004_v2 = vadd.f32 %v2947_v46, %v5697_v37  ;;  %v3006_v25 = vadd.f32 %v2988_v50, %v5698_v12 }
 0x967   :  { %v3424_v33 = vmul.f32 -1.442695, %v3003_v21 }
 0x968   :  { %v3425_v10 = vmul.f32 -1.442695, %v3004_v2  ;;  %v3426_v27 = vmul.f32 -1.442695, %v3006_v25 }
 0x969   :  { %3729 = vpow2.f32 %v3424_v33 }
 0x96a   :  { %3731 = vpow2.f32 %v3425_v10 }
 0x96b   :  { %3733 = vpow2.f32 %v3426_v27 }
 0x96c   :  { %3735 = vtanh.f32 %v3005_v35 }
 0x96e   :  { %v3728_v32 = vpop.eup %3727 }
 0x96f   :  { %v3030_v39 = vmul.f32 %v3728_v32, %v3726_v31 }
 0x971   :  { %v3055_v8 = vpack.c.bf16 %v3030_v39, %v3030_v39 }
 0x973   :  { %v3730_v47 = vpop.eup %3729 }
 0x974   :  { %v3732_v48 = vpop.eup %3731  ;;  %v3034_v49 = vadd.f32 1.0, %v3730_v47 }
 0x975   :  { %v3040_v40 = vadd.f32 1.0, %v3732_v48  ;;  %v3734_v63 = vpop.eup %3733 }
 0x976   :  { %3737 = vrcp.f32 %v3034_v49  ;;  %v3736_v0 = vpop.eup %3735  ;;  %v3047_v24 = vadd.f32 1.0, %v3734_v63 }
 0x977   :  { %3739 = vrcp.f32 %v3040_v40 }
 0x978   :  { %3741 = vrcp.f32 %v3047_v24 }
 0x980   :  { %v3738_v1 = vpop.eup %3737 }
 0x981   :  { %v3740_v59 = vpop.eup %3739  ;;  %v3051_v23 = vmul.f32 %v3738_v1, %v3736_v0 }
 0x982   :  { %v3050_v54 = vmul.f32 %v3740_v59, %v5213_v9  ;;  %v3742_v56 = vpop.eup %3741 }
 0x984   :  { %v3052_v55 = vadd.f32 %v3051_v23, %v3050_v54 }
 0x986   :  { %3743 = vtanh.f32 %v3052_v55 }
 0x990   :  { %v3744_v57 = vpop.eup %3743 }
 0x991   :  { %v3054_v11 = vmul.f32 %v3744_v57, %v3742_v56 }
 0x993   :  { %v3056_v42 = vpack.c.bf16 %v3054_v11, %v3054_v11 }
 0x995   :  { %3224 = vmatprep.mubr.bf16.mxu0 %v3056_v42 }
 0x996   :  { %3225 = vmatmul.mubr.bf16.vlgmr.msra.gmra.mrb[96].mxu0 %v3055_v8 }
 0xa69   :  { %v3460_v22 = vpop.f32.mrb[96].mxu0 }
 0xa6a   :  { %v3461_v3 = vpop.f32.mrb[97].mxu0 }
 0xa6b   :  { %v3462_v14 = vadd.f32 %v3461_v3, %v3460_v22  ;;  %v3463_v9 = vpop.f32.mrb[98].mxu0 }
 0xa6c   :  { %v3464_v7 = vpop.f32.mrb[99].mxu0 }
 0xa6d   :  { %v3227_v62 = vadd.f32 %v3462_v14, %v3427_v5 }
 0xa6f   :  { %3232 = vst [vmem:[#allocation3] sm:$0xff] %v3227_v62 }
 0xa70   :  { %3756 = shalt.err (!%p3753_p4)
}
 0xa71   :  { %s3757_s19 = scalar_lea.hbm %s5327_s6, 128 }
 0xa72   :  { %p3758_p5 = scmp.ne.s32.totalorder %s5327_s6, %s3757_s19  ;;  %p3761_p6 = scmp.lt.u32.totalorder %s3757_s19, %s5327_s6 }
 0xa74   :  { %p3763_p7 = pnand %p3761_p6, %p3758_p5 }
 0xa76   :  { %3766 = shalt.err (!%p3763_p7)
}
 0xa77   :  { %3242 = dma.vmem_to_hbm [thread:$0]  %s3240_s15, 128, %s5327_s6, [#allocation4]  }
 0xa78   :  { %3767 = dma.done.wait [#allocation4], 128  }
 0xa79   :  { %3768 = vsyncadd [#allocation4], 4294967168 }
 0xa7a   :  { %3246 = vsyncpa [#allocation4], 1 }

</bundles_post_ra>
